<compile_context>
chip_gen: v7x
topology: tpu7x:2x2x1
jax: 0.10.0
libtpu: 0.0.40
codegen_flags: <defaults>
</compile_context>

<pallas_src>
import functools

import numpy as np
import jax
import jax.numpy as jnp
from jax import lax
from jax.experimental import pallas as pl
from jax.experimental.pallas import tpu as pltpu

KERNELS = (1, 3, 5, 7)
KMAX = 7
PAD = KMAX // 2          # 3
BN_EPS = 1e-3


# ----------------------------- Pallas kernel --------------------------------

def _lmg_fused_kernel(x_ref, mask_ref, gw_ref, gb_ref, pw_ref, pb_ref,
                      o_ref, xs_ref, *, width):
    # x_ref:    (1, C, H*W)        one batch, channel-major, flattened spatial
    # mask_ref: (7, H*W)           per-dx horizontal validity mask (0/1 f32)
    # gw_ref:   (7, C, 7*C)        dx-major BN-folded weights, dy stacked on K
    # gb_ref:   (C, 1)             grouped-conv BN bias
    # pw_ref:   (C, C)             BN-folded 1x1 conv weight (out, in)
    # pb_ref:   (C, 1)             1x1 conv BN bias
    # o_ref:    (1, C, H*W)
    # xs_ref:   (7*C, H*W + 2*PAD) scratch: dy-stacked shifted input slabs
    C = x_ref.shape[1]
    HW = x_ref.shape[2]
    XSW = xs_ref.shape[1]                                  # HW + 2*PAD

    # ---- build the dy-stacked shifted slab: 7 stores, strips zeroed only ----
    # xs[dy*C:(dy+1)*C, j] = image_flat[j - s(dy)]  (0 outside), s = (PAD-dy)*W+PAD
    x = x_ref[0]                                           # (C, HW), 8 vregs
    for dy in range(KMAX):
        s = (PAD - dy) * width + PAD                       # static per dy
        lo = max(0, s)
        hi = min(XSW, s + HW)
        r0, r1 = dy * C, (dy + 1) * C
        if lo > 0:                                         # left halo strip
            xs_ref[r0:r1, 0:lo] = jnp.zeros((C, lo), jnp.float32)
        if hi < XSW:                                       # right halo strip
            xs_ref[r0:r1, hi:XSW] = jnp.zeros((C, XSW - hi), jnp.float32)
        xs_ref[r0:r1, lo:hi] = x[:, lo - s:hi - s]

    # ---- 7 fat dots (K = 7*C), per-dx mask applied AFTER the matmul ---------
    # partial[:, o] = sum_dy W[dy,dx] . xs_dy[:, o+dx]; mask kills row-wrapped
    # columns (validity is independent of dy, so post-dot masking is exact).
    acc = jnp.zeros((C, HW), jnp.float32)
    for dx in range(KMAX):
        partial = jnp.dot(gw_ref[dx], xs_ref[:, dx:dx + HW],
                          preferred_element_type=jnp.float32)
        acc = acc + partial * mask_ref[dx:dx + 1, :]

    y1 = acc + gb_ref[...]
    y1 = y1 * jax.nn.sigmoid(y1)                           # SiLU (grouped convs)

    y2 = jnp.dot(pw_ref[...], y1, preferred_element_type=jnp.float32)
    y2 = y2 + pb_ref[...]
    o_ref[0] = (y2 * jax.nn.sigmoid(y2)).astype(o_ref.dtype)   # SiLU (1x1)


# ------------------------------- wrapper -------------------------------------

@jax.jit
def lmg_conv_pallas(x_nchw, gw, gb, pw_w, pw_b):
    B, C, H, W = x_nchw.shape
    HW = H * W

    # Per-dx horizontal validity masks (depend only on w = o % W); shape-only
    # constants -> folded at compile time.
    wi = jnp.arange(W, dtype=jnp.int32)
    rows = []
    for dx in range(KMAX):
        valid = ((wi + dx - PAD) >= 0) & ((wi + dx - PAD) < W)
        rows.append(jnp.tile(valid.astype(jnp.float32), H))
    masks = jnp.stack(rows, axis=0)                        # (KMAX, HW)

    out = pl.pallas_call(
        functools.partial(_lmg_fused_kernel, width=W),
        out_shape=jax.ShapeDtypeStruct((B, C, HW), jnp.float32),
        grid=(B,),
        in_specs=[
            pl.BlockSpec((1, C, HW), lambda b: (b, 0, 0)),
            pl.BlockSpec((KMAX, HW), lambda b: (0, 0)),
            pl.BlockSpec((KMAX, C, KMAX * C), lambda b: (0, 0, 0)),
            pl.BlockSpec((C, 1), lambda b: (0, 0)),
            pl.BlockSpec((C, C), lambda b: (0, 0)),
            pl.BlockSpec((C, 1), lambda b: (0, 0)),
        ],
        out_specs=pl.BlockSpec((1, C, HW), lambda b: (b, 0, 0)),
        scratch_shapes=[pltpu.VMEM((KMAX * C, HW + 2 * PAD), jnp.float32)],
        compiler_params=pltpu.CompilerParams(
            dimension_semantics=("parallel",)),             # v7x megacore over B
    )(x_nchw.reshape(B, C, HW), masks, gw, gb, pw_w, pw_b)

    return out.reshape(B, C, H, W)                          # free reshape, NCHW


# --------------------------- parameter creation -------------------------------

def init_params(key, channel):
    """Deterministic synthetic Conv2d + BatchNorm2d parameters.

    Returns kernel-format params (BN folded, dx-major block-diagonal weights
    with dy stacked along the contraction axis) plus the raw per-group
    parameters used by the pure-JAX reference.
    """
    C = channel
    ch = C // 4
    keys = jax.random.split(key, 3 * len(KERNELS) + 3)

    gw_np = np.zeros((KMAX, C, KMAX * C), np.float32)
    gb_list = []
    raw_groups = []
    for g, ks in enumerate(KERNELS):
        kw = jax.random.normal(keys[3 * g], (ch, ch, ks, ks), jnp.float32)
        kw = kw * (1.0 / (ch * ks * ks) ** 0.5)
        gamma = 1.0 + 0.1 * jax.random.normal(keys[3 * g + 1], (ch,), jnp.float32)
        beta = 0.1 * jax.random.normal(keys[3 * g + 2], (ch,), jnp.float32)
        mean = 0.05 * jnp.arange(ch, dtype=jnp.float32)
        var = 1.0 + 0.02 * jnp.arange(ch, dtype=jnp.float32)
        scale = gamma / jnp.sqrt(var + BN_EPS)
        bias = beta - mean * scale

        # Fold BN scale into output channels; place each (ky,kx) tap of group g
        # on the g-th diagonal block of the dy-stacked contraction columns of
        # the dx-th weight slab.
        wfold = np.asarray(kw * scale[:, None, None, None])   # (co, ci, ky, kx)
        off = (KMAX - ks) // 2
        for ky in range(ks):
            for kx in range(ks):
                dy, dx = ky + off, kx + off
                gw_np[dx,
                      g * ch:(g + 1) * ch,
                      dy * C + g * ch: dy * C + (g + 1) * ch] = wfold[:, :, ky, kx]
        gb_list.append(bias)
        raw_groups.append((kw, scale, bias))

    k0, k1, k2 = keys[-3], keys[-2], keys[-1]
    pw = jax.random.normal(k0, (C, C, 1, 1), jnp.float32) * (1.0 / C ** 0.5)
    gamma = 1.0 + 0.1 * jax.random.normal(k1, (C,), jnp.float32)
    beta = 0.1 * jax.random.normal(k2, (C,), jnp.float32)
    mean = 0.03 * jnp.arange(C, dtype=jnp.float32)
    var = 1.0 + 0.01 * jnp.arange(C, dtype=jnp.float32)
    scale = gamma / jnp.sqrt(var + BN_EPS)
    bias = beta - mean * scale

    gw = jnp.asarray(gw_np)                               # (7, C, 7*C)
    gb = jnp.concatenate(gb_list)[:, None]                # (C, 1) group-major
    pw_w = pw[:, :, 0, 0] * scale[:, None]                # (C_out, C_in) folded
    pw_b = bias[:, None]                                  # (C, 1)
    raw_pw = (pw, scale, bias)
    return gw, gb, pw_w, pw_b, raw_groups, raw_pw


# ------------------------------ reference ------------------------------------

def ref_forward(x, raw_groups, raw_pw, channel):
    """Pure-JAX (lax.conv) replica of LMGConv.forward for verification."""
    ch = channel // 4
    outs = []
    for g, ks in enumerate(KERNELS):
        kw, scale, bias = raw_groups[g]
        xg = x[:, g * ch:(g + 1) * ch]
        y = lax.conv_general_dilated(
            xg, kw, (1, 1), [(ks // 2, ks // 2)] * 2,
            dimension_numbers=("NCHW", "OIHW", "NCHW"))
        y = y * scale[None, :, None, None] + bias[None, :, None, None]
        outs.append(y * jax.nn.sigmoid(y))
    y = jnp.concatenate(outs, axis=1)
    kw, scale, bias = raw_pw
    y2 = lax.conv_general_dilated(
        y, kw, (1, 1), [(0, 0), (0, 0)],
        dimension_numbers=("NCHW", "OIHW", "NCHW"))
    y2 = y2 * scale[None, :, None, None] + bias[None, :, None, None]
    return y2 * jax.nn.sigmoid(y2)


# -------------------------------- main ----------------------------------------

if __name__ == "__main__":
    channel, B, H, W = 32, 2, 16, 16
    key = jax.random.PRNGKey(0)
    kx, kp = jax.random.split(key)
    x = jax.random.normal(kx, (B, channel, H, W), jnp.float32)

    gw, gb, pw_w, pw_b, raw_groups, raw_pw = init_params(kp, channel)

    out = jax.block_until_ready(lmg_conv_pallas(x, gw, gb, pw_w, pw_b))
    ref = jax.block_until_ready(ref_forward(x, raw_groups, raw_pw, channel))

    assert out.shape == (B, channel, H, W)
    max_err = float(jnp.max(jnp.abs(out - ref)))
    assert jnp.allclose(out, ref, atol=1e-4, rtol=1e-4), max_err
    print("KERNEL_OK")
</pallas_src>

<mosaic_0001>
module attributes {stable_mosaic.version = 11 : i64} {
  func.func @_lmg_fused_kernel(%arg0: i32, %arg1: memref<1x32x256xf32, #tpu.memory_space<vmem>>, %arg2: memref<7x256xf32, #tpu.memory_space<vmem>>, %arg3: memref<7x32x224xf32, #tpu.memory_space<vmem>>, %arg4: memref<32x1xf32, #tpu.memory_space<vmem>>, %arg5: memref<32x32xf32, #tpu.memory_space<vmem>>, %arg6: memref<32x1xf32, #tpu.memory_space<vmem>>, %arg7: memref<1x32x256xf32, #tpu.memory_space<vmem>>, %arg8: memref<224x262xf32, #tpu.memory_space<vmem>>) attributes {dimension_semantics = [#tpu.dimension_semantics<parallel>], iteration_bounds = array<i64: 2>, scalar_prefetch = 0 : i64, scratch_operands = 1 : i64, tpu.core_type = #tpu.core_type<tc>, window_params = [{transform_indices = @transform_0, window_bounds = array<i64: 1, 32, 256>}, {pipeline_mode = #tpu.pipeline_mode<synchronous>, transform_indices = @transform_1, window_bounds = array<i64: 7, 256>}, {pipeline_mode = #tpu.pipeline_mode<synchronous>, transform_indices = @transform_2, window_bounds = array<i64: 7, 32, 224>}, {pipeline_mode = #tpu.pipeline_mode<synchronous>, transform_indices = @transform_3, window_bounds = array<i64: 32, 1>}, {pipeline_mode = #tpu.pipeline_mode<synchronous>, transform_indices = @transform_4, window_bounds = array<i64: 32, 32>}, {pipeline_mode = #tpu.pipeline_mode<synchronous>, transform_indices = @transform_5, window_bounds = array<i64: 32, 1>}, {transform_indices = @transform_6, window_bounds = array<i64: 1, 32, 256>}]} {
    %c0 = arith.constant 0 : index
    %c0_0 = arith.constant 0 : index
    %c0_1 = arith.constant 0 : index
    %0 = vector.load %arg1[%c0, %c0_0, %c0_1] : memref<1x32x256xf32, #tpu.memory_space<vmem>>, vector<1x32x256xf32>
    %1 = vector.shape_cast %0 : vector<1x32x256xf32> to vector<32x256xf32>
    %cst = arith.constant 0.000000e+00 : f32
    %2 = vector.broadcast %cst : f32 to vector<32x51xf32>
    %c0_2 = arith.constant 0 : index
    %c0_3 = arith.constant 0 : index
    %3 = vector.load %arg8[%c0_2, %c0_3] : memref<224x262xf32, #tpu.memory_space<vmem>>, vector<32x51xf32>
    tpu.vector_store %arg8[%c0_2, %c0_3], %2 {strides = array<i32>} : memref<224x262xf32, #tpu.memory_space<vmem>>, vector<32x51xf32>,
    %4 = vector.extract_strided_slice %1 {offsets = [0, 0], sizes = [32, 211], strides = [1, 1]} : vector<32x256xf32> to vector<32x211xf32>
    %c0_4 = arith.constant 0 : index
    %c51 = arith.constant 51 : index
    %5 = vector.load %arg8[%c0_4, %c51] : memref<224x262xf32, #tpu.memory_space<vmem>>, vector<32x211xf32>
    tpu.vector_store %arg8[%c0_4, %c51], %4 {strides = array<i32>} : memref<224x262xf32, #tpu.memory_space<vmem>>, vector<32x211xf32>,
    %cst_5 = arith.constant 0.000000e+00 : f32
    %6 = vector.broadcast %cst_5 : f32 to vector<32x35xf32>
    %c32 = arith.constant 32 : index
    %c0_6 = arith.constant 0 : index
    %7 = vector.load %arg8[%c32, %c0_6] : memref<224x262xf32, #tpu.memory_space<vmem>>, vector<32x35xf32>
    tpu.vector_store %arg8[%c32, %c0_6], %6 {strides = array<i32>} : memref<224x262xf32, #tpu.memory_space<vmem>>, vector<32x35xf32>,
    %8 = vector.extract_strided_slice %1 {offsets = [0, 0], sizes = [32, 227], strides = [1, 1]} : vector<32x256xf32> to vector<32x227xf32>
    %c32_7 = arith.constant 32 : index
    %c35 = arith.constant 35 : index
    %9 = vector.load %arg8[%c32_7, %c35] : memref<224x262xf32, #tpu.memory_space<vmem>>, vector<32x227xf32>
    tpu.vector_store %arg8[%c32_7, %c35], %8 {strides = array<i32>} : memref<224x262xf32, #tpu.memory_space<vmem>>, vector<32x227xf32>,
    %cst_8 = arith.constant 0.000000e+00 : f32
    %10 = vector.broadcast %cst_8 : f32 to vector<32x19xf32>
    %c64 = arith.constant 64 : index
    %c0_9 = arith.constant 0 : index
    %11 = vector.load %arg8[%c64, %c0_9] : memref<224x262xf32, #tpu.memory_space<vmem>>, vector<32x19xf32>
    tpu.vector_store %arg8[%c64, %c0_9], %10 {strides = array<i32>} : memref<224x262xf32, #tpu.memory_space<vmem>>, vector<32x19xf32>,
    %12 = vector.extract_strided_slice %1 {offsets = [0, 0], sizes = [32, 243], strides = [1, 1]} : vector<32x256xf32> to vector<32x243xf32>
    %c64_10 = arith.constant 64 : index
    %c19 = arith.constant 19 : index
    %13 = vector.load %arg8[%c64_10, %c19] : memref<224x262xf32, #tpu.memory_space<vmem>>, vector<32x243xf32>
    tpu.vector_store %arg8[%c64_10, %c19], %12 {strides = array<i32>} : memref<224x262xf32, #tpu.memory_space<vmem>>, vector<32x243xf32>,
    %cst_11 = arith.constant 0.000000e+00 : f32
    %14 = vector.broadcast %cst_11 : f32 to vector<32x3xf32>
    %c96 = arith.constant 96 : index
    %c0_12 = arith.constant 0 : index
    %15 = vector.load %arg8[%c96, %c0_12] : memref<224x262xf32, #tpu.memory_space<vmem>>, vector<32x3xf32>
    tpu.vector_store %arg8[%c96, %c0_12], %14 {strides = array<i32>} : memref<224x262xf32, #tpu.memory_space<vmem>>, vector<32x3xf32>,
    %cst_13 = arith.constant 0.000000e+00 : f32
    %16 = vector.broadcast %cst_13 : f32 to vector<32x3xf32>
    %c96_14 = arith.constant 96 : index
    %c259 = arith.constant 259 : index
    %17 = vector.load %arg8[%c96_14, %c259] : memref<224x262xf32, #tpu.memory_space<vmem>>, vector<32x3xf32>
    tpu.vector_store %arg8[%c96_14, %c259], %16 {strides = array<i32>} : memref<224x262xf32, #tpu.memory_space<vmem>>, vector<32x3xf32>,
    %c96_15 = arith.constant 96 : index
    %c3 = arith.constant 3 : index
    %18 = vector.load %arg8[%c96_15, %c3] : memref<224x262xf32, #tpu.memory_space<vmem>>, vector<32x256xf32>
    tpu.vector_store %arg8[%c96_15, %c3], %1 {strides = array<i32>} : memref<224x262xf32, #tpu.memory_space<vmem>>, vector<32x256xf32>,
    %cst_16 = arith.constant 0.000000e+00 : f32
    %19 = vector.broadcast %cst_16 : f32 to vector<32x19xf32>
    %c128 = arith.constant 128 : index
    %c243 = arith.constant 243 : index
    %20 = vector.load %arg8[%c128, %c243] : memref<224x262xf32, #tpu.memory_space<vmem>>, vector<32x19xf32>
    tpu.vector_store %arg8[%c128, %c243], %19 {strides = array<i32>} : memref<224x262xf32, #tpu.memory_space<vmem>>, vector<32x19xf32>,
    %21 = vector.extract_strided_slice %1 {offsets = [0, 13], sizes = [32, 243], strides = [1, 1]} : vector<32x256xf32> to vector<32x243xf32>
    %c128_17 = arith.constant 128 : index
    %c0_18 = arith.constant 0 : index
    %22 = vector.load %arg8[%c128_17, %c0_18] : memref<224x262xf32, #tpu.memory_space<vmem>>, vector<32x243xf32>
    tpu.vector_store %arg8[%c128_17, %c0_18], %21 {strides = array<i32>} : memref<224x262xf32, #tpu.memory_space<vmem>>, vector<32x243xf32>,
    %cst_19 = arith.constant 0.000000e+00 : f32
    %23 = vector.broadcast %cst_19 : f32 to vector<32x35xf32>
    %c160 = arith.constant 160 : index
    %c227 = arith.constant 227 : index
    %24 = vector.load %arg8[%c160, %c227] : memref<224x262xf32, #tpu.memory_space<vmem>>, vector<32x35xf32>
    tpu.vector_store %arg8[%c160, %c227], %23 {strides = array<i32>} : memref<224x262xf32, #tpu.memory_space<vmem>>, vector<32x35xf32>,
    %25 = vector.extract_strided_slice %1 {offsets = [0, 29], sizes = [32, 227], strides = [1, 1]} : vector<32x256xf32> to vector<32x227xf32>
    %c160_20 = arith.constant 160 : index
    %c0_21 = arith.constant 0 : index
    %26 = vector.load %arg8[%c160_20, %c0_21] : memref<224x262xf32, #tpu.memory_space<vmem>>, vector<32x227xf32>
    tpu.vector_store %arg8[%c160_20, %c0_21], %25 {strides = array<i32>} : memref<224x262xf32, #tpu.memory_space<vmem>>, vector<32x227xf32>,
    %cst_22 = arith.constant 0.000000e+00 : f32
    %27 = vector.broadcast %cst_22 : f32 to vector<32x51xf32>
    %c192 = arith.constant 192 : index
    %c211 = arith.constant 211 : index
    %28 = vector.load %arg8[%c192, %c211] : memref<224x262xf32, #tpu.memory_space<vmem>>, vector<32x51xf32>
    tpu.vector_store %arg8[%c192, %c211], %27 {strides = array<i32>} : memref<224x262xf32, #tpu.memory_space<vmem>>, vector<32x51xf32>,
    %29 = vector.extract_strided_slice %1 {offsets = [0, 45], sizes = [32, 211], strides = [1, 1]} : vector<32x256xf32> to vector<32x211xf32>
    %c192_23 = arith.constant 192 : index
    %c0_24 = arith.constant 0 : index
    %30 = vector.load %arg8[%c192_23, %c0_24] : memref<224x262xf32, #tpu.memory_space<vmem>>, vector<32x211xf32>
    tpu.vector_store %arg8[%c192_23, %c0_24], %29 {strides = array<i32>} : memref<224x262xf32, #tpu.memory_space<vmem>>, vector<32x211xf32>,
    %cst_25 = arith.constant 0.000000e+00 : f32
    %31 = vector.broadcast %cst_25 : f32 to vector<32x256xf32>
    %c0_26 = arith.constant 0 : index
    %c0_27 = arith.constant 0 : index
    %c0_28 = arith.constant 0 : index
    %32 = vector.load %arg3[%c0_26, %c0_27, %c0_28] : memref<7x32x224xf32, #tpu.memory_space<vmem>>, vector<1x32x224xf32>
    %33 = vector.shape_cast %32 : vector<1x32x224xf32> to vector<32x224xf32>
    %c0_29 = arith.constant 0 : index
    %c0_30 = arith.constant 0 : index
    %34 = vector.load %arg8[%c0_29, %c0_30] : memref<224x262xf32, #tpu.memory_space<vmem>>, vector<224x256xf32>
    %cst_31 = arith.constant dense<0.000000e+00> : vector<32x256xf32>
    %35 = tpu.matmul %33, %34, %cst_31 {dimension_numbers = #tpu.dot_dimension_numbers<[1], [0], [0], [1], [0, 0, 1, 1], [], []>} : vector<32x224xf32>, vector<224x256xf32>, vector<32x256xf32> -> vector<32x256xf32>
    %c0_32 = arith.constant 0 : index
    %c0_33 = arith.constant 0 : index
    %36 = vector.load %arg2[%c0_32, %c0_33] : memref<7x256xf32, #tpu.memory_space<vmem>>, vector<1x256xf32>
    %37 = vector.broadcast %36 : vector<1x256xf32> to vector<32x256xf32>
    %38 = arith.mulf %35, %37 : vector<32x256xf32>
    %39 = arith.addf %31, %38 : vector<32x256xf32>
    %c1 = arith.constant 1 : index
    %c0_34 = arith.constant 0 : index
    %c0_35 = arith.constant 0 : index
    %40 = vector.load %arg3[%c1, %c0_34, %c0_35] : memref<7x32x224xf32, #tpu.memory_space<vmem>>, vector<1x32x224xf32>
    %41 = vector.shape_cast %40 : vector<1x32x224xf32> to vector<32x224xf32>
    %c0_36 = arith.constant 0 : index
    %c1_37 = arith.constant 1 : index
    %42 = vector.load %arg8[%c0_36, %c1_37] : memref<224x262xf32, #tpu.memory_space<vmem>>, vector<224x256xf32>
    %cst_38 = arith.constant dense<0.000000e+00> : vector<32x256xf32>
    %43 = tpu.matmul %41, %42, %cst_38 {dimension_numbers = #tpu.dot_dimension_numbers<[1], [0], [0], [1], [0, 0, 1, 1], [], []>} : vector<32x224xf32>, vector<224x256xf32>, vector<32x256xf32> -> vector<32x256xf32>
    %c1_39 = arith.constant 1 : index
    %c0_40 = arith.constant 0 : index
    %44 = vector.load %arg2[%c1_39, %c0_40] : memref<7x256xf32, #tpu.memory_space<vmem>>, vector<1x256xf32>
    %45 = vector.broadcast %44 : vector<1x256xf32> to vector<32x256xf32>
    %46 = arith.mulf %43, %45 : vector<32x256xf32>
    %47 = arith.addf %39, %46 : vector<32x256xf32>
    %c2 = arith.constant 2 : index
    %c0_41 = arith.constant 0 : index
    %c0_42 = arith.constant 0 : index
    %48 = vector.load %arg3[%c2, %c0_41, %c0_42] : memref<7x32x224xf32, #tpu.memory_space<vmem>>, vector<1x32x224xf32>
    %49 = vector.shape_cast %48 : vector<1x32x224xf32> to vector<32x224xf32>
    %c0_43 = arith.constant 0 : index
    %c2_44 = arith.constant 2 : index
    %50 = vector.load %arg8[%c0_43, %c2_44] : memref<224x262xf32, #tpu.memory_space<vmem>>, vector<224x256xf32>
    %cst_45 = arith.constant dense<0.000000e+00> : vector<32x256xf32>
    %51 = tpu.matmul %49, %50, %cst_45 {dimension_numbers = #tpu.dot_dimension_numbers<[1], [0], [0], [1], [0, 0, 1, 1], [], []>} : vector<32x224xf32>, vector<224x256xf32>, vector<32x256xf32> -> vector<32x256xf32>
    %c2_46 = arith.constant 2 : index
    %c0_47 = arith.constant 0 : index
    %52 = vector.load %arg2[%c2_46, %c0_47] : memref<7x256xf32, #tpu.memory_space<vmem>>, vector<1x256xf32>
    %53 = vector.broadcast %52 : vector<1x256xf32> to vector<32x256xf32>
    %54 = arith.mulf %51, %53 : vector<32x256xf32>
    %55 = arith.addf %47, %54 : vector<32x256xf32>
    %c3_48 = arith.constant 3 : index
    %c0_49 = arith.constant 0 : index
    %c0_50 = arith.constant 0 : index
    %56 = vector.load %arg3[%c3_48, %c0_49, %c0_50] : memref<7x32x224xf32, #tpu.memory_space<vmem>>, vector<1x32x224xf32>
    %57 = vector.shape_cast %56 : vector<1x32x224xf32> to vector<32x224xf32>
    %c0_51 = arith.constant 0 : index
    %c3_52 = arith.constant 3 : index
    %58 = vector.load %arg8[%c0_51, %c3_52] : memref<224x262xf32, #tpu.memory_space<vmem>>, vector<224x256xf32>
    %cst_53 = arith.constant dense<0.000000e+00> : vector<32x256xf32>
    %59 = tpu.matmul %57, %58, %cst_53 {dimension_numbers = #tpu.dot_dimension_numbers<[1], [0], [0], [1], [0, 0, 1, 1], [], []>} : vector<32x224xf32>, vector<224x256xf32>, vector<32x256xf32> -> vector<32x256xf32>
    %c3_54 = arith.constant 3 : index
    %c0_55 = arith.constant 0 : index
    %60 = vector.load %arg2[%c3_54, %c0_55] : memref<7x256xf32, #tpu.memory_space<vmem>>, vector<1x256xf32>
    %61 = vector.broadcast %60 : vector<1x256xf32> to vector<32x256xf32>
    %62 = arith.mulf %59, %61 : vector<32x256xf32>
    %63 = arith.addf %55, %62 : vector<32x256xf32>
    %c4 = arith.constant 4 : index
    %c0_56 = arith.constant 0 : index
    %c0_57 = arith.constant 0 : index
    %64 = vector.load %arg3[%c4, %c0_56, %c0_57] : memref<7x32x224xf32, #tpu.memory_space<vmem>>, vector<1x32x224xf32>
    %65 = vector.shape_cast %64 : vector<1x32x224xf32> to vector<32x224xf32>
    %c0_58 = arith.constant 0 : index
    %c4_59 = arith.constant 4 : index
    %66 = vector.load %arg8[%c0_58, %c4_59] : memref<224x262xf32, #tpu.memory_space<vmem>>, vector<224x256xf32>
    %cst_60 = arith.constant dense<0.000000e+00> : vector<32x256xf32>
    %67 = tpu.matmul %65, %66, %cst_60 {dimension_numbers = #tpu.dot_dimension_numbers<[1], [0], [0], [1], [0, 0, 1, 1], [], []>} : vector<32x224xf32>, vector<224x256xf32>, vector<32x256xf32> -> vector<32x256xf32>
    %c4_61 = arith.constant 4 : index
    %c0_62 = arith.constant 0 : index
    %68 = vector.load %arg2[%c4_61, %c0_62] : memref<7x256xf32, #tpu.memory_space<vmem>>, vector<1x256xf32>
    %69 = vector.broadcast %68 : vector<1x256xf32> to vector<32x256xf32>
    %70 = arith.mulf %67, %69 : vector<32x256xf32>
    %71 = arith.addf %63, %70 : vector<32x256xf32>
    %c5 = arith.constant 5 : index
    %c0_63 = arith.constant 0 : index
    %c0_64 = arith.constant 0 : index
    %72 = vector.load %arg3[%c5, %c0_63, %c0_64] : memref<7x32x224xf32, #tpu.memory_space<vmem>>, vector<1x32x224xf32>
    %73 = vector.shape_cast %72 : vector<1x32x224xf32> to vector<32x224xf32>
    %c0_65 = arith.constant 0 : index
    %c5_66 = arith.constant 5 : index
    %74 = vector.load %arg8[%c0_65, %c5_66] : memref<224x262xf32, #tpu.memory_space<vmem>>, vector<224x256xf32>
    %cst_67 = arith.constant dense<0.000000e+00> : vector<32x256xf32>
    %75 = tpu.matmul %73, %74, %cst_67 {dimension_numbers = #tpu.dot_dimension_numbers<[1], [0], [0], [1], [0, 0, 1, 1], [], []>} : vector<32x224xf32>, vector<224x256xf32>, vector<32x256xf32> -> vector<32x256xf32>
    %c5_68 = arith.constant 5 : index
    %c0_69 = arith.constant 0 : index
    %76 = vector.load %arg2[%c5_68, %c0_69] : memref<7x256xf32, #tpu.memory_space<vmem>>, vector<1x256xf32>
    %77 = vector.broadcast %76 : vector<1x256xf32> to vector<32x256xf32>
    %78 = arith.mulf %75, %77 : vector<32x256xf32>
    %79 = arith.addf %71, %78 : vector<32x256xf32>
    %c6 = arith.constant 6 : index
    %c0_70 = arith.constant 0 : index
    %c0_71 = arith.constant 0 : index
    %80 = vector.load %arg3[%c6, %c0_70, %c0_71] : memref<7x32x224xf32, #tpu.memory_space<vmem>>, vector<1x32x224xf32>
    %81 = vector.shape_cast %80 : vector<1x32x224xf32> to vector<32x224xf32>
    %c0_72 = arith.constant 0 : index
    %c6_73 = arith.constant 6 : index
    %82 = vector.load %arg8[%c0_72, %c6_73] : memref<224x262xf32, #tpu.memory_space<vmem>>, vector<224x256xf32>
    %cst_74 = arith.constant dense<0.000000e+00> : vector<32x256xf32>
    %83 = tpu.matmul %81, %82, %cst_74 {dimension_numbers = #tpu.dot_dimension_numbers<[1], [0], [0], [1], [0, 0, 1, 1], [], []>} : vector<32x224xf32>, vector<224x256xf32>, vector<32x256xf32> -> vector<32x256xf32>
    %c6_75 = arith.constant 6 : index
    %c0_76 = arith.constant 0 : index
    %84 = vector.load %arg2[%c6_75, %c0_76] : memref<7x256xf32, #tpu.memory_space<vmem>>, vector<1x256xf32>
    %85 = vector.broadcast %84 : vector<1x256xf32> to vector<32x256xf32>
    %86 = arith.mulf %83, %85 : vector<32x256xf32>
    %87 = arith.addf %79, %86 : vector<32x256xf32>
    %c0_77 = arith.constant 0 : index
    %c0_78 = arith.constant 0 : index
    %88 = vector.load %arg4[%c0_77, %c0_78] : memref<32x1xf32, #tpu.memory_space<vmem>>, vector<32x1xf32>
    %89 = vector.broadcast %88 : vector<32x1xf32> to vector<32x256xf32>
    %90 = arith.addf %87, %89 : vector<32x256xf32>
    %91 = arith.negf %90 : vector<32x256xf32>
    %92 = math.exp %91 : vector<32x256xf32>
    %cst_79 = arith.constant 1.000000e+00 : f32
    %93 = vector.broadcast %cst_79 : f32 to vector<32x256xf32>
    %94 = arith.addf %93, %92 : vector<32x256xf32>
    %95 = arith.divf %93, %94 : vector<32x256xf32>
    %96 = arith.mulf %90, %95 : vector<32x256xf32>
    %c0_80 = arith.constant 0 : index
    %c0_81 = arith.constant 0 : index
    %97 = vector.load %arg5[%c0_80, %c0_81] : memref<32x32xf32, #tpu.memory_space<vmem>>, vector<32x32xf32>
    %cst_82 = arith.constant dense<0.000000e+00> : vector<32x256xf32>
    %98 = tpu.matmul %97, %96, %cst_82 {dimension_numbers = #tpu.dot_dimension_numbers<[1], [0], [0], [1], [0, 0, 1, 1], [], []>} : vector<32x32xf32>, vector<32x256xf32>, vector<32x256xf32> -> vector<32x256xf32>
    %c0_83 = arith.constant 0 : index
    %c0_84 = arith.constant 0 : index
    %99 = vector.load %arg6[%c0_83, %c0_84] : memref<32x1xf32, #tpu.memory_space<vmem>>, vector<32x1xf32>
    %100 = vector.broadcast %99 : vector<32x1xf32> to vector<32x256xf32>
    %101 = arith.addf %98, %100 : vector<32x256xf32>
    %102 = arith.negf %101 : vector<32x256xf32>
    %103 = math.exp %102 : vector<32x256xf32>
    %cst_85 = arith.constant 1.000000e+00 : f32
    %104 = vector.broadcast %cst_85 : f32 to vector<32x256xf32>
    %105 = arith.addf %104, %103 : vector<32x256xf32>
    %106 = arith.divf %104, %105 : vector<32x256xf32>
    %107 = arith.mulf %101, %106 : vector<32x256xf32>
    %c0_86 = arith.constant 0 : index
    %c0_87 = arith.constant 0 : index
    %c0_88 = arith.constant 0 : index
    %108 = vector.load %arg7[%c0_86, %c0_87, %c0_88] : memref<1x32x256xf32, #tpu.memory_space<vmem>>, vector<1x32x256xf32>
    %109 = vector.shape_cast %108 : vector<1x32x256xf32> to vector<32x256xf32>
    %110 = vector.shape_cast %107 : vector<32x256xf32> to vector<1x32x256xf32>
    tpu.vector_store %arg7[%c0_86, %c0_87, %c0_88], %110 {strides = array<i32>} : memref<1x32x256xf32, #tpu.memory_space<vmem>>, vector<1x32x256xf32>,
    return
  }
  func.func @transform_0(%arg0: i32) -> (i32, i32, i32) {
    %c0_i32 = arith.constant 0 : i32
    %c0_i32_0 = arith.constant 0 : i32
    %c0_i32_1 = arith.constant 0 : i32
    return %arg0, %c0_i32, %c0_i32_0 : i32, i32, i32
  }
  func.func @transform_1(%arg0: i32) -> (i32, i32) {
    %c0_i32 = arith.constant 0 : i32
    %c0_i32_0 = arith.constant 0 : i32
    %c0_i32_1 = arith.constant 0 : i32
    return %c0_i32, %c0_i32_0 : i32, i32
  }
  func.func @transform_2(%arg0: i32) -> (i32, i32, i32) {
    %c0_i32 = arith.constant 0 : i32
    %c0_i32_0 = arith.constant 0 : i32
    %c0_i32_1 = arith.constant 0 : i32
    %c0_i32_2 = arith.constant 0 : i32
    return %c0_i32, %c0_i32_0, %c0_i32_1 : i32, i32, i32
  }
  func.func @transform_3(%arg0: i32) -> (i32, i32) {
    %c0_i32 = arith.constant 0 : i32
    %c0_i32_0 = arith.constant 0 : i32
    %c0_i32_1 = arith.constant 0 : i32
    return %c0_i32, %c0_i32_0 : i32, i32
  }
  func.func @transform_4(%arg0: i32) -> (i32, i32) {
    %c0_i32 = arith.constant 0 : i32
    %c0_i32_0 = arith.constant 0 : i32
    %c0_i32_1 = arith.constant 0 : i32
    return %c0_i32, %c0_i32_0 : i32, i32
  }
  func.func @transform_5(%arg0: i32) -> (i32, i32) {
    %c0_i32 = arith.constant 0 : i32
    %c0_i32_0 = arith.constant 0 : i32
    %c0_i32_1 = arith.constant 0 : i32
    return %c0_i32, %c0_i32_0 : i32, i32
  }
  func.func @transform_6(%arg0: i32) -> (i32, i32, i32) {
    %c0_i32 = arith.constant 0 : i32
    %c0_i32_0 = arith.constant 0 : i32
    %c0_i32_1 = arith.constant 0 : i32
    return %arg0, %c0_i32, %c0_i32_0 : i32, i32, i32
  }
}

</mosaic_0001>

<bundles_post_ra>
// kernel: tile.62
= control target key start
LH: loop header
LB: loop body
LE: loop exit
PB: predicated region body
PF: predicated region fallthrough
CT: control target
= control target key end

     0   :  { %s28_s0 = inlined_call_operand.vmem [shape: f32[16], index: 0, kind: input, shape index: {}]   ;;  %s29_s1 = inlined_call_operand.vmem [shape: f32[16,16], index: 1, kind: output, shape index: {}]  }
   0x1   :  { %v4_v0 = vld [vmem:[%s28_s0] ss:$0 sm:$0xff] }
   0x2   :  { %5 = vst [vmem:[%s29_s1] sm:$0xff] %v4_v0  ;;  %8 = vst [vmem:[%s29_s1 + $0x8] sm:$0xff] %v4_v0 }

// kernel: tile.69
= control target key start
LH: loop header
LB: loop body
LE: loop exit
PB: predicated region body
PF: predicated region fallthrough
CT: control target
= control target key end

     0   :  { %s7_s6 = smov 3  ;;  %s21_s9 = smov 3  ;;  %vm4_vm0 = vcmask 130048   ;;  %vm11_vm1 = vcmask 1048448   ;;  %vm18_vm2 = vcmask 917248   ;;  %vm25_vm3 = vcmask 786048   ;;  %s128_s0 = inlined_call_operand.vmem [shape: f32[16,16], index: 0, kind: input, shape index: {}]   ;;  %s129_s1 = inlined_call_operand.vmem [shape: f32[1,256], index: 1, kind: output, shape index: {}]  }
   0x1   :  { %v66_v0 = vld [vmem:[%s128_s0 + $0x7] ss:$8 sm:%s7_s6]   ;;  %s81_s10 = smov 112   ;;  %v68_v1 = vld [vmem:[%s128_s0 + $0x5] ss:$8 sm:%s21_s9]   ;;  %s14_s13 = smov 3 }
   0x2   :  { %9 = vrot.lane.b32.xlu0 %v66_v0, %s81_s10  ;;  %s82_s14 = smov 80   ;;  %v67_v2 = vld [vmem:[%s128_s0 + $0x6] ss:$8 sm:%s14_s13]   ;;  %s28_s17 = smov 3  ;;  %vm32_vm4 = vcmask 654848   ;;  %vm39_vm5 = vcmask 523648  }
   0x3   :  { %23 = vrot.lane.b32.xlu1 %v68_v1, %s82_s14  ;;  %v69_v3 = vld [vmem:[%s128_s0 + $0x4] ss:$8 sm:%s28_s17]   ;;  %s35_s20 = smov 3  ;;  %s42_s21 = smov 3  ;;  %vm46_vm6 = vcmask 392448   ;;  %vm53_vm7 = vcmask 261248  }
   0x4   :  { %s83_s22 = smov 96   ;;  %s84_s23 = smov 64   ;;  %v70_v4 = vld [vmem:[%s128_s0 + $0x3] ss:$8 sm:%s35_s20]   ;;  %v71_v5 = vld [vmem:[%s128_s0 + $0x2] ss:$8 sm:%s42_s21]  }
   0x5   :  { %s2_s26 = smov 3  ;;  %s49_s29 = smov 3 }
   0x6   :  { %16 = vrot.lane.b32.xlu0 %v67_v2, %s83_s22  ;;  %v3_v6 = vld [vmem:[%s128_s0] ss:$8 sm:%s2_s26]   ;;  %s85_s3 = smov 48   ;;  %s86_s4 = smov 32  }
   0x7   :  { %30 = vrot.lane.b32.xlu1 %v69_v3, %s84_s23  ;;  %5 = vst.msk [vmem:[#allocation0] ss:$8 sm:$0x3] %vm4_vm0, %v3_v6   ;;  %v72_v7 = vld [vmem:[%s128_s0 + $0x1] ss:$8 sm:%s49_s29]   ;;  %s87_s0 = smov 16  }
   0xa   :  { %37 = vrot.lane.b32.xlu0 %v70_v4, %s85_s3 }
   0xb   :  { %44 = vrot.lane.b32.xlu1 %v71_v5, %s86_s4 }
   0xe   :  { %51 = vrot.lane.b32.xlu0 %v72_v7, %s87_s0 }
  0x74   :  { %v10_v8 = vpop.permute.xlu0 %9  }
  0x75   :  { %12 = vst.msk [vmem:[#allocation0] ss:$8 sm:$0x3] %vm11_vm1, %v10_v8   ;;  %v24_v9 = vpop.permute.xlu1 %23  }
  0x78   :  { %v17_v10 = vpop.permute.xlu0 %16  }
  0x79   :  { %19 = vst.msk [vmem:[#allocation0] ss:$8 sm:$0x3] %vm18_vm2, %v17_v10   ;;  %v31_v11 = vpop.permute.xlu1 %30  }
  0x7a   :  { %26 = vst.msk [vmem:[#allocation0] ss:$8 sm:$0x3] %vm25_vm3, %v24_v9  }
  0x7b   :  { %33 = vst.msk [vmem:[#allocation0] ss:$8 sm:$0x3] %vm32_vm4, %v31_v11  }
  0x7c   :  { %v38_v12 = vpop.permute.xlu0 %37  }
  0x7d   :  { %40 = vst.msk [vmem:[#allocation0] ss:$8 sm:$0x3] %vm39_vm5, %v38_v12   ;;  %v45_v13 = vpop.permute.xlu1 %44  }
  0x7e   :  { %47 = vst.msk [vmem:[#allocation0] ss:$8 sm:$0x3] %vm46_vm6, %v45_v13  }
  0x80   :  { %v52_v14 = vpop.permute.xlu0 %51  }
  0x81   :  { %54 = vst.msk [vmem:[#allocation0] ss:$8 sm:$0x3] %vm53_vm7, %v52_v14  }
  0x88   :  { %v58_v15 = vld [vmem:[#allocation0] sm:$0x1]  ;;  %v62_v16 = vld [vmem:[#allocation0 + $0x8] sm:$0x1] }
  0x89   :  { %60 = vst [vmem:[%s129_s1] sm:$0x1] %v58_v15  ;;  %73 = vst [vmem:[%s129_s1 + $0x1] sm:$0x1] %v62_v16 }

// kernel: lmg_conv_pallas.1
= control target key start
LH: loop header
LB: loop body
LE: loop exit
PB: predicated region body
PF: predicated region fallthrough
CT: control target
= control target key end

     0   :  { %s5753_s21 = smov 0   ;;  %s7345_s0 = inlined_call_operand.vmem [shape: f32[2,32,256], index: 0, kind: input, shape index: {}]   ;;  %s7346_s1 = inlined_call_operand.vmem [shape: f32[7,256], index: 1, kind: input, shape index: {}]   ;;  %s7347_s2 = inlined_call_operand.vmem [shape: f32[7,32,224], index: 2, kind: input, shape index: {}]   ;;  %s7348_s3 = inlined_call_operand.vmem [shape: f32[32,1], index: 3, kind: input, shape index: {}]   ;;  %s7349_s4 = inlined_call_operand.vmem [shape: f32[32,32], index: 4, kind: input, shape index: {}]   ;;  %s7350_s5 = inlined_call_operand.vmem [shape: f32[32,1], index: 5, kind: input, shape index: {}]   ;;  %s7351_s6 = inlined_call_operand.vmem [shape: f32[2,32,256], index: 6, kind: output, shape index: {}]  }
   0x1 LB: > { %s3831_s22 = sadd.s32 4294967295, %s5701_s21   ;;  %p3835_p0 = scmp.ge.s32.totalorder %s5701_s21, 1  ;;  %s5701_s21 = sphi %s5753_s21, %s16_s21  }
   0x2   : > { %p212_p1 = scmp.lt.s32.totalorder %s5701_s21, 3 }
   0x4   : > { %p213_p2 = pnand %p3835_p0, %p212_p1 }
   0x6   : > { %216 = sbr.rel (%p213_p2) target bundleno = 1319 (0x527), region = 44 }
   0xd   : > { %p5761_p3 = scmp.lt.s32.totalorder %s3831_s22, 1  ;;  %vm260_vm0 = vcmask 416768   ;;  %vm308_vm1 = vcmask 48128   ;;  %v7352_v0 = vmov 0.0   ;;  %s5704_s28 = smov 51   ;;  %vm319_vm2 = vcmask 285696  }
   0xe   : > { %262 = vst.msk [vmem:[#allocation2 + $0x18] sm:$0xff] %vm260_vm0, %v7352_v0  ;;  %261 = vst.msk [vmem:[#allocation2] sm:$0xff] %vm260_vm0, %v7352_v0  ;;  %s5705_s29 = smov 35   ;;  %vm369_vm3 = vcmask 154624   ;;  %s5706_s30 = smov 19   ;;  %vm419_vm4 = vcmask 23552  }
   0xf   : > { %263 = vst.msk [vmem:[#allocation2 + $0x30] sm:$0xff] %vm260_vm0, %v7352_v0  ;;  %264 = vst.msk [vmem:[#allocation2 + $0x48] sm:$0xff] %vm260_vm0, %v7352_v0  ;;  %s7421_s22 = smov (!%p5761_p3, %s3831_s22), 1  ;;  %vm424_vm5 = vcmask 48152   ;;  %s5707_s7 = smov 3   ;;  %vm474_vm6 = vcmask 1048472  }
  0x10   : > { %476 = vst.msk [vmem:[#allocation2 + $0x190] sm:$0xff] %vm308_vm1, %v7352_v0  ;;  %478 = vst.msk [vmem:[#allocation2 + $0x1a8] sm:$0xff] %vm308_vm1, %v7352_v0  ;;  %s3944_s24 = sshll.u32 %s7421_s22, 6  ;;  %s5708_s8 = smov 115   ;;  %vm520_vm7 = vcmask 1048344   ;;  %vm566_vm8 = vcmask 1048216  }
  0x11   : > { %480 = vst.msk [vmem:[#allocation2 + $0x1c0] sm:$0xff] %vm308_vm1, %v7352_v0  ;;  %482 = vst.msk [vmem:[#allocation2 + $0x1d8] sm:$0xff] %vm308_vm1, %v7352_v0  ;;  %s246_s27 = scalar_lea.vmem %s7345_s0, %s3944_s24  ;;  %s5709_s9 = smov 99   ;;  %vm305_vm9 = vcmask 1047960   ;;  %vm356_vm10 = vcmask 1047832   ;;  %vm406_vm11 = vcmask 1047704  }
  0x12   : > { %522 = vst.msk [vmem:[#allocation2 + $0x1f0] sm:$0xff] %vm308_vm1, %v7352_v0  ;;  %524 = vst.msk [vmem:[#allocation2 + $0x208] sm:$0xff] %vm308_vm1, %v7352_v0  ;;  %v5807_v1 = vld [vmem:[%s246_s27 + $0x10] sm:$0xff]  ;;  %v5809_v2 = vld [vmem:[%s246_s27] sm:$0xff]  ;;  %s5710_s10 = smov 83   ;;  %s5711_s11 = smov 127  }
  0x13   : > { %526 = vst.msk [vmem:[#allocation2 + $0x220] sm:$0xff] %vm308_vm1, %v7352_v0  ;;  %528 = vst.msk [vmem:[#allocation2 + $0x238] sm:$0xff] %vm308_vm1, %v7352_v0  ;;  %277 = vrot.lane.b32.xlu1 %v5807_v1, %s5704_s28  ;;  %273 = vrot.lane.b32.xlu0 %v5809_v2, %s5704_s28  ;;  %v5813_v3 = vld [vmem:[%s246_s27 + $0x18] sm:$0xff]  ;;  %v5815_v4 = vld [vmem:[%s246_s27 + $0x8] sm:$0xff]  ;;  %vm461_vm12 = vcmask 1047576   ;;  %vm499_vm13 = vcmask 941056   ;;  %s251_s26 = scalar_lea.vmem %s7351_s6, %s3944_s24 }
  0x14   : > { %568 = vst.msk [vmem:[#allocation2 + $0x250] sm:$0xff] %vm308_vm1, %v7352_v0  ;;  %570 = vst.msk [vmem:[#allocation2 + $0x268] sm:$0xff] %vm308_vm1, %v7352_v0  ;;  %v5827_v5 = vld [vmem:[%s246_s27 + $0x28] sm:$0xff]  ;;  %v5829_v6 = vld [vmem:[%s246_s27 + $0x20] sm:$0xff]  ;;  %vm545_vm14 = vcmask 809984   ;;  %vm591_vm15 = vcmask 678912  }
  0x15   : > { %572 = vst.msk [vmem:[#allocation2 + $0x280] sm:$0xff] %vm308_vm1, %v7352_v0  ;;  %574 = vst.msk [vmem:[#allocation2 + $0x298] sm:$0xff] %vm308_vm1, %v7352_v0  ;;  %v5833_v7 = vld [vmem:[%s246_s27 + $0x38] sm:$0xff]  ;;  %v5835_v8 = vld [vmem:[%s246_s27 + $0x30] sm:$0xff]  ;;  %s5712_s14 = smov 126   ;;  %s5714_s13 = smov 124  }
  0x16   : > { %320 = vst.msk [vmem:[#allocation2 + $0x60] sm:$0xff] %vm319_vm2, %v7352_v0  ;;  %321 = vst.msk [vmem:[#allocation2 + $0x78] sm:$0xff] %vm319_vm2, %v7352_v0  ;;  %s5715_s27 = smov 123  }
  0x17   : > { %322 = vst.msk [vmem:[#allocation2 + $0x90] sm:$0xff] %vm319_vm2, %v7352_v0  ;;  %323 = vst.msk [vmem:[#allocation2 + $0xa8] sm:$0xff] %vm319_vm2, %v7352_v0  ;;  %279 = vrot.lane.b32.xlu1 %v5813_v3, %s5704_s28  ;;  %275 = vrot.lane.b32.xlu0 %v5815_v4, %s5704_s28 }
  0x18   : > { %370 = vst.msk [vmem:[#allocation2 + $0xc0] sm:$0xff] %vm369_vm3, %v7352_v0  ;;  %371 = vst.msk [vmem:[#allocation2 + $0xd8] sm:$0xff] %vm369_vm3, %v7352_v0 }
  0x19   : > { %372 = vst.msk [vmem:[#allocation2 + $0xf0] sm:$0xff] %vm369_vm3, %v7352_v0  ;;  %373 = vst.msk [vmem:[#allocation2 + $0x108] sm:$0xff] %vm369_vm3, %v7352_v0 }
  0x1a   : > { %425 = vst.msk [vmem:[#allocation2 + $0x130] sm:$0xff] %vm424_vm5, %v7352_v0  ;;  %426 = vst.msk [vmem:[#allocation2 + $0x148] sm:$0xff] %vm424_vm5, %v7352_v0 }
  0x1b   : > { %283 = vrot.lane.b32.xlu1 %v5827_v5, %s5704_s28  ;;  %281 = vrot.lane.b32.xlu0 %v5829_v6, %s5704_s28  ;;  %420 = vst.msk [vmem:[#allocation2 + $0x120] sm:$0xff] %vm419_vm4, %v7352_v0  ;;  %421 = vst.msk [vmem:[#allocation2 + $0x138] sm:$0xff] %vm419_vm4, %v7352_v0 }
  0x1c   : > { %422 = vst.msk [vmem:[#allocation2 + $0x150] sm:$0xff] %vm419_vm4, %v7352_v0  ;;  %423 = vst.msk [vmem:[#allocation2 + $0x168] sm:$0xff] %vm419_vm4, %v7352_v0 }
  0x1d   : > { %427 = vst.msk [vmem:[#allocation2 + $0x160] sm:$0xff] %vm424_vm5, %v7352_v0  ;;  %428 = vst.msk [vmem:[#allocation2 + $0x178] sm:$0xff] %vm424_vm5, %v7352_v0  ;;  %vm2831_vm5 = vcmask 1006592  }
  0x1e   : > { %475 = vst.msk [vmem:[#allocation2 + $0x188] sm:$0xff] %vm474_vm6, %v7352_v0  ;;  %477 = vst.msk [vmem:[#allocation2 + $0x1a0] sm:$0xff] %vm474_vm6, %v7352_v0 }
  0x1f   : > { %287 = vrot.lane.b32.xlu1 %v5833_v7, %s5704_s28  ;;  %285 = vrot.lane.b32.xlu0 %v5835_v8, %s5704_s28  ;;  %479 = vst.msk [vmem:[#allocation2 + $0x1b8] sm:$0xff] %vm474_vm6, %v7352_v0  ;;  %481 = vst.msk [vmem:[#allocation2 + $0x1d0] sm:$0xff] %vm474_vm6, %v7352_v0  ;;  %vm3251_vm6 = vcmask 998400  }
  0x20   : > { %521 = vst.msk [vmem:[#allocation2 + $0x1e8] sm:$0xff] %vm520_vm7, %v7352_v0  ;;  %523 = vst.msk [vmem:[#allocation2 + $0x200] sm:$0xff] %vm520_vm7, %v7352_v0 }
  0x21   : > { %525 = vst.msk [vmem:[#allocation2 + $0x218] sm:$0xff] %vm520_vm7, %v7352_v0  ;;  %527 = vst.msk [vmem:[#allocation2 + $0x230] sm:$0xff] %vm520_vm7, %v7352_v0  ;;  %vm3610_vm7 = vcmask 261120  }
  0x22   : > { %567 = vst.msk [vmem:[#allocation2 + $0x248] sm:$0xff] %vm566_vm8, %v7352_v0  ;;  %569 = vst.msk [vmem:[#allocation2 + $0x260] sm:$0xff] %vm566_vm8, %v7352_v0 }
  0x23   : > { %326 = vrot.lane.b32.xlu1 %v5815_v4, %s5705_s29  ;;  %324 = vrot.lane.b32.xlu0 %v5809_v2, %s5705_s29  ;;  %571 = vst.msk [vmem:[#allocation2 + $0x278] sm:$0xff] %vm566_vm8, %v7352_v0  ;;  %573 = vst.msk [vmem:[#allocation2 + $0x290] sm:$0xff] %vm566_vm8, %v7352_v0 }
  0x27   : > { %330 = vrot.lane.b32.xlu1 %v5813_v3, %s5705_s29  ;;  %328 = vrot.lane.b32.xlu0 %v5807_v1, %s5705_s29 }
  0x2b   : > { %334 = vrot.lane.b32.xlu1 %v5827_v5, %s5705_s29  ;;  %332 = vrot.lane.b32.xlu0 %v5829_v6, %s5705_s29 }
  0x2f   : > { %338 = vrot.lane.b32.xlu1 %v5833_v7, %s5705_s29  ;;  %336 = vrot.lane.b32.xlu0 %v5835_v8, %s5705_s29 }
  0x33   : > { %376 = vrot.lane.b32.xlu1 %v5815_v4, %s5706_s30  ;;  %374 = vrot.lane.b32.xlu0 %v5809_v2, %s5706_s30 }
  0x37   : > { %380 = vrot.lane.b32.xlu1 %v5813_v3, %s5706_s30  ;;  %378 = vrot.lane.b32.xlu0 %v5807_v1, %s5706_s30 }
  0x3b   : > { %384 = vrot.lane.b32.xlu1 %v5827_v5, %s5706_s30  ;;  %382 = vrot.lane.b32.xlu0 %v5829_v6, %s5706_s30 }
  0x3f   : > { %388 = vrot.lane.b32.xlu1 %v5833_v7, %s5706_s30  ;;  %386 = vrot.lane.b32.xlu0 %v5835_v8, %s5706_s30 }
  0x43   : > { %431 = vrot.lane.b32.xlu1 %v5815_v4, %s5707_s7  ;;  %429 = vrot.lane.b32.xlu0 %v5809_v2, %s5707_s7 }
  0x47   : > { %435 = vrot.lane.b32.xlu1 %v5813_v3, %s5707_s7  ;;  %433 = vrot.lane.b32.xlu0 %v5807_v1, %s5707_s7 }
  0x4b   : > { %439 = vrot.lane.b32.xlu1 %v5827_v5, %s5707_s7  ;;  %437 = vrot.lane.b32.xlu0 %v5829_v6, %s5707_s7 }
  0x4f   : > { %443 = vrot.lane.b32.xlu1 %v5833_v7, %s5707_s7  ;;  %441 = vrot.lane.b32.xlu0 %v5835_v8, %s5707_s7 }
  0x53   : > { %485 = vrot.lane.b32.xlu1 %v5815_v4, %s5708_s8  ;;  %483 = vrot.lane.b32.xlu0 %v5809_v2, %s5708_s8 }
  0x57   : > { %489 = vrot.lane.b32.xlu1 %v5813_v3, %s5708_s8  ;;  %487 = vrot.lane.b32.xlu0 %v5807_v1, %s5708_s8 }
  0x5b   : > { %493 = vrot.lane.b32.xlu1 %v5827_v5, %s5708_s8  ;;  %491 = vrot.lane.b32.xlu0 %v5829_v6, %s5708_s8 }
  0x5f   : > { %497 = vrot.lane.b32.xlu1 %v5833_v7, %s5708_s8  ;;  %495 = vrot.lane.b32.xlu0 %v5835_v8, %s5708_s8 }
  0x63   : > { %531 = vrot.lane.b32.xlu1 %v5815_v4, %s5709_s9  ;;  %529 = vrot.lane.b32.xlu0 %v5809_v2, %s5709_s9 }
  0x67   : > { %535 = vrot.lane.b32.xlu1 %v5813_v3, %s5709_s9  ;;  %533 = vrot.lane.b32.xlu0 %v5807_v1, %s5709_s9 }
  0x6b   : > { %539 = vrot.lane.b32.xlu1 %v5827_v5, %s5709_s9  ;;  %537 = vrot.lane.b32.xlu0 %v5829_v6, %s5709_s9 }
  0x6f   : > { %543 = vrot.lane.b32.xlu1 %v5833_v7, %s5709_s9  ;;  %541 = vrot.lane.b32.xlu0 %v5835_v8, %s5709_s9 }
  0x73   : > { %577 = vrot.lane.b32.xlu1 %v5815_v4, %s5710_s10  ;;  %575 = vrot.lane.b32.xlu0 %v5809_v2, %s5710_s10 }
  0x77   : > { %581 = vrot.lane.b32.xlu1 %v5813_v3, %s5710_s10  ;;  %579 = vrot.lane.b32.xlu0 %v5807_v1, %s5710_s10 }
  0x7b   : > { %585 = vrot.lane.b32.xlu1 %v5827_v5, %s5710_s10  ;;  %583 = vrot.lane.b32.xlu0 %v5829_v6, %s5710_s10 }
  0x7f   : > { %589 = vrot.lane.b32.xlu1 %v5833_v7, %s5710_s10  ;;  %587 = vrot.lane.b32.xlu0 %v5835_v8, %s5710_s10  ;;  %s5713_s10 = smov 125  }
  0x85   : > { %v278_v9 = vpop.permute.xlu1 %277  ;;  %v274_v10 = vpop.permute.xlu0 %273 }
  0x86   : > { %310 = vst.msk [vmem:[#allocation2 + $0x18] sm:$0xff] %vm305_vm9, %v278_v9  ;;  %306 = vst.msk [vmem:[#allocation2] sm:$0xff] %vm305_vm9, %v274_v10 }
  0x89   : > { %v280_v11 = vpop.permute.xlu1 %279  ;;  %v276_v12 = vpop.permute.xlu0 %275 }
  0x8a   : > { %v290_v13 = vsel %vm260_vm0, %v278_v9, %v280_v11  ;;  %312 = vst.msk [vmem:[#allocation2 + $0x28] sm:$0xff] %vm308_vm1, %v280_v11  ;;  %v289_v14 = vsel %vm260_vm0, %v274_v10, %v276_v12  ;;  %309 = vst.msk [vmem:[#allocation2 + $0x10] sm:$0xff] %vm308_vm1, %v276_v12 }
  0x8b   : > { %v3946_v15 = vpack.c.bf16 %v290_v13, %v289_v14 }
  0x8d   : > { %v284_v16 = vpop.permute.xlu1 %283  ;;  %v282_v17 = vpop.permute.xlu0 %281  ;;  %v818_v18 = vld [vmem:[#allocation2 + $0x18] sm:$0xff]  ;;  %3947 = vmatprep.subr.bf16.mxu0 %v3946_v15  ;;  %v620_v19 = vld [vmem:[#allocation2] sm:$0xff] }
  0x8e   : > { %315 = vst.msk [vmem:[#allocation2 + $0x40] sm:$0xff] %vm308_vm1, %v284_v16  ;;  %v5927_v20 = vsel %vm260_vm0, %v282_v17, %v284_v16  ;;  %v3948_v21 = vpack.c.bf16 %v818_v18, %v620_v19  ;;  %v5930_v22 = vpack.i.bf16 %v289_v14, %v620_v19  ;;  %v5932_v23 = vpack.i.bf16 %v818_v18, %v620_v19 }
  0x8f   : > { %313 = vst.msk [vmem:[#allocation2 + $0x30] sm:$0xff] %vm305_vm9, %v282_v17 }
  0x90   : > { %3949 = vmatpush1.bf16.msra.mxu0 %v3948_v21 }
  0x91   : > { %v288_v24 = vpop.permute.xlu1 %287  ;;  %v286_v25 = vpop.permute.xlu0 %285  ;;  %v817_v26 = vld [vmem:[#allocation2 + $0x10] sm:$0xff]  ;;  %v820_v27 = vld [vmem:[#allocation2 + $0x28] sm:$0xff] }
  0x92   : > { %318 = vst.msk [vmem:[#allocation2 + $0x58] sm:$0xff] %vm308_vm1, %v288_v24  ;;  %v292_v28 = vsel %vm260_vm0, %v286_v25, %v288_v24  ;;  %v5937_v29 = vpack.i.bf16 %v818_v18, %v817_v26  ;;  %v5940_v31 = vpack.i.bf16 %v817_v26, %v289_v14  ;;  %v5942_v32 = vpack.i.bf16 %v820_v27, %v290_v13 }
  0x93   : > { %316 = vst.msk [vmem:[#allocation2 + $0x48] sm:$0xff] %vm305_vm9, %v286_v25  ;;  %v3950_v30 = vpack.c.bf16 %v292_v28, %v5927_v20  ;;  %vm676_vm0 = vcmask 785408  }
  0x94   : > { %4370 = vrot.lane.b32.xlu1 %v5937_v29, %s5711_s11 }
  0x95   : > { %v327_v33 = vpop.permute.xlu1 %326  ;;  %v325_v34 = vpop.permute.xlu0 %324  ;;  %v823_v35 = vld [vmem:[#allocation2 + $0x40] sm:$0xff]  ;;  %3951 = vmatprep.subr.bf16.mxu0 %v3950_v30 }
  0x96   : > { %359 = vst.msk [vmem:[#allocation2 + $0x70] sm:$0xff] %vm308_vm1, %v327_v33  ;;  %v340_v36 = vsel %vm319_vm2, %v325_v34, %v327_v33  ;;  %v5950_v37 = vpack.i.bf16 %v823_v35, %v5927_v20  ;;  %v624_v41 = vld [vmem:[#allocation2 + $0x30] sm:$0xff] }
  0x97   : > { %357 = vst.msk [vmem:[#allocation2 + $0x60] sm:$0xff] %vm356_vm10, %v325_v34  ;;  %v5984_v4 = vpack.i.bf16 %v5927_v20, %v624_v41 }
  0x99   : > { %v331_v38 = vpop.permute.xlu1 %330  ;;  %v329_v39 = vpop.permute.xlu0 %328  ;;  %v826_v42 = vld [vmem:[#allocation2 + $0x58] sm:$0xff] }
  0x9a   : > { %v824_v40 = vld [vmem:[#allocation2 + $0x48] sm:$0xff]  ;;  %362 = vst.msk [vmem:[#allocation2 + $0x88] sm:$0xff] %vm308_vm1, %v331_v38  ;;  %v341_v43 = vsel %vm319_vm2, %v329_v39, %v331_v38  ;;  %v5957_v47 = vpack.i.bf16 %v826_v42, %v292_v28 }
  0x9b   : > { %360 = vst.msk [vmem:[#allocation2 + $0x78] sm:$0xff] %vm356_vm10, %v329_v39  ;;  %v5955_v44 = vpack.i.bf16 %v824_v40, %v823_v35  ;;  %v3952_v45 = vpack.c.bf16 %v824_v40, %v624_v41  ;;  %v3954_v46 = vpack.c.bf16 %v341_v43, %v340_v36  ;;  %v5959_v48 = vpack.i.bf16 %v824_v40, %v624_v41 }
  0x9d   : > { %4375 = vrot.lane.b32.xlu0 %v5955_v44, %s5711_s11  ;;  %3953 = vmatpush1.bf16.msra.mxu0 %v3952_v45  ;;  %v335_v49 = vpop.permute.xlu1 %334  ;;  %v333_v50 = vpop.permute.xlu0 %332  ;;  %v829_v51 = vld [vmem:[#allocation2 + $0x70] sm:$0xff] }
  0x9e   : > { %3955 = vmatprep.subr.bf16.mxu0 %v3954_v46  ;;  %365 = vst.msk [vmem:[#allocation2 + $0xa0] sm:$0xff] %vm308_vm1, %v335_v49  ;;  %v342_v52 = vsel %vm319_vm2, %v333_v50, %v335_v49  ;;  %v5966_v53 = vpack.i.bf16 %v829_v51, %v340_v36  ;;  %v628_v57 = vld [vmem:[#allocation2 + $0x60] sm:$0xff] }
  0x9f   : > { %363 = vst.msk [vmem:[#allocation2 + $0x90] sm:$0xff] %vm356_vm10, %v333_v50  ;;  %v5989_v7 = vpack.i.bf16 %v340_v36, %v628_v57 }
  0xa1   : > { %4385 = vrot.lane.b32.xlu0 %v5930_v22, %s5711_s11  ;;  %v339_v54 = vpop.permute.xlu1 %338  ;;  %v337_v55 = vpop.permute.xlu0 %336  ;;  %v832_v58 = vld [vmem:[#allocation2 + $0x88] sm:$0xff] }
  0xa2   : > { %v830_v56 = vld [vmem:[#allocation2 + $0x78] sm:$0xff]  ;;  %368 = vst.msk [vmem:[#allocation2 + $0xb8] sm:$0xff] %vm308_vm1, %v339_v54  ;;  %v343_v59 = vsel %vm319_vm2, %v337_v55, %v339_v54  ;;  %v5975_v63 = vpack.i.bf16 %v832_v58, %v341_v43  ;;  %vm1571_vm2 = vcmask 1031168  }
  0xa3   : > { %366 = vst.msk [vmem:[#allocation2 + $0xa8] sm:$0xff] %vm356_vm10, %v337_v55  ;;  %v5973_v60 = vpack.i.bf16 %v830_v56, %v829_v51  ;;  %v3956_v61 = vpack.c.bf16 %v830_v56, %v628_v57  ;;  %v3958_v62 = vpack.c.bf16 %v343_v59, %v342_v52  ;;  %v5977_v1 = vpack.i.bf16 %v830_v56, %v628_v57 }
  0xa5   : > { %4390 = vrot.lane.b32.xlu0 %v5942_v32, %s5711_s11  ;;  %4380 = vrot.lane.b32.xlu1 %v5973_v60, %s5711_s11  ;;  %v377_v2 = vpop.permute.xlu1 %376  ;;  %v375_v3 = vpop.permute.xlu0 %374  ;;  %v835_v5 = vld [vmem:[#allocation2 + $0xa0] sm:$0xff] }
  0xa6   : > { %3957 = vmatpush1.bf16.msra.mxu0 %v3956_v61  ;;  %409 = vst.msk [vmem:[#allocation2 + $0xd0] sm:$0xff] %vm308_vm1, %v377_v2  ;;  %v390_v6 = vsel %vm369_vm3, %v375_v3, %v377_v2  ;;  %v5991_v8 = vpack.i.bf16 %v835_v5, %v342_v52  ;;  %v632_v11 = vld [vmem:[#allocation2 + $0x90] sm:$0xff] }
  0xa7   : > { %407 = vst.msk [vmem:[#allocation2 + $0xc0] sm:$0xff] %vm406_vm11, %v375_v3  ;;  %3959 = vmatprep.subr.bf16.mxu0 %v3958_v62  ;;  %v6008_v21 = vpack.i.bf16 %v342_v52, %v632_v11 }
  0xa9   : > { %4405 = vrot.lane.b32.xlu0 %v5989_v7, %s5711_s11  ;;  %4395 = vrot.lane.b32.xlu1 %v5984_v4, %s5711_s11  ;;  %v381_v9 = vpop.permute.xlu1 %380  ;;  %v379_v10 = vpop.permute.xlu0 %378  ;;  %v838_v13 = vld [vmem:[#allocation2 + $0xb8] sm:$0xff] }
  0xaa   : > { %v634_v12 = vld [vmem:[#allocation2 + $0xa8] sm:$0xff]  ;;  %412 = vst.msk [vmem:[#allocation2 + $0xe8] sm:$0xff] %vm308_vm1, %v381_v9  ;;  %v391_v14 = vsel %vm369_vm3, %v379_v10, %v381_v9  ;;  %v6000_v17 = vpack.i.bf16 %v838_v13, %v343_v59 }
  0xab   : > { %410 = vst.msk [vmem:[#allocation2 + $0xd8] sm:$0xff] %vm406_vm11, %v379_v10  ;;  %v3960_v15 = vpack.c.bf16 %v634_v12, %v632_v11  ;;  %v3962_v16 = vpack.c.bf16 %v391_v14, %v390_v6  ;;  %v6002_v18 = vpack.i.bf16 %v634_v12, %v632_v11  ;;  %v6013_v26 = vpack.i.bf16 %v634_v12, %v835_v5 }
  0xad   : > { %4400 = vrot.lane.b32.xlu1 %v5957_v47, %s5711_s11  ;;  %4410 = vrot.lane.b32.xlu0 %v5975_v63, %s5711_s11  ;;  %v385_v19 = vpop.permute.xlu1 %384  ;;  %v383_v20 = vpop.permute.xlu0 %382  ;;  %v841_v24 = vld [vmem:[#allocation2 + $0xd0] sm:$0xff] }
  0xae   : > { %3961 = vmatpush1.bf16.msra.mxu0 %v3960_v15  ;;  %415 = vst.msk [vmem:[#allocation2 + $0x100] sm:$0xff] %vm308_vm1, %v385_v19  ;;  %v392_v25 = vsel %vm369_vm3, %v383_v20, %v385_v19  ;;  %v6015_v27 = vpack.i.bf16 %v841_v24, %v390_v6  ;;  %v839_v28 = vld [vmem:[#allocation2 + $0xc0] sm:$0xff] }
  0xaf   : > { %413 = vst.msk [vmem:[#allocation2 + $0xf0] sm:$0xff] %vm406_vm11, %v383_v20  ;;  %3963 = vmatprep.subr.bf16.mxu0 %v3962_v16  ;;  %v6024_v38 = vpack.i.bf16 %v390_v6, %v839_v28 }
  0xb0   : > { %7377 = vst [vmem:[#allocation3_spill] sm:$0xff] %v6015_v27 }
  0xb1   : > { %4420 = vrot.lane.b32.xlu1 %v6008_v21, %s5711_s11  ;;  %4415 = vrot.lane.b32.xlu0 %v6013_v26, %s5711_s11  ;;  %v389_v30 = vpop.permute.xlu1 %388  ;;  %v387_v33 = vpop.permute.xlu0 %386  ;;  %v844_v35 = vld [vmem:[#allocation2 + $0xe8] sm:$0xff] }
  0xb2   : > { %v638_v34 = vld [vmem:[#allocation2 + $0xd8] sm:$0xff]  ;;  %418 = vst.msk [vmem:[#allocation2 + $0x118] sm:$0xff] %vm308_vm1, %v389_v30  ;;  %v393_v36 = vsel %vm369_vm3, %v387_v33, %v389_v30  ;;  %v6026_v41 = vpack.i.bf16 %v844_v35, %v391_v14  ;;  %vm1151_vm1 = vcmask 1039360   ;;  %vm1991_vm3 = vcmask 1022976  }
  0xb3   : > { %416 = vst.msk [vmem:[#allocation2 + $0x108] sm:$0xff] %vm406_vm11, %v387_v33  ;;  %v3964_v39 = vpack.c.bf16 %v638_v34, %v839_v28  ;;  %v3966_v40 = vpack.c.bf16 %v393_v36, %v392_v25  ;;  %v6028_v42 = vpack.i.bf16 %v638_v34, %v839_v28  ;;  %v6034_v46 = vpack.i.bf16 %v638_v34, %v841_v24 }
  0xb5   : > { %7378 = vst [vmem:[#allocation4_spill] sm:$0xff] %v6028_v42  ;;  %4425 = vrot.lane.b32.xlu1 %v6000_v17, %s5711_s11  ;;  %4430 = vrot.lane.b32.xlu0 %v6024_v38, %s5711_s11  ;;  %v432_v43 = vpop.permute.xlu1 %431  ;;  %v430_v45 = vpop.permute.xlu0 %429  ;;  %v847_v49 = vld [vmem:[#allocation2 + $0x100] sm:$0xff] }
  0xb6   : > { %3965 = vmatpush1.bf16.msra.mxu0 %v3964_v39  ;;  %464 = vst.msk [vmem:[#allocation2 + $0x130] sm:$0xff] %vm419_vm4, %v432_v43  ;;  %v445_v50 = vsel %vm419_vm4, %v430_v45, %v432_v43  ;;  %v6039_v51 = vpack.i.bf16 %v847_v49, %v392_v25  ;;  %v845_v52 = vld [vmem:[#allocation2 + $0xf0] sm:$0xff] }
  0xb7   : > { %462 = vst.msk [vmem:[#allocation2 + $0x120] sm:$0xff] %vm461_vm12, %v430_v45  ;;  %3967 = vmatprep.subr.bf16.mxu0 %v3966_v40  ;;  %v6048_v59 = vpack.i.bf16 %v392_v25, %v845_v52 }
  0xb8   : > { %7379 = vst [vmem:[#allocation5_spill] sm:$0xff] %v6039_v51 }
  0xb9   : > { %4435 = vrot.lane.b32.xlu1 %v6034_v46, %s5711_s11  ;;  %4440 = vrot.lane.b32.xlu0 %v6026_v41, %s5711_s11  ;;  %v436_v54 = vpop.permute.xlu1 %435  ;;  %v434_v55 = vpop.permute.xlu0 %433  ;;  %v850_v57 = vld [vmem:[#allocation2 + $0x118] sm:$0xff] }
  0xba   : > { %v848_v56 = vld [vmem:[#allocation2 + $0x108] sm:$0xff]  ;;  %467 = vst.msk [vmem:[#allocation2 + $0x148] sm:$0xff] %vm419_vm4, %v436_v54  ;;  %v446_v58 = vsel %vm419_vm4, %v434_v55, %v436_v54  ;;  %v6052_v3 = vpack.i.bf16 %v850_v57, %v393_v36 }
  0xbb   : > { %465 = vst.msk [vmem:[#allocation2 + $0x138] sm:$0xff] %vm461_vm12, %v434_v55  ;;  %v6050_v61 = vpack.i.bf16 %v848_v56, %v847_v49  ;;  %v3968_v62 = vpack.c.bf16 %v848_v56, %v845_v52  ;;  %v3970_v2 = vpack.c.bf16 %v446_v58, %v445_v50  ;;  %v6054_v5 = vpack.i.bf16 %v848_v56, %v845_v52 }
  0xbc   : > { %7380 = vst [vmem:[#allocation6_spill] sm:$0xff] %v6052_v3 }
  0xbd   : > { %7381 = vst [vmem:[#allocation7_spill] sm:$0xff] %v6054_v5  ;;  %4445 = vrot.lane.b32.xlu1 %v6048_v59, %s5711_s11  ;;  %4450 = vrot.lane.b32.xlu0 %v6050_v61, %s5711_s11  ;;  %v440_v6 = vpop.permute.xlu1 %439  ;;  %v438_v9 = vpop.permute.xlu0 %437  ;;  %v853_v11 = vld [vmem:[#allocation2 + $0x130] sm:$0xff] }
  0xbe   : > { %3969 = vmatpush1.bf16.msra.mxu0 %v3968_v62  ;;  %v851_v10 = vld [vmem:[#allocation2 + $0x120] sm:$0xff]  ;;  %470 = vst.msk [vmem:[#allocation2 + $0x160] sm:$0xff] %vm419_vm4, %v440_v6  ;;  %v447_v12 = vsel %vm419_vm4, %v438_v9, %v440_v6  ;;  %v6065_v14 = vpack.i.bf16 %v853_v11, %v445_v50 }
  0xbf   : > { %468 = vst.msk [vmem:[#allocation2 + $0x150] sm:$0xff] %vm461_vm12, %v438_v9  ;;  %v6063_v13 = vpack.i.bf16 %v445_v50, %v851_v10  ;;  %3971 = vmatprep.subr.bf16.mxu0 %v3970_v2  ;;  %v865_v2 = vld [vmem:[#allocation2 + $0x190] sm:$0xff] }
  0xc0   : > { %7382 = vst [vmem:[#allocation8_spill] sm:$0xff] %v6065_v14 }
  0xc1   : > { %4455 = vrot.lane.b32.xlu1 %v6052_v3, %s5711_s11  ;;  %4460 = vrot.lane.b32.xlu0 %v6063_v13, %s5711_s11  ;;  %v444_v15 = vpop.permute.xlu1 %443  ;;  %v442_v16 = vpop.permute.xlu0 %441  ;;  %v856_v20 = vld [vmem:[#allocation2 + $0x148] sm:$0xff] }
  0xc2   : > { %v854_v19 = vld [vmem:[#allocation2 + $0x138] sm:$0xff]  ;;  %473 = vst.msk [vmem:[#allocation2 + $0x178] sm:$0xff] %vm419_vm4, %v444_v15  ;;  %v448_v24 = vsel %vm419_vm4, %v442_v16, %v444_v15  ;;  %v6076_v28 = vpack.i.bf16 %v856_v20, %v446_v58  ;;  %vm2411_vm4 = vcmask 1014784  }
  0xc3   : > { %471 = vst.msk [vmem:[#allocation2 + $0x168] sm:$0xff] %vm461_vm12, %v442_v16  ;;  %v6074_v25 = vpack.i.bf16 %v854_v19, %v853_v11  ;;  %v3972_v30 = vpack.c.bf16 %v854_v19, %v851_v10  ;;  %v3974_v33 = vpack.c.bf16 %v448_v24, %v447_v12  ;;  %v6078_v34 = vpack.i.bf16 %v854_v19, %v851_v10 }
  0xc5   : > { %7383 = vst [vmem:[#allocation9_spill] sm:$0xff] %v6078_v34  ;;  %4465 = vrot.lane.b32.xlu1 %v6074_v25, %s5711_s11  ;;  %4470 = vrot.lane.b32.xlu0 %v6076_v28, %s5711_s11  ;;  %v486_v35 = vpop.permute.xlu1 %485  ;;  %v484_v36 = vpop.permute.xlu0 %483  ;;  %v859_v40 = vld [vmem:[#allocation2 + $0x160] sm:$0xff] }
  0xc6   : > { %3973 = vmatpush1.bf16.msra.mxu0 %v3972_v30  ;;  %v857_v39 = vld [vmem:[#allocation2 + $0x150] sm:$0xff]  ;;  %513 = vst.msk [vmem:[#allocation2 + $0x188] sm:$0xff] %vm499_vm13, %v486_v35  ;;  %v500_v43 = vsel %vm499_vm13, %v484_v36, %v486_v35  ;;  %v6088_v49 = vpack.i.bf16 %v859_v40, %v447_v12 }
  0xc7   : > { %v6086_v45 = vpack.i.bf16 %v447_v12, %v857_v39  ;;  %3975 = vmatprep.subr.bf16.mxu0 %v3974_v33 }
  0xc8   : > { %7384 = vst [vmem:[#allocation10_spill] sm:$0xff] %v6088_v49 }
  0xc9   : > { %4475 = vrot.lane.b32.xlu1 %v6086_v45, %s5711_s11  ;;  %v490_v50 = vpop.permute.xlu1 %489  ;;  %v488_v52 = vpop.permute.xlu0 %487  ;;  %v862_v55 = vld [vmem:[#allocation2 + $0x178] sm:$0xff] }
  0xca   : > { %v860_v54 = vld [vmem:[#allocation2 + $0x168] sm:$0xff]  ;;  %515 = vst.msk [vmem:[#allocation2 + $0x1a0] sm:$0xff] %vm499_vm13, %v490_v50  ;;  %v501_v56 = vsel %vm499_vm13, %v488_v52, %v490_v50  ;;  %v6096_v58 = vpack.i.bf16 %v862_v55, %v448_v24  ;;  %v871_v50 = vld [vmem:[#allocation2 + $0x1c0] sm:$0xff] }
  0xcb   : > { %v6094_v57 = vpack.i.bf16 %v860_v54, %v859_v40  ;;  %v3976_v62 = vpack.c.bf16 %v860_v54, %v857_v39  ;;  %v6098_v6 = vpack.i.bf16 %v860_v54, %v857_v39  ;;  %v6104_v9 = vpack.i.bf16 %v501_v56, %v500_v43  ;;  %v868_v24 = vld [vmem:[#allocation2 + $0x1a8] sm:$0xff] }
  0xcc   : > { %v6106_v15 = vpack.i.bf16 %v501_v56, %v865_v2  ;;  %v3980_v52 = vpack.c.bf16 %v501_v56, %v500_v43 }
  0xcd   : > { %7385 = vst [vmem:[#allocation11_spill] sm:$0xff] %v6098_v6  ;;  %4480 = vrot.lane.b32.xlu0 %v6094_v57, %s5711_s11  ;;  %4485 = vrot.lane.b32.xlu1 %v6096_v58, %s5711_s11  ;;  %7386 = vst [vmem:[#allocation12_spill] sm:$0xff] %v6104_v9  ;;  %v494_v10 = vpop.permute.xlu1 %493  ;;  %v492_v11 = vpop.permute.xlu0 %491  ;;  %v864_v12 = vld [vmem:[#allocation2 + $0x188] sm:$0xff] }
  0xce   : > { %3977 = vmatpush1.bf16.msra.mxu0 %v3976_v62  ;;  %517 = vst.msk [vmem:[#allocation2 + $0x1b8] sm:$0xff] %vm499_vm13, %v494_v10  ;;  %v502_v16 = vsel %vm499_vm13, %v492_v11, %v494_v10  ;;  %v6110_v19 = vpack.i.bf16 %v864_v12, %v500_v43  ;;  %v6112_v20 = vpack.i.bf16 %v865_v2, %v864_v12  ;;  %v874_v43 = vld [vmem:[#allocation2 + $0x1d8] sm:$0xff] }
  0xd0   : > { %7387 = vst [vmem:[#allocation13_spill] sm:$0xff] %v6112_v20 }
  0xd1   : > { %4490 = vrot.lane.b32.xlu0 %v6110_v19, %s5711_s11  ;;  %4495 = vrot.lane.b32.xlu1 %v6106_v15, %s5711_s11  ;;  %v498_v30 = vpop.permute.xlu1 %497  ;;  %v496_v33 = vpop.permute.xlu0 %495  ;;  %v655_v35 = vld [vmem:[#allocation2 + $0x1a0] sm:$0xff] }
  0xd2   : > { %519 = vst.msk [vmem:[#allocation2 + $0x1d0] sm:$0xff] %vm499_vm13, %v498_v30  ;;  %v503_v36 = vsel %vm499_vm13, %v496_v33, %v498_v30  ;;  %v3978_v39 = vpack.c.bf16 %v655_v35, %v864_v12  ;;  %v6120_v40 = vpack.i.bf16 %v868_v24, %v655_v35 }
  0xd3   : > { %v6122_v54 = vpack.i.bf16 %v503_v36, %v502_v16  ;;  %v6126_v10 = vpack.i.bf16 %v503_v36, %v871_v50 }
  0xd4   : > { %3979 = vmatprep.subr.bf16.mxu0 %v3978_v39 }
  0xd5   : > { %7388 = vst [vmem:[#allocation14_spill] sm:$0xff] %v6122_v54  ;;  %4500 = vrot.lane.b32.xlu0 %v6120_v40, %s5711_s11  ;;  %v532_v55 = vpop.permute.xlu1 %531  ;;  %3981 = vmatpush1.bf16.msra.mxu0 %v3980_v52  ;;  %v530_v62 = vpop.permute.xlu0 %529  ;;  %v870_v2 = vld [vmem:[#allocation2 + $0x1b8] sm:$0xff] }
  0xd6   : > { %559 = vst.msk [vmem:[#allocation2 + $0x1e8] sm:$0xff] %vm545_vm14, %v532_v55  ;;  %v546_v11 = vsel %vm545_vm14, %v530_v62, %v532_v55  ;;  %v6130_v12 = vpack.i.bf16 %v870_v2, %v502_v16  ;;  %v6132_v24 = vpack.i.bf16 %v871_v50, %v870_v2  ;;  %v877_v55 = vld [vmem:[#allocation2 + $0x1f0] sm:$0xff]  ;;  %v3984_v50 = vpack.c.bf16 %v503_v36, %v502_v16  ;;  %v880_v16 = vld [vmem:[#allocation2 + $0x208] sm:$0xff] }
  0xd8   : > { %7389 = vst [vmem:[#allocation15_spill] sm:$0xff] %v6132_v24  ;;  %4505 = vrot.lane.b32.xlu1 %v6130_v12, %s5711_s11 }
  0xd9   : > { %4510 = vrot.lane.b32.xlu0 %v6126_v10, %s5711_s11  ;;  %v536_v56 = vpop.permute.xlu1 %535  ;;  %v534_v30 = vpop.permute.xlu0 %533  ;;  %v659_v33 = vld [vmem:[#allocation2 + $0x1d0] sm:$0xff] }
  0xda   : > { %561 = vst.msk [vmem:[#allocation2 + $0x200] sm:$0xff] %vm545_vm14, %v536_v56  ;;  %v547_v35 = vsel %vm545_vm14, %v534_v30, %v536_v56  ;;  %v3982_v39 = vpack.c.bf16 %v659_v33, %v870_v2  ;;  %v6140_v52 = vpack.i.bf16 %v874_v43, %v659_v33 }
  0xdb   : > { %v6142_v62 = vpack.i.bf16 %v547_v35, %v546_v11  ;;  %v6146_v9 = vpack.i.bf16 %v547_v35, %v877_v55 }
  0xdc   : > { %3983 = vmatprep.subr.bf16.mxu0 %v3982_v39  ;;  %4515 = vrot.lane.b32.xlu1 %v6140_v52, %s5711_s11 }
  0xdd   : > { %7390 = vst [vmem:[#allocation16_spill] sm:$0xff] %v6142_v62  ;;  %v540_v0 = vpop.permute.xlu1 %539  ;;  %3985 = vmatpush1.bf16.msra.mxu0 %v3984_v50  ;;  %v538_v54 = vpop.permute.xlu0 %537  ;;  %v876_v24 = vld [vmem:[#allocation2 + $0x1e8] sm:$0xff] }
  0xde   : > { %563 = vst.msk [vmem:[#allocation2 + $0x218] sm:$0xff] %vm545_vm14, %v540_v0  ;;  %v548_v2 = vsel %vm545_vm14, %v538_v54, %v540_v0  ;;  %v6150_v43 = vpack.i.bf16 %v876_v24, %v546_v11  ;;  %v6152_v56 = vpack.i.bf16 %v877_v55, %v876_v24  ;;  %v883_v54 = vld [vmem:[#allocation2 + $0x220] sm:$0xff]  ;;  %v3988_v55 = vpack.c.bf16 %v547_v35, %v546_v11  ;;  %v886_v11 = vld [vmem:[#allocation2 + $0x238] sm:$0xff] }
  0xe0   : > { %7391 = vst [vmem:[#allocation17_spill] sm:$0xff] %v6152_v56  ;;  %4520 = vrot.lane.b32.xlu0 %v6150_v43, %s5711_s11  ;;  %4525 = vrot.lane.b32.xlu1 %v6146_v9, %s5711_s11 }
  0xe1   : > { %v544_v36 = vpop.permute.xlu1 %543  ;;  %v542_v30 = vpop.permute.xlu0 %541  ;;  %v663_v33 = vld [vmem:[#allocation2 + $0x200] sm:$0xff] }
  0xe2   : > { %565 = vst.msk [vmem:[#allocation2 + $0x230] sm:$0xff] %vm545_vm14, %v544_v36  ;;  %v549_v39 = vsel %vm545_vm14, %v542_v30, %v544_v36  ;;  %v3986_v50 = vpack.c.bf16 %v663_v33, %v876_v24  ;;  %v6160_v0 = vpack.i.bf16 %v880_v16, %v663_v33 }
  0xe3   : > { %v6162_v62 = vpack.i.bf16 %v549_v39, %v548_v2  ;;  %v6166_v49 = vpack.i.bf16 %v549_v39, %v883_v54 }
  0xe4   : > { %3987 = vmatprep.subr.bf16.mxu0 %v3986_v50  ;;  %4530 = vrot.lane.b32.xlu0 %v6160_v0, %s5711_s11 }
  0xe5   : > { %7392 = vst [vmem:[#allocation18_spill] sm:$0xff] %v6162_v62  ;;  %v578_v56 = vpop.permute.xlu1 %577  ;;  %3989 = vmatpush1.bf16.msra.mxu0 %v3988_v55  ;;  %v576_v20 = vpop.permute.xlu0 %575  ;;  %v882_v6 = vld [vmem:[#allocation2 + $0x218] sm:$0xff] }
  0xe6   : > { %605 = vst.msk [vmem:[#allocation2 + $0x248] sm:$0xff] %vm591_vm15, %v578_v56  ;;  %v592_v24 = vsel %vm591_vm15, %v576_v20, %v578_v56  ;;  %v6170_v16 = vpack.i.bf16 %v882_v6, %v548_v2  ;;  %v6172_v36 = vpack.i.bf16 %v883_v54, %v882_v6  ;;  %v889_v56 = vld [vmem:[#allocation2 + $0x250] sm:$0xff]  ;;  %v3992_v54 = vpack.c.bf16 %v549_v39, %v548_v2  ;;  %v892_v2 = vld [vmem:[#allocation2 + $0x268] sm:$0xff] }
  0xe8   : > { %7393 = vst [vmem:[#allocation19_spill] sm:$0xff] %v6172_v36  ;;  %4535 = vrot.lane.b32.xlu1 %v6170_v16, %s5711_s11  ;;  %4540 = vrot.lane.b32.xlu0 %v6166_v49, %s5711_s11 }
  0xe9   : > { %v582_v35 = vpop.permute.xlu1 %581  ;;  %v580_v30 = vpop.permute.xlu0 %579  ;;  %v667_v33 = vld [vmem:[#allocation2 + $0x230] sm:$0xff] }
  0xea   : > { %607 = vst.msk [vmem:[#allocation2 + $0x260] sm:$0xff] %vm591_vm15, %v582_v35  ;;  %v593_v50 = vsel %vm591_vm15, %v580_v30, %v582_v35  ;;  %v3990_v55 = vpack.c.bf16 %v667_v33, %v882_v6  ;;  %v6180_v20 = vpack.i.bf16 %v886_v11, %v667_v33 }
  0xeb   : > { %v6182_v62 = vpack.i.bf16 %v593_v50, %v592_v24  ;;  %v6186_v5 = vpack.i.bf16 %v593_v50, %v889_v56 }
  0xec   : > { %3991 = vmatprep.subr.bf16.mxu0 %v3990_v55  ;;  %4545 = vrot.lane.b32.xlu1 %v6180_v20, %s5711_s11 }
  0xed   : > { %7394 = vst [vmem:[#allocation20_spill] sm:$0xff] %v6182_v62  ;;  %v586_v36 = vpop.permute.xlu1 %585  ;;  %3993 = vmatpush1.bf16.msra.mxu0 %v3992_v54  ;;  %v584_v34 = vpop.permute.xlu0 %583  ;;  %v888_v14 = vld [vmem:[#allocation2 + $0x248] sm:$0xff] }
  0xee   : > { %609 = vst.msk [vmem:[#allocation2 + $0x278] sm:$0xff] %vm591_vm15, %v586_v36  ;;  %v594_v6 = vsel %vm591_vm15, %v584_v34, %v586_v36  ;;  %v6190_v11 = vpack.i.bf16 %v888_v14, %v592_v24  ;;  %v6192_v35 = vpack.i.bf16 %v889_v56, %v888_v14  ;;  %v3996_v36 = vpack.c.bf16 %v593_v50, %v592_v24  ;;  %v895_v56 = vld [vmem:[#allocation2 + $0x280] sm:$0xff] }
  0xf0   : > { %7395 = vst [vmem:[#allocation21_spill] sm:$0xff] %v6192_v35  ;;  %4550 = vrot.lane.b32.xlu0 %v6190_v11, %s5711_s11  ;;  %4555 = vrot.lane.b32.xlu1 %v6186_v5, %s5711_s11 }
  0xf1   : > { %v590_v39 = vpop.permute.xlu1 %589  ;;  %v588_v30 = vpop.permute.xlu0 %587  ;;  %v671_v33 = vld [vmem:[#allocation2 + $0x260] sm:$0xff] }
  0xf2   : > { %611 = vst.msk [vmem:[#allocation2 + $0x290] sm:$0xff] %vm591_vm15, %v590_v39  ;;  %v595_v55 = vsel %vm591_vm15, %v588_v30, %v590_v39  ;;  %v3994_v54 = vpack.c.bf16 %v671_v33, %v888_v14  ;;  %v6200_v34 = vpack.i.bf16 %v892_v2, %v671_v33  ;;  %v898_v39 = vld [vmem:[#allocation2 + $0x298] sm:$0xff]  ;;  %v613_v14 = vld [vmem:[%s7347_s2 + $0x8] sm:$0xff]  ;;  %v612_v33 = vld [vmem:[%s7347_s2] sm:$0xff] }
  0xf3   : > { %v6202_v62 = vpack.i.bf16 %v595_v55, %v594_v6  ;;  %v6208_v42 = vpack.i.bf16 %v595_v55, %v895_v56  ;;  %3840 = vmatprep.mubr.msk.f32.mxu0 %vm676_vm0, %v613_v14  ;;  %v4000_v30 = vpack.c.bf16 %v595_v55, %v594_v6 }
  0xf4   : > { %3995 = vmatprep.subr.bf16.mxu0 %v3994_v54  ;;  %4560 = vrot.lane.b32.xlu0 %v6200_v34, %s5711_s11 }
  0xf5   : > { %7396 = vst [vmem:[#allocation22_spill] sm:$0xff] %v6202_v62  ;;  %3997 = vmatpush1.bf16.msra.mxu0 %v3996_v36  ;;  %v894_v35 = vld [vmem:[#allocation2 + $0x278] sm:$0xff] }
  0xf6   : > { %v6206_v51 = vpack.i.bf16 %v894_v35, %v594_v6  ;;  %v6210_v27 = vpack.i.bf16 %v895_v56, %v894_v35 }
  0xf8   : > { %7397 = vst [vmem:[#allocation23_spill] sm:$0xff] %v6210_v27  ;;  %4565 = vrot.lane.b32.xlu1 %v6206_v51, %s5711_s11  ;;  %4570 = vrot.lane.b32.xlu0 %v6208_v42, %s5711_s11 }
  0xf9   : > { %v675_v24 = vld [vmem:[#allocation2 + $0x290] sm:$0xff] }
  0xfa   : > { %v3998_v50 = vpack.c.bf16 %v675_v24, %v894_v35  ;;  %v6220_v2 = vpack.i.bf16 %v898_v39, %v675_v24 }
  0xfc   : > { %3999 = vmatprep.subr.bf16.mxu0 %v3998_v50  ;;  %4575 = vrot.lane.b32.xlu1 %v6220_v2, %s5711_s11 }
  0xfd   : > { %4001 = vmatpush1.bf16.msra.mxu0 %v4000_v30  ;;  %4580 = vrot.lane.b32.xlu0 %v5930_v22, %s5712_s14 }
 0x100   : > { %4585 = vrot.lane.b32.xlu1 %v5937_v29, %s5712_s14  ;;  %754 = vmatmul.mubr.f32.vlgmr.msra.gmra.mrb[0].mxu0 %v612_v33 }
 0x101   : > { %4590 = vrot.lane.b32.xlu0 %v5942_v32, %s5712_s14 }
 0x104   : > { %4595 = vrot.lane.b32.xlu1 %v5984_v4, %s5712_s14 }
 0x105   : > { %4600 = vrot.lane.b32.xlu0 %v5955_v44, %s5712_s14 }
 0x106   : > { %v4371_v44 = vpop.permute.xlu1 %4370 }
 0x107   : > { %v4373_v54 = vunpack.i.h.bf16 %v4371_v44  ;;  %v4372_v36 = vunpack.i.l.bf16 %v4371_v44 }
 0x108   : > { %4605 = vrot.lane.b32.xlu1 %v5957_v47, %s5712_s14 }
 0x109   : > { %4610 = vrot.lane.b32.xlu0 %v5989_v7, %s5712_s14 }
 0x10c   : > { %4615 = vrot.lane.b32.xlu1 %v5973_v60, %s5712_s14 }
 0x10d   : > { %4620 = vrot.lane.b32.xlu0 %v5975_v63, %s5712_s14 }
 0x10f   : > { %v4376_v6 = vpop.permute.xlu0 %4375 }
 0x110   : > { %4625 = vrot.lane.b32.xlu1 %v6008_v21, %s5712_s14 }
 0x111   : > { %4630 = vrot.lane.b32.xlu0 %v6013_v26, %s5712_s14 }
 0x113   : > { %v4386_v4 = vpop.permute.xlu0 %4385 }
 0x114   : > { %4635 = vrot.lane.b32.xlu1 %v6000_v17, %s5712_s14  ;;  %v4388_v35 = vunpack.i.h.bf16 %v4386_v4  ;;  %v4387_v7 = vunpack.i.l.bf16 %v4386_v4  ;;  %v4378_v4 = vunpack.i.h.bf16 %v4376_v6 }
 0x115   : > { %4640 = vrot.lane.b32.xlu0 %v6024_v38, %s5712_s14 }
 0x116   : > { %v1153_v26 = vsel %vm1151_vm1, %v4388_v35, %v4372_v36  ;;  %v1152_v14 = vsel %vm1151_vm1, %v4387_v7, %v4388_v35 }
 0x117   : > { %v4381_v60 = vpop.permute.xlu1 %4380  ;;  %v4391_v55 = vpop.permute.xlu0 %4390 }
 0x118   : > { %v4393_v56 = vunpack.i.h.bf16 %v4391_v55  ;;  %v4392_v21 = vunpack.i.l.bf16 %v4391_v55  ;;  %4645 = vrot.lane.b32.xlu1 %v6034_v46, %s5712_s14  ;;  %v4377_v55 = vunpack.i.l.bf16 %v4376_v6 }
 0x119   : > { %4650 = vrot.lane.b32.xlu0 %v6026_v41, %s5712_s14 }
 0x11a   : > { %v1155_v39 = vsel %vm1151_vm1, %v4392_v21, %v4393_v56  ;;  %v1154_v38 = vsel %vm1151_vm1, %v4373_v54, %v4392_v21 }
 0x11b   : > { %v4396_v24 = vpop.permute.xlu1 %4395  ;;  %v4406_v50 = vpop.permute.xlu0 %4405  ;;  %v4002_v30 = vpack.c.bf16 %v1155_v39, %v1153_v26  ;;  %v4004_v33 = vpack.c.bf16 %v1154_v38, %v1152_v14  ;;  %v4382_v39 = vunpack.i.l.bf16 %v4381_v60 }
 0x11c   : > { %v4398_v44 = vunpack.i.h.bf16 %v4396_v24  ;;  %4655 = vrot.lane.b32.xlu1 %v6048_v59, %s5712_s14  ;;  %v4397_v46 = vunpack.i.l.bf16 %v4396_v24  ;;  %v4408_v36 = vunpack.i.h.bf16 %v4406_v50  ;;  %v4383_v24 = vunpack.i.h.bf16 %v4381_v60 }
 0x11d   : > { %4003 = vmatprep.subr.bf16.mxu1 %v4002_v30  ;;  %4660 = vrot.lane.b32.xlu0 %v6050_v61, %s5712_s14  ;;  %v4407_v30 = vunpack.i.l.bf16 %v4406_v50 }
 0x11e   : > { %4005 = vmatpush1.bf16.msra.mxu1 %v4004_v33  ;;  %v1157_v59 = vsel %vm1151_vm1, %v4398_v44, %v4377_v55  ;;  %v1156_v61 = vsel %vm1151_vm1, %v4397_v46, %v4398_v44  ;;  %v1161_v27 = vsel %vm1151_vm1, %v4408_v36, %v4382_v39 }
 0x11f   : > { %v4401_v35 = vpop.permute.xlu1 %4400  ;;  %v4411_v7 = vpop.permute.xlu0 %4410 }
 0x120   : > { %v4403_v54 = vunpack.i.h.bf16 %v4401_v35  ;;  %v4402_v56 = vunpack.i.l.bf16 %v4401_v35  ;;  %v4413_v21 = vunpack.i.h.bf16 %v4411_v7  ;;  %v4412_v26 = vunpack.i.l.bf16 %v4411_v7  ;;  %4665 = vrot.lane.b32.xlu1 %v6052_v3, %s5712_s14 }
 0x121   : > { %4670 = vrot.lane.b32.xlu0 %v6063_v13, %s5712_s14 }
 0x122   : > { %v1159_v14 = vsel %vm1151_vm1, %v4402_v56, %v4403_v54  ;;  %v1158_v6 = vsel %vm1151_vm1, %v4378_v4, %v4402_v56  ;;  %v1163_v38 = vsel %vm1151_vm1, %v4412_v26, %v4413_v21  ;;  %v1162_v44 = vsel %vm1151_vm1, %v4383_v24, %v4412_v26 }
 0x123   : > { %v4421_v33 = vpop.permute.xlu1 %4420  ;;  %v4416_v35 = vpop.permute.xlu0 %4415  ;;  %v4006_v7 = vpack.c.bf16 %v1159_v14, %v1157_v59  ;;  %v4008_v62 = vpack.c.bf16 %v1158_v6, %v1156_v61  ;;  %v4010_v13 = vpack.c.bf16 %v1163_v38, %v1161_v27  ;;  %v1160_v4 = vsel %vm1151_vm1, %v4407_v30, %v4408_v36 }
 0x124   : > { %v4423_v55 = vunpack.i.h.bf16 %v4421_v33  ;;  %v4417_v3 = vunpack.i.l.bf16 %v4416_v35  ;;  %4675 = vrot.lane.b32.xlu1 %v6074_v25, %s5712_s14  ;;  %v4422_v46 = vunpack.i.l.bf16 %v4421_v33  ;;  %v4418_v54 = vunpack.i.h.bf16 %v4416_v35 }
 0x125   : > { %4007 = vmatprep.subr.bf16.mxu1 %v4006_v7  ;;  %4680 = vrot.lane.b32.xlu0 %v6076_v28, %s5712_s14  ;;  %v4012_v39 = vpack.c.bf16 %v1162_v44, %v1160_v4 }
 0x126   : > { %4009 = vmatpush1.bf16.msra.mxu1 %v4008_v62  ;;  %v1165_v27 = vsel %vm1151_vm1, %v4423_v55, %v4417_v3  ;;  %v1164_v62 = vsel %vm1151_vm1, %v4422_v46, %v4423_v55 }
 0x127   : > { %v4426_v60 = vpop.permute.xlu1 %4425  ;;  %v4431_v50 = vpop.permute.xlu0 %4430  ;;  %4011 = vmatprep.subr.bf16.mxu1 %v4010_v13 }
 0x128   : > { %v4428_v56 = vunpack.i.h.bf16 %v4426_v60  ;;  %v4427_v21 = vunpack.i.l.bf16 %v4426_v60  ;;  %v4433_v59 = vunpack.i.h.bf16 %v4431_v50  ;;  %v4432_v14 = vunpack.i.l.bf16 %v4431_v50  ;;  %4685 = vrot.lane.b32.xlu1 %v6086_v45, %s5712_s14 }
 0x129   : > { %4690 = vrot.lane.b32.xlu0 %v6094_v57, %s5712_s14 }
 0x12a   : > { %4013 = vmatpush1.bf16.msra.mxu1 %v4012_v39  ;;  %v1167_v25 = vsel %vm1151_vm1, %v4427_v21, %v4428_v56  ;;  %v1166_v36 = vsel %vm1151_vm1, %v4418_v54, %v4427_v21  ;;  %v1168_v3 = vsel %vm1151_vm1, %v4432_v14, %v4433_v59 }
 0x12b   : > { %v4436_v26 = vpop.permute.xlu1 %4435  ;;  %v4441_v61 = vpop.permute.xlu0 %4440  ;;  %v4014_v6 = vpack.c.bf16 %v1167_v25, %v1165_v27  ;;  %v4016_v38 = vpack.c.bf16 %v1166_v36, %v1164_v62 }
 0x12c   : > { %v4438_v24 = vunpack.i.h.bf16 %v4436_v26  ;;  %v4437_v30 = vunpack.i.l.bf16 %v4436_v26  ;;  %v4443_v33 = vunpack.i.h.bf16 %v4441_v61  ;;  %v4442_v45 = vunpack.i.l.bf16 %v4441_v61  ;;  %4695 = vrot.lane.b32.xlu1 %v6096_v58, %s5712_s14 }
 0x12d   : > { %4015 = vmatprep.subr.bf16.mxu1 %v4014_v6  ;;  %4700 = vrot.lane.b32.xlu0 %v6110_v19, %s5712_s14 }
 0x12e   : > { %4017 = vmatpush1.bf16.msra.mxu1 %v4016_v38  ;;  %v1169_v57 = vsel %vm1151_vm1, %v4433_v59, %v4437_v30  ;;  %v1171_v35 = vsel %vm1151_vm1, %v4442_v45, %v4443_v33  ;;  %v1170_v7 = vsel %vm1151_vm1, %v4438_v24, %v4442_v45 }
 0x12f   : > { %v4446_v55 = vpop.permute.xlu1 %4445  ;;  %v4451_v13 = vpop.permute.xlu0 %4450  ;;  %v4018_v44 = vpack.c.bf16 %v1171_v35, %v1169_v57  ;;  %v4020_v46 = vpack.c.bf16 %v1170_v7, %v1168_v3 }
 0x130   : > { %4705 = vrot.lane.b32.xlu1 %v6106_v15, %s5712_s14  ;;  %v4448_v60 = vunpack.i.h.bf16 %v4446_v55  ;;  %v4447_v50 = vunpack.i.l.bf16 %v4446_v55  ;;  %v4452_v4 = vunpack.i.l.bf16 %v4451_v13  ;;  %v4453_v19 = vunpack.i.h.bf16 %v4451_v13 }
 0x131   : > { %4019 = vmatprep.subr.bf16.mxu1 %v4018_v44  ;;  %4710 = vrot.lane.b32.xlu0 %v6120_v40, %s5712_s14 }
 0x132   : > { %4021 = vmatpush1.bf16.msra.mxu1 %v4020_v46  ;;  %v1173_v27 = vsel %vm1151_vm1, %v4448_v60, %v4452_v4  ;;  %v1172_v25 = vsel %vm1151_vm1, %v4447_v50, %v4448_v60 }
 0x133   : > { %v4456_v54 = vpop.permute.xlu1 %4455  ;;  %v4461_v56 = vpop.permute.xlu0 %4460 }
 0x134   : > { %v4458_v21 = vunpack.i.h.bf16 %v4456_v54  ;;  %v4457_v39 = vunpack.i.l.bf16 %v4456_v54  ;;  %v4463_v59 = vunpack.i.h.bf16 %v4461_v56  ;;  %v4462_v14 = vunpack.i.l.bf16 %v4461_v56  ;;  %4715 = vrot.lane.b32.xlu1 %v6130_v12, %s5712_s14 }
 0x135   : > { %4720 = vrot.lane.b32.xlu0 %v6126_v10, %s5712_s14 }
 0x136   : > { %v1175_v15 = vsel %vm1151_vm1, %v4457_v39, %v4458_v21  ;;  %v1174_v62 = vsel %vm1151_vm1, %v4453_v19, %v4457_v39  ;;  %v1176_v12 = vsel %vm1151_vm1, %v4462_v14, %v4463_v59 }
 0x137   : > { %v4466_v36 = vpop.permute.xlu1 %4465  ;;  %v4471_v26 = vpop.permute.xlu0 %4470  ;;  %v4022_v61 = vpack.c.bf16 %v1175_v15, %v1173_v27  ;;  %v4024_v6 = vpack.c.bf16 %v1174_v62, %v1172_v25 }
 0x138   : > { %v4468_v38 = vunpack.i.h.bf16 %v4466_v36  ;;  %v4467_v24 = vunpack.i.l.bf16 %v4466_v36  ;;  %v4473_v30 = vunpack.i.h.bf16 %v4471_v26  ;;  %v4472_v33 = vunpack.i.l.bf16 %v4471_v26  ;;  %4725 = vrot.lane.b32.xlu1 %v6140_v52, %s5712_s14  ;;  %v615_v26 = vld [vmem:[%s7347_s2 + $0x18] sm:$0xff] }
 0x139   : > { %4023 = vmatprep.subr.bf16.mxu1 %v4022_v61  ;;  %4730 = vrot.lane.b32.xlu0 %v6150_v43, %s5712_s14 }
 0x13a   : > { %4025 = vmatpush1.bf16.msra.mxu1 %v4024_v6  ;;  %v1177_v10 = vsel %vm1151_vm1, %v4463_v59, %v4467_v24  ;;  %v1179_v45 = vsel %vm1151_vm1, %v4472_v33, %v4473_v30  ;;  %v1178_v3 = vsel %vm1151_vm1, %v4468_v38, %v4472_v33  ;;  %3841 = vmatprep.mubr.msk.f32.mxu0 %vm676_vm0, %v615_v26  ;;  %v614_v6 = vld [vmem:[%s7347_s2 + $0x10] sm:$0xff] }
 0x13b   : > { %v4476_v57 = vpop.permute.xlu1 %4475  ;;  %v4026_v35 = vpack.c.bf16 %v1179_v45, %v1177_v10  ;;  %v4028_v7 = vpack.c.bf16 %v1178_v3, %v1176_v12  ;;  %760 = vmatmul.mubr.f32.gmra.mrb[2].mxu0 %v614_v6  ;;  %v617_v10 = vld [vmem:[%s7347_s2 + $0x28] sm:$0xff]  ;;  %v616_v45 = vld [vmem:[%s7347_s2 + $0x20] sm:$0xff] }
 0x13c   : > { %4735 = vrot.lane.b32.xlu1 %v6146_v9, %s5712_s14  ;;  %v4478_v55 = vunpack.i.h.bf16 %v4476_v57  ;;  %v4477_v13 = vunpack.i.l.bf16 %v4476_v57  ;;  %v3845_v3 = vld [vmem:[%s7347_s2 + $0x48] sm:$0xff]  ;;  %3842 = vmatprep.mubr.msk.f32.mxu0 %vm676_vm0, %v617_v10 }
 0x13d   : > { %4027 = vmatprep.subr.bf16.mxu1 %v4026_v35  ;;  %4740 = vrot.lane.b32.xlu0 %v6160_v0, %s5712_s14 }
 0x13e   : > { %4029 = vmatpush1.bf16.msra.mxu1 %v4028_v7  ;;  %v1180_v56 = vsel %vm1151_vm1, %v4477_v13, %v4478_v55  ;;  %3852 = vmatprep.mubr.msk.f32.mxu1 %vm676_vm0, %v3845_v3 }
 0x13f   : > { %v4481_v43 = vpop.permute.xlu0 %4480  ;;  %v4486_v44 = vpop.permute.xlu1 %4485  ;;  %766 = vmatmul.mubr.f32.gmra.mrb[4].mxu0 %v616_v45 }
 0x140   : > { %v4483_v46 = vunpack.i.h.bf16 %v4481_v43  ;;  %v4482_v60 = vunpack.i.l.bf16 %v4481_v43  ;;  %v4488_v50 = vunpack.i.h.bf16 %v4486_v44  ;;  %v4487_v4 = vunpack.i.l.bf16 %v4486_v44  ;;  %4745 = vrot.lane.b32.xlu1 %v6170_v16, %s5712_s14  ;;  %v619_v44 = vld [vmem:[%s7347_s2 + $0x38] sm:$0xff] }
 0x141   : > { %4750 = vrot.lane.b32.xlu0 %v6166_v49, %s5712_s14  ;;  %3843 = vmatprep.mubr.msk.f32.mxu0 %vm676_vm0, %v619_v44 }
 0x142   : > { %v1181_v9 = vsel %vm1151_vm1, %v4478_v55, %v4482_v60  ;;  %v1183_v54 = vsel %vm1151_vm1, %v4487_v4, %v4488_v50  ;;  %v1182_v19 = vsel %vm1151_vm1, %v4483_v46, %v4487_v4 }
 0x143   : > { %v4491_v21 = vpop.permute.xlu0 %4490  ;;  %v4030_v39 = vpack.c.bf16 %v1183_v54, %v1181_v9  ;;  %v4032_v59 = vpack.c.bf16 %v1182_v19, %v1180_v56  ;;  %v4496_v14 = vpop.permute.xlu1 %4495 }
 0x144   : > { %v4493_v27 = vunpack.i.h.bf16 %v4491_v21  ;;  %4755 = vrot.lane.b32.xlu1 %v6180_v20, %s5712_s14  ;;  %v4497_v16 = vunpack.i.l.bf16 %v4496_v14  ;;  %v4492_v15 = vunpack.i.l.bf16 %v4491_v21  ;;  %v4498_v25 = vunpack.i.h.bf16 %v4496_v14  ;;  %v3858_v21 = vld [vmem:[%s7347_s2 + $0x88] sm:$0xff] }
 0x145   : > { %4031 = vmatprep.subr.bf16.mxu1 %v4030_v39  ;;  %4760 = vrot.lane.b32.xlu0 %v6190_v11, %s5712_s14 }
 0x146   : > { %4033 = vmatpush1.bf16.msra.mxu1 %v4032_v59  ;;  %v1185_v61 = vsel %vm1151_vm1, %v4493_v27, %v4497_v16  ;;  %v1184_v38 = vsel %vm1151_vm1, %v4492_v15, %v4493_v27 }
 0x147   : > { %v4501_v49 = vpop.permute.xlu0 %4500 }
 0x148   : > { %v4503_v62 = vunpack.i.h.bf16 %v4501_v49  ;;  %v4502_v36 = vunpack.i.l.bf16 %v4501_v49  ;;  %4765 = vrot.lane.b32.xlu1 %v6186_v5, %s5712_s14 }
 0x149   : > { %4770 = vrot.lane.b32.xlu0 %v6200_v34, %s5712_s14 }
 0x14a   : > { %v1187_v11 = vsel %vm1151_vm1, %v4502_v36, %v4503_v62  ;;  %v1186_v24 = vsel %vm1151_vm1, %v4498_v25, %v4502_v36  ;;  %v4506_v30 = vpop.permute.xlu1 %4505 }
 0x14b   : > { %v4034_v5 = vpack.c.bf16 %v1187_v11, %v1185_v61  ;;  %v4036_v33 = vpack.c.bf16 %v1186_v24, %v1184_v38  ;;  %v4511_v12 = vpop.permute.xlu0 %4510  ;;  %v4508_v57 = vunpack.i.h.bf16 %v4506_v30  ;;  %v4507_v35 = vunpack.i.l.bf16 %v4506_v30 }
 0x14c   : > { %4775 = vrot.lane.b32.xlu1 %v6206_v51, %s5712_s14  ;;  %v4512_v7 = vunpack.i.l.bf16 %v4511_v12  ;;  %v4513_v43 = vunpack.i.h.bf16 %v4511_v12 }
 0x14d   : > { %4035 = vmatprep.subr.bf16.mxu1 %v4034_v5  ;;  %4780 = vrot.lane.b32.xlu0 %v6208_v42, %s5712_s14  ;;  %v618_v42 = vld [vmem:[%s7347_s2 + $0x30] sm:$0xff]  ;;  %v1188_v50 = vsel %vm1151_vm1, %v4507_v35, %v4508_v57 }
 0x14e   : > { %4037 = vmatpush1.bf16.msra.mxu1 %v4036_v33  ;;  %v4516_v55 = vpop.permute.xlu1 %4515  ;;  %v1189_v46 = vsel %vm1151_vm1, %v4508_v57, %v4512_v7  ;;  %772 = vmatmul.mubr.f32.gmra.mrb[6].mxu0 %v618_v42 }
 0x14f   : > { %v4518_v51 = vunpack.i.h.bf16 %v4516_v55  ;;  %v4517_v13 = vunpack.i.l.bf16 %v4516_v55  ;;  %3865 = vmatprep.mubr.msk.f32.mxu0 %vm676_vm0, %v3858_v21 }
 0x150   : > { %4785 = vrot.lane.b32.xlu1 %v6220_v2, %s5712_s14 }
 0x151   : > { %4790 = vrot.lane.b32.xlu0 %v5930_v22, %s5713_s10  ;;  %v1191_v60 = vsel %vm1151_vm1, %v4517_v13, %v4518_v51  ;;  %v1190_v4 = vsel %vm1151_vm1, %v4513_v43, %v4517_v13 }
 0x152   : > { %v4521_v9 = vpop.permute.xlu0 %4520  ;;  %v4038_v54 = vpack.c.bf16 %v1191_v60, %v1189_v46  ;;  %v4040_v56 = vpack.c.bf16 %v1190_v4, %v1188_v50  ;;  %v4526_v19 = vpop.permute.xlu1 %4525 }
 0x153   : > { %v4523_v22 = vunpack.i.h.bf16 %v4521_v9  ;;  %v4522_v39 = vunpack.i.l.bf16 %v4521_v9  ;;  %v4527_v59 = vunpack.i.l.bf16 %v4526_v19  ;;  %v4528_v27 = vunpack.i.h.bf16 %v4526_v19 }
 0x154   : > { %4795 = vrot.lane.b32.xlu1 %v5937_v29, %s5713_s10  ;;  %4039 = vmatprep.subr.bf16.mxu1 %v4038_v54 }
 0x155   : > { %4041 = vmatpush1.bf16.msra.mxu1 %v4040_v56  ;;  %4800 = vrot.lane.b32.xlu0 %v5942_v32, %s5713_s10  ;;  %v1193_v29 = vsel %vm1151_vm1, %v4523_v22, %v4527_v59  ;;  %v1192_v25 = vsel %vm1151_vm1, %v4522_v39, %v4523_v22 }
 0x156   : > { %v4531_v14 = vpop.permute.xlu0 %4530 }
 0x157   : > { %v4533_v16 = vunpack.i.h.bf16 %v4531_v14  ;;  %v4532_v15 = vunpack.i.l.bf16 %v4531_v14 }
 0x158   : > { %4805 = vrot.lane.b32.xlu1 %v5940_v31, %s5714_s13 }
 0x159   : > { %4810 = vrot.lane.b32.xlu0 %v5942_v32, %s5714_s13  ;;  %v1195_v49 = vsel %vm1151_vm1, %v4532_v15, %v4533_v16  ;;  %v1194_v62 = vsel %vm1151_vm1, %v4528_v27, %v4532_v15 }
 0x15a   : > { %v4536_v36 = vpop.permute.xlu1 %4535  ;;  %v4042_v26 = vpack.c.bf16 %v1195_v49, %v1193_v29  ;;  %v4044_v61 = vpack.c.bf16 %v1194_v62, %v1192_v25  ;;  %v4541_v6 = vpop.permute.xlu0 %4540 }
 0x15b   : > { %v4538_v11 = vunpack.i.h.bf16 %v4536_v36  ;;  %v4537_v38 = vunpack.i.l.bf16 %v4536_v36  ;;  %v4542_v24 = vunpack.i.l.bf16 %v4541_v6  ;;  %v4543_v12 = vunpack.i.h.bf16 %v4541_v6 }
 0x15c   : > { %4815 = vrot.lane.b32.xlu1 %v5932_v23, %s5714_s13  ;;  %4043 = vmatprep.subr.bf16.mxu1 %v4042_v26 }
 0x15d   : > { %4045 = vmatpush1.bf16.msra.mxu1 %v4044_v61  ;;  %4820 = vrot.lane.b32.xlu0 %v5950_v37, %s5713_s10  ;;  %v1197_v10 = vsel %vm1151_vm1, %v4538_v11, %v4542_v24  ;;  %v1196_v3 = vsel %vm1151_vm1, %v4537_v38, %v4538_v11 }
 0x15e   : > { %v4546_v30 = vpop.permute.xlu1 %4545 }
 0x15f   : > { %v4548_v5 = vunpack.i.h.bf16 %v4546_v30  ;;  %v4547_v33 = vunpack.i.l.bf16 %v4546_v30 }
 0x160   : > { %4825 = vrot.lane.b32.xlu1 %v5957_v47, %s5713_s10 }
 0x161   : > { %4830 = vrot.lane.b32.xlu0 %v5959_v48, %s5713_s10  ;;  %v1199_v45 = vsel %vm1151_vm1, %v4547_v33, %v4548_v5  ;;  %v1198_v57 = vsel %vm1151_vm1, %v4543_v12, %v4547_v33 }
 0x162   : > { %v4551_v35 = vpop.permute.xlu0 %4550  ;;  %v4046_v7 = vpack.c.bf16 %v1199_v45, %v1197_v10  ;;  %v4048_v55 = vpack.c.bf16 %v1198_v57, %v1196_v3  ;;  %v4556_v51 = vpop.permute.xlu1 %4555  ;;  %v3844_v57 = vld [vmem:[%s7347_s2 + $0x40] sm:$0xff] }
 0x163   : > { %v4553_v13 = vunpack.i.h.bf16 %v4551_v35  ;;  %v4552_v43 = vunpack.i.l.bf16 %v4551_v35  ;;  %v4557_v44 = vunpack.i.l.bf16 %v4556_v51  ;;  %v4558_v46 = vunpack.i.h.bf16 %v4556_v51 }
 0x164   : > { %4835 = vrot.lane.b32.xlu1 %v5950_v37, %s5714_s13  ;;  %4047 = vmatprep.subr.bf16.mxu1 %v4046_v7 }
 0x165   : > { %4049 = vmatpush1.bf16.msra.mxu1 %v4048_v55  ;;  %4840 = vrot.lane.b32.xlu0 %v5957_v47, %s5714_s13  ;;  %v1201_v4 = vsel %vm1151_vm1, %v4553_v13, %v4557_v44  ;;  %v1200_v54 = vsel %vm1151_vm1, %v4552_v43, %v4553_v13 }
 0x166   : > { %v4561_v42 = vpop.permute.xlu0 %4560 }
 0x167   : > { %v4563_v60 = vunpack.i.h.bf16 %v4561_v42  ;;  %v4562_v50 = vunpack.i.l.bf16 %v4561_v42 }
 0x168   : > { %4845 = vrot.lane.b32.xlu1 %v5959_v48, %s5714_s13 }
 0x169   : > { %4850 = vrot.lane.b32.xlu0 %v5966_v53, %s5713_s10  ;;  %v1203_v9 = vsel %vm1151_vm1, %v4562_v50, %v4563_v60  ;;  %v1202_v56 = vsel %vm1151_vm1, %v4558_v46, %v4562_v50 }
 0x16a   : > { %v4566_v19 = vpop.permute.xlu1 %4565  ;;  %v4050_v21 = vpack.c.bf16 %v1203_v9, %v1201_v4  ;;  %v4052_v22 = vpack.c.bf16 %v1202_v56, %v1200_v54  ;;  %v4571_v39 = vpop.permute.xlu0 %4570 }
 0x16b   : > { %v4568_v59 = vunpack.i.h.bf16 %v4566_v19  ;;  %v4567_v14 = vunpack.i.l.bf16 %v4566_v19  ;;  %v4572_v27 = vunpack.i.l.bf16 %v4571_v39  ;;  %v4573_v49 = vunpack.i.h.bf16 %v4571_v39 }
 0x16c   : > { %4855 = vrot.lane.b32.xlu1 %v5975_v63, %s5713_s10  ;;  %4051 = vmatprep.subr.bf16.mxu1 %v4050_v21 }
 0x16d   : > { %4053 = vmatpush1.bf16.msra.mxu1 %v4052_v22  ;;  %4860 = vrot.lane.b32.xlu0 %v5977_v1, %s5713_s10  ;;  %v1205_v62 = vsel %vm1151_vm1, %v4568_v59, %v4572_v27  ;;  %v1204_v26 = vsel %vm1151_vm1, %v4567_v14, %v4568_v59 }
 0x16e   : > { %v4576_v16 = vpop.permute.xlu1 %4575 }
 0x16f   : > { %v4578_v15 = vunpack.i.h.bf16 %v4576_v16  ;;  %v4577_v29 = vunpack.i.l.bf16 %v4576_v16  ;;  %v4581_v25 = vpop.permute.xlu0 %4580 }
 0x170   : > { %4865 = vrot.lane.b32.xlu1 %v5966_v53, %s5714_s13  ;;  %v4583_v11 = vunpack.i.h.bf16 %v4581_v25  ;;  %v4582_v38 = vunpack.i.l.bf16 %v4581_v25 }
 0x171   : > { %4870 = vrot.lane.b32.xlu0 %v5975_v63, %s5714_s13  ;;  %v1207_v36 = vsel %vm1151_vm1, %v4577_v29, %v4578_v15  ;;  %v1206_v61 = vsel %vm1151_vm1, %v4573_v49, %v4577_v29 }
 0x172   : > { %v4586_v6 = vpop.permute.xlu1 %4585  ;;  %v4054_v24 = vpack.c.bf16 %v1207_v36, %v1205_v62  ;;  %v4056_v30 = vpack.c.bf16 %v1206_v61, %v1204_v26  ;;  %v1572_v35 = vsel %vm1571_vm2, %v4582_v38, %v4583_v11  ;;  %v7398_v26 = vld [vmem:[#allocation3_spill] sm:$0xff] }
 0x173   : > { %v4588_v5 = vunpack.i.h.bf16 %v4586_v6  ;;  %v4587_v33 = vunpack.i.l.bf16 %v4586_v6  ;;  %v4591_v12 = vpop.permute.xlu0 %4590 }
 0x174   : > { %4875 = vrot.lane.b32.xlu1 %v5977_v1, %s5714_s13  ;;  %4055 = vmatprep.subr.bf16.mxu1 %v4054_v24  ;;  %v4593_v10 = vunpack.i.h.bf16 %v4591_v12  ;;  %v4592_v45 = vunpack.i.l.bf16 %v4591_v12 }
 0x175   : > { %4057 = vmatpush1.bf16.msra.mxu1 %v4056_v30  ;;  %4880 = vrot.lane.b32.xlu0 %v5991_v8, %s5713_s10  ;;  %v1573_v3 = vsel %vm1571_vm2, %v4583_v11, %v4587_v33 }
 0x176   : > { %v4596_v7 = vpop.permute.xlu1 %4595  ;;  %v1574_v55 = vsel %vm1571_vm2, %v4588_v5, %v4592_v45  ;;  %v1575_v51 = vsel %vm1571_vm2, %v4592_v45, %v4593_v10 }
 0x177   : > { %v4601_v13 = vpop.permute.xlu0 %4600  ;;  %v4058_v43 = vpack.c.bf16 %v1575_v51, %v1573_v3  ;;  %v4060_v44 = vpack.c.bf16 %v1574_v55, %v1572_v35  ;;  %v4598_v42 = vunpack.i.h.bf16 %v4596_v7  ;;  %v4597_v46 = vunpack.i.l.bf16 %v4596_v7  ;;  %v7399_v3 = vld [vmem:[#allocation4_spill] sm:$0xff] }
 0x178   : > { %4885 = vrot.lane.b32.xlu1 %v6000_v17, %s5713_s10  ;;  %1341 = vmatmul.mubr.f32.vlgmr.msra.gmra.mrb[0].mxu1 %v3844_v57  ;;  %v4602_v60 = vunpack.i.l.bf16 %v4601_v13  ;;  %v4603_v54 = vunpack.i.h.bf16 %v4601_v13 }
 0x179   : > { %4890 = vrot.lane.b32.xlu0 %v6002_v18, %s5713_s10  ;;  %4059 = vmatprep.subr.bf16.mxu0 %v4058_v43  ;;  %v1576_v19 = vsel %vm1571_vm2, %v4597_v46, %v4598_v42 }
 0x17a   : > { %v4606_v50 = vpop.permute.xlu1 %4605  ;;  %4061 = vmatpush1.bf16.msra.mxu0 %v4060_v44  ;;  %v1577_v22 = vsel %vm1571_vm2, %v4598_v42, %v4602_v60 }
 0x17b   : > { %v4608_v4 = vunpack.i.h.bf16 %v4606_v50  ;;  %v4607_v9 = vunpack.i.l.bf16 %v4606_v50  ;;  %v4611_v56 = vpop.permute.xlu0 %4610 }
 0x17c   : > { %4895 = vrot.lane.b32.xlu1 %v5991_v8, %s5714_s13  ;;  %v4613_v14 = vunpack.i.h.bf16 %v4611_v56  ;;  %v4612_v27 = vunpack.i.l.bf16 %v4611_v56 }
 0x17d   : > { %v1578_v21 = vsel %vm1571_vm2, %v4603_v54, %v4607_v9  ;;  %4900 = vrot.lane.b32.xlu0 %v6000_v17, %s5714_s13  ;;  %v1579_v39 = vsel %vm1571_vm2, %v4607_v9, %v4608_v4 }
 0x17e   : > { %v4616_v59 = vpop.permute.xlu1 %4615  ;;  %v4062_v16 = vpack.c.bf16 %v1579_v39, %v1577_v22  ;;  %v4064_v15 = vpack.c.bf16 %v1578_v21, %v1576_v19  ;;  %v1580_v6 = vsel %vm1571_vm2, %v4612_v27, %v4613_v14  ;;  %v7400_v39 = vld [vmem:[#allocation5_spill] sm:$0xff] }
 0x17f   : > { %v4618_v29 = vunpack.i.h.bf16 %v4616_v59  ;;  %v4617_v49 = vunpack.i.l.bf16 %v4616_v59  ;;  %v4621_v25 = vpop.permute.xlu0 %4620 }
 0x180   : > { %4905 = vrot.lane.b32.xlu1 %v6002_v18, %s5714_s13  ;;  %4063 = vmatprep.subr.bf16.mxu0 %v4062_v16  ;;  %v4623_v62 = vunpack.i.h.bf16 %v4621_v25  ;;  %v4622_v36 = vunpack.i.l.bf16 %v4621_v25 }
 0x181   : > { %4065 = vmatpush1.bf16.msra.mxu0 %v4064_v15  ;;  %4910 = vrot.lane.b32.xlu0 %v7398_v26, %s5713_s10  ;;  %v1581_v61 = vsel %vm1571_vm2, %v4613_v14, %v4617_v49 }
 0x182   : > { %v4626_v11 = vpop.permute.xlu1 %4625  ;;  %v1582_v38 = vsel %vm1571_vm2, %v4618_v29, %v4622_v36  ;;  %v1583_v24 = vsel %vm1571_vm2, %v4622_v36, %v4623_v62  ;;  %v7401_v62 = vld [vmem:[#allocation6_spill] sm:$0xff] }
 0x183   : > { %v4631_v30 = vpop.permute.xlu0 %4630  ;;  %v4066_v5 = vpack.c.bf16 %v1583_v24, %v1581_v61  ;;  %v4068_v33 = vpack.c.bf16 %v1582_v38, %v1580_v6  ;;  %v4628_v12 = vunpack.i.h.bf16 %v4626_v11  ;;  %v4627_v10 = vunpack.i.l.bf16 %v4626_v11  ;;  %v7402_v11 = vld [vmem:[#allocation7_spill] sm:$0xff] }
 0x184   : > { %4915 = vrot.lane.b32.xlu1 %v6026_v41, %s5713_s10  ;;  %v4632_v45 = vunpack.i.l.bf16 %v4631_v30  ;;  %v4633_v55 = vunpack.i.h.bf16 %v4631_v30 }
 0x185   : > { %4920 = vrot.lane.b32.xlu0 %v7399_v3, %s5713_s10  ;;  %4067 = vmatprep.subr.bf16.mxu0 %v4066_v5  ;;  %v1584_v13 = vsel %vm1571_vm2, %v4627_v10, %v4628_v12 }
 0x186   : > { %v4636_v57 = vpop.permute.xlu1 %4635  ;;  %4069 = vmatpush1.bf16.msra.mxu0 %v4068_v33  ;;  %v1585_v44 = vsel %vm1571_vm2, %v4628_v12, %v4632_v45 }
 0x187   : > { %v4638_v35 = vunpack.i.h.bf16 %v4636_v57  ;;  %v4637_v7 = vunpack.i.l.bf16 %v4636_v57  ;;  %v4641_v51 = vpop.permute.xlu0 %4640 }
 0x188   : > { %4925 = vrot.lane.b32.xlu1 %v7398_v26, %s5714_s13  ;;  %v4643_v60 = vunpack.i.h.bf16 %v4641_v51  ;;  %v4642_v50 = vunpack.i.l.bf16 %v4641_v51 }
 0x189   : > { %v1586_v43 = vsel %vm1571_vm2, %v4633_v55, %v4637_v7  ;;  %4930 = vrot.lane.b32.xlu0 %v6026_v41, %s5714_s13  ;;  %v1587_v42 = vsel %vm1571_vm2, %v4637_v7, %v4638_v35 }
 0x18a   : > { %v4646_v46 = vpop.permute.xlu1 %4645  ;;  %v4070_v4 = vpack.c.bf16 %v1587_v42, %v1585_v44  ;;  %v4072_v9 = vpack.c.bf16 %v1586_v43, %v1584_v13  ;;  %v1588_v14 = vsel %vm1571_vm2, %v4642_v50, %v4643_v60  ;;  %v7403_v50 = vld [vmem:[#allocation8_spill] sm:$0xff] }
 0x18b   : > { %v4648_v54 = vunpack.i.h.bf16 %v4646_v46  ;;  %v4647_v56 = vunpack.i.l.bf16 %v4646_v46  ;;  %v4651_v19 = vpop.permute.xlu0 %4650 }
 0x18c   : > { %4935 = vrot.lane.b32.xlu1 %v7399_v3, %s5714_s13  ;;  %4071 = vmatprep.subr.bf16.mxu0 %v4070_v4  ;;  %v4653_v21 = vunpack.i.h.bf16 %v4651_v19  ;;  %v4652_v22 = vunpack.i.l.bf16 %v4651_v19 }
 0x18d   : > { %4073 = vmatpush1.bf16.msra.mxu0 %v4072_v9  ;;  %4940 = vrot.lane.b32.xlu0 %v7400_v39, %s5713_s10  ;;  %v1589_v59 = vsel %vm1571_vm2, %v4643_v60, %v4647_v56 }
 0x18e   : > { %v4656_v27 = vpop.permute.xlu1 %4655  ;;  %v1590_v16 = vsel %vm1571_vm2, %v4648_v54, %v4652_v22  ;;  %v1591_v15 = vsel %vm1571_vm2, %v4652_v22, %v4653_v21 }
 0x18f   : > { %v4661_v29 = vpop.permute.xlu0 %4660  ;;  %v4074_v49 = vpack.c.bf16 %v1591_v15, %v1589_v59  ;;  %v4076_v25 = vpack.c.bf16 %v1590_v16, %v1588_v14  ;;  %v4658_v36 = vunpack.i.h.bf16 %v4656_v27  ;;  %v4657_v61 = vunpack.i.l.bf16 %v4656_v27  ;;  %v7404_v15 = vld [vmem:[#allocation9_spill] sm:$0xff] }
 0x190   : > { %4945 = vrot.lane.b32.xlu1 %v7401_v62, %s5713_s10  ;;  %v4662_v6 = vunpack.i.l.bf16 %v4661_v29  ;;  %v4663_v5 = vunpack.i.h.bf16 %v4661_v29 }
 0x191   : > { %4950 = vrot.lane.b32.xlu0 %v7402_v11, %s5713_s10  ;;  %4075 = vmatprep.subr.bf16.mxu0 %v4074_v49  ;;  %v1592_v12 = vsel %vm1571_vm2, %v4657_v61, %v4658_v36 }
 0x192   : > { %v4666_v38 = vpop.permute.xlu1 %4665  ;;  %4077 = vmatpush1.bf16.msra.mxu0 %v4076_v25  ;;  %v1593_v45 = vsel %vm1571_vm2, %v4658_v36, %v4662_v6 }
 0x193   : > { %v4668_v24 = vunpack.i.h.bf16 %v4666_v38  ;;  %v4667_v30 = vunpack.i.l.bf16 %v4666_v38  ;;  %v4671_v33 = vpop.permute.xlu0 %4670 }
 0x194   : > { %4955 = vrot.lane.b32.xlu1 %v7400_v39, %s5714_s13  ;;  %v4673_v7 = vunpack.i.h.bf16 %v4671_v33  ;;  %v4672_v55 = vunpack.i.l.bf16 %v4671_v33 }
 0x195   : > { %v1594_v10 = vsel %vm1571_vm2, %v4663_v5, %v4667_v30  ;;  %4960 = vrot.lane.b32.xlu0 %v7401_v62, %s5714_s13  ;;  %v1595_v57 = vsel %vm1571_vm2, %v4667_v30, %v4668_v24 }
 0x196   : > { %v4676_v35 = vpop.permute.xlu1 %4675  ;;  %v4078_v51 = vpack.c.bf16 %v1595_v57, %v1593_v45  ;;  %v4080_v13 = vpack.c.bf16 %v1594_v10, %v1592_v12  ;;  %v1596_v9 = vsel %vm1571_vm2, %v4672_v55, %v4673_v7 }
 0x197   : > { %v4678_v43 = vunpack.i.h.bf16 %v4676_v35  ;;  %v4677_v44 = vunpack.i.l.bf16 %v4676_v35  ;;  %v4681_v42 = vpop.permute.xlu0 %4680 }
 0x198   : > { %4965 = vrot.lane.b32.xlu1 %v7402_v11, %s5714_s13  ;;  %4079 = vmatprep.subr.bf16.mxu0 %v4078_v51  ;;  %v4683_v46 = vunpack.i.h.bf16 %v4681_v42  ;;  %v4682_v60 = vunpack.i.l.bf16 %v4681_v42 }
 0x199   : > { %4081 = vmatpush1.bf16.msra.mxu0 %v4080_v13  ;;  %4970 = vrot.lane.b32.xlu0 %v7403_v50, %s5713_s10  ;;  %v1597_v4 = vsel %vm1571_vm2, %v4673_v7, %v4677_v44  ;;  %v7405_v13 = vld [vmem:[#allocation10_spill] sm:$0xff] }
 0x19a   : > { %v4686_v54 = vpop.permute.xlu1 %4685  ;;  %v1598_v56 = vsel %vm1571_vm2, %v4678_v43, %v4682_v60  ;;  %v1599_v19 = vsel %vm1571_vm2, %v4682_v60, %v4683_v46 }
 0x19b   : > { %v4691_v21 = vpop.permute.xlu0 %4690  ;;  %v4082_v22 = vpack.c.bf16 %v1599_v19, %v1597_v4  ;;  %v4084_v59 = vpack.c.bf16 %v1598_v56, %v1596_v9  ;;  %v4688_v14 = vunpack.i.h.bf16 %v4686_v54  ;;  %v4687_v27 = vunpack.i.l.bf16 %v4686_v54 }
 0x19c   : > { %4975 = vrot.lane.b32.xlu1 %v6076_v28, %s5713_s10  ;;  %v4692_v16 = vunpack.i.l.bf16 %v4691_v21  ;;  %v4693_v36 = vunpack.i.h.bf16 %v4691_v21 }
 0x19d   : > { %4980 = vrot.lane.b32.xlu0 %v7404_v15, %s5713_s10  ;;  %4083 = vmatprep.subr.bf16.mxu0 %v4082_v22  ;;  %v1600_v6 = vsel %vm1571_vm2, %v4687_v27, %v4688_v14  ;;  %v7406_v22 = vld [vmem:[#allocation11_spill] sm:$0xff] }
 0x19e   : > { %v4696_v29 = vpop.permute.xlu1 %4695  ;;  %4085 = vmatpush1.bf16.msra.mxu0 %v4084_v59  ;;  %v1601_v24 = vsel %vm1571_vm2, %v4688_v14, %v4692_v16 }
 0x19f   : > { %v4698_v49 = vunpack.i.h.bf16 %v4696_v29  ;;  %v4697_v25 = vunpack.i.l.bf16 %v4696_v29  ;;  %v4701_v61 = vpop.permute.xlu0 %4700 }
 0x1a0   : > { %4985 = vrot.lane.b32.xlu1 %v7403_v50, %s5714_s13  ;;  %v4703_v33 = vunpack.i.h.bf16 %v4701_v61  ;;  %v4702_v12 = vunpack.i.l.bf16 %v4701_v61 }
 0x1a1   : > { %v1602_v38 = vsel %vm1571_vm2, %v4693_v36, %v4697_v25  ;;  %4990 = vrot.lane.b32.xlu0 %v6076_v28, %s5714_s13  ;;  %v1603_v30 = vsel %vm1571_vm2, %v4697_v25, %v4698_v49 }
 0x1a2   : > { %v4706_v5 = vpop.permute.xlu1 %4705  ;;  %v4086_v10 = vpack.c.bf16 %v1603_v30, %v1601_v24  ;;  %v4088_v45 = vpack.c.bf16 %v1602_v38, %v1600_v6  ;;  %v1604_v44 = vsel %vm1571_vm2, %v4702_v12, %v4703_v33 }
 0x1a3   : > { %v4708_v57 = vunpack.i.h.bf16 %v4706_v5  ;;  %v4707_v35 = vunpack.i.l.bf16 %v4706_v5  ;;  %v4711_v7 = vpop.permute.xlu0 %4710 }
 0x1a4   : > { %4995 = vrot.lane.b32.xlu1 %v7404_v15, %s5714_s13  ;;  %4087 = vmatprep.subr.bf16.mxu0 %v4086_v10  ;;  %v4713_v55 = vunpack.i.h.bf16 %v4711_v7  ;;  %v4712_v51 = vunpack.i.l.bf16 %v4711_v7 }
 0x1a5   : > { %4089 = vmatpush1.bf16.msra.mxu0 %v4088_v45  ;;  %5000 = vrot.lane.b32.xlu0 %v7405_v13, %s5713_s10  ;;  %v1605_v43 = vsel %vm1571_vm2, %v4703_v33, %v4707_v35  ;;  %v7407_v35 = vld [vmem:[#allocation13_spill] sm:$0xff] }
 0x1a6   : > { %v4716_v42 = vpop.permute.xlu1 %4715  ;;  %v1606_v46 = vsel %vm1571_vm2, %v4708_v57, %v4712_v51  ;;  %v1607_v60 = vsel %vm1571_vm2, %v4712_v51, %v4713_v55 }
 0x1a7   : > { %v4721_v4 = vpop.permute.xlu0 %4720  ;;  %v4090_v9 = vpack.c.bf16 %v1607_v60, %v1605_v43  ;;  %v4092_v54 = vpack.c.bf16 %v1606_v46, %v1604_v44  ;;  %v4718_v56 = vunpack.i.h.bf16 %v4716_v42  ;;  %v4717_v19 = vunpack.i.l.bf16 %v4716_v42 }
 0x1a8   : > { %5005 = vrot.lane.b32.xlu1 %v6096_v58, %s5713_s10  ;;  %v4722_v21 = vunpack.i.l.bf16 %v4721_v4  ;;  %v4723_v16 = vunpack.i.h.bf16 %v4721_v4 }
 0x1a9   : > { %5010 = vrot.lane.b32.xlu0 %v7406_v22, %s5713_s10  ;;  %4091 = vmatprep.subr.bf16.mxu0 %v4090_v9  ;;  %v1608_v49 = vsel %vm1571_vm2, %v4717_v19, %v4718_v56 }
 0x1aa   : > { %v4726_v59 = vpop.permute.xlu1 %4725  ;;  %4093 = vmatpush1.bf16.msra.mxu0 %v4092_v54  ;;  %v1609_v36 = vsel %vm1571_vm2, %v4718_v56, %v4722_v21  ;;  %v7408_v56 = vld [vmem:[#allocation12_spill] sm:$0xff] }
 0x1ab   : > { %v4728_v14 = vunpack.i.h.bf16 %v4726_v59  ;;  %v4727_v27 = vunpack.i.l.bf16 %v4726_v59  ;;  %v4731_v29 = vpop.permute.xlu0 %4730 }
 0x1ac   : > { %5015 = vrot.lane.b32.xlu1 %v7405_v13, %s5714_s13  ;;  %v4733_v38 = vunpack.i.h.bf16 %v4731_v29  ;;  %v4732_v24 = vunpack.i.l.bf16 %v4731_v29 }
 0x1ad   : > { %v1610_v25 = vsel %vm1571_vm2, %v4723_v16, %v4727_v27  ;;  %5020 = vrot.lane.b32.xlu0 %v6096_v58, %s5714_s13  ;;  %v1611_v61 = vsel %vm1571_vm2, %v4727_v27, %v4728_v14 }
 0x1ae   : > { %v4736_v6 = vpop.permute.xlu1 %4735  ;;  %v4094_v30 = vpack.c.bf16 %v1611_v61, %v1609_v36  ;;  %v4096_v5 = vpack.c.bf16 %v1610_v25, %v1608_v49  ;;  %v1612_v55 = vsel %vm1571_vm2, %v4732_v24, %v4733_v38 }
 0x1af   : > { %v4738_v33 = vunpack.i.h.bf16 %v4736_v6  ;;  %v4737_v12 = vunpack.i.l.bf16 %v4736_v6  ;;  %v4741_v10 = vpop.permute.xlu0 %4740 }
 0x1b0   : > { %5025 = vrot.lane.b32.xlu1 %v7406_v22, %s5714_s13  ;;  %4095 = vmatprep.subr.bf16.mxu0 %v4094_v30  ;;  %v4743_v45 = vunpack.i.h.bf16 %v4741_v10  ;;  %v4742_v57 = vunpack.i.l.bf16 %v4741_v10 }
 0x1b1   : > { %4097 = vmatpush1.bf16.msra.mxu0 %v4096_v5  ;;  %5030 = vrot.lane.b32.xlu0 %v7407_v35, %s5713_s10  ;;  %v1613_v7 = vsel %vm1571_vm2, %v4733_v38, %v4737_v12 }
 0x1b2   : > { %v4746_v51 = vpop.permute.xlu1 %4745  ;;  %v1614_v43 = vsel %vm1571_vm2, %v4738_v33, %v4742_v57  ;;  %v1615_v44 = vsel %vm1571_vm2, %v4742_v57, %v4743_v45  ;;  %v7409_v45 = vld [vmem:[#allocation15_spill] sm:$0xff] }
 0x1b3   : > { %v4751_v42 = vpop.permute.xlu0 %4750  ;;  %v4098_v46 = vpack.c.bf16 %v1615_v44, %v1613_v7  ;;  %v4100_v60 = vpack.c.bf16 %v1614_v43, %v1612_v55  ;;  %v4748_v4 = vunpack.i.h.bf16 %v4746_v51  ;;  %v4747_v9 = vunpack.i.l.bf16 %v4746_v51 }
 0x1b4   : > { %5035 = vrot.lane.b32.xlu1 %v6120_v40, %s5713_s10  ;;  %v4752_v54 = vunpack.i.l.bf16 %v4751_v42  ;;  %v4753_v14 = vunpack.i.h.bf16 %v4751_v42 }
 0x1b5   : > { %5040 = vrot.lane.b32.xlu0 %v7408_v56, %s5713_s10  ;;  %4099 = vmatprep.subr.bf16.mxu0 %v4098_v46  ;;  %v1616_v16 = vsel %vm1571_vm2, %v4747_v9, %v4748_v4 }
 0x1b6   : > { %v4756_v19 = vpop.permute.xlu1 %4755  ;;  %4101 = vmatpush1.bf16.msra.mxu0 %v4100_v60  ;;  %v1617_v49 = vsel %vm1571_vm2, %v4748_v4, %v4752_v54  ;;  %v7410_v54 = vld [vmem:[#allocation14_spill] sm:$0xff] }
 0x1b7   : > { %v4758_v21 = vunpack.i.h.bf16 %v4756_v19  ;;  %v4757_v59 = vunpack.i.l.bf16 %v4756_v19  ;;  %v4761_v27 = vpop.permute.xlu0 %4760 }
 0x1b8   : > { %5045 = vrot.lane.b32.xlu1 %v7407_v35, %s5714_s13  ;;  %v4763_v61 = vunpack.i.h.bf16 %v4761_v27  ;;  %v4762_v6 = vunpack.i.l.bf16 %v4761_v27 }
 0x1b9   : > { %v1618_v29 = vsel %vm1571_vm2, %v4753_v14, %v4757_v59  ;;  %5050 = vrot.lane.b32.xlu0 %v6120_v40, %s5714_s13  ;;  %v1619_v25 = vsel %vm1571_vm2, %v4757_v59, %v4758_v21 }
 0x1ba   : > { %v4766_v36 = vpop.permute.xlu1 %4765  ;;  %v4102_v38 = vpack.c.bf16 %v1619_v25, %v1617_v49  ;;  %v4104_v24 = vpack.c.bf16 %v1618_v29, %v1616_v16  ;;  %v1620_v7 = vsel %vm1571_vm2, %v4762_v6, %v4763_v61 }
 0x1bb   : > { %v4768_v30 = vunpack.i.h.bf16 %v4766_v36  ;;  %v4767_v5 = vunpack.i.l.bf16 %v4766_v36  ;;  %v4771_v33 = vpop.permute.xlu0 %4770 }
 0x1bc   : > { %5055 = vrot.lane.b32.xlu1 %v7408_v56, %s5714_s13  ;;  %4103 = vmatprep.subr.bf16.mxu0 %v4102_v38  ;;  %v4773_v12 = vunpack.i.h.bf16 %v4771_v33  ;;  %v4772_v10 = vunpack.i.l.bf16 %v4771_v33 }
 0x1bd   : > { %4105 = vmatpush1.bf16.msra.mxu0 %v4104_v24  ;;  %5060 = vrot.lane.b32.xlu0 %v7409_v45, %s5713_s10  ;;  %v1621_v57 = vsel %vm1571_vm2, %v4763_v61, %v4767_v5 }
 0x1be   : > { %v4776_v55 = vpop.permute.xlu1 %4775  ;;  %v1622_v51 = vsel %vm1571_vm2, %v4768_v30, %v4772_v10  ;;  %v1623_v43 = vsel %vm1571_vm2, %v4772_v10, %v4773_v12 }
 0x1bf   : > { %v4781_v44 = vpop.permute.xlu0 %4780  ;;  %v4106_v42 = vpack.c.bf16 %v1623_v43, %v1621_v57  ;;  %v4108_v46 = vpack.c.bf16 %v1622_v51, %v1620_v7  ;;  %v4778_v60 = vunpack.i.h.bf16 %v4776_v55  ;;  %v4777_v4 = vunpack.i.l.bf16 %v4776_v55  ;;  %v7411_v57 = vld [vmem:[#allocation17_spill] sm:$0xff]  ;;  %v3857_v55 = vld [vmem:[%s7347_s2 + $0x80] sm:$0xff] }
 0x1c0   : > { %5065 = vrot.lane.b32.xlu1 %v6140_v52, %s5713_s10  ;;  %v4782_v9 = vunpack.i.l.bf16 %v4781_v44  ;;  %v4783_v14 = vunpack.i.h.bf16 %v4781_v44 }
 0x1c1   : > { %5070 = vrot.lane.b32.xlu0 %v7410_v54, %s5713_s10  ;;  %4107 = vmatprep.subr.bf16.mxu0 %v4106_v42  ;;  %v1624_v16 = vsel %vm1571_vm2, %v4777_v4, %v4778_v60 }
 0x1c2   : > { %v4786_v19 = vpop.permute.xlu1 %4785  ;;  %4109 = vmatpush1.bf16.msra.mxu0 %v4108_v46  ;;  %v1625_v49 = vsel %vm1571_vm2, %v4778_v60, %v4782_v9 }
 0x1c3   : > { %v4788_v21 = vunpack.i.h.bf16 %v4786_v19  ;;  %v4787_v59 = vunpack.i.l.bf16 %v4786_v19  ;;  %v4791_v27 = vpop.permute.xlu0 %4790 }
 0x1c4   : > { %5075 = vrot.lane.b32.xlu1 %v7409_v45, %s5714_s13  ;;  %v4793_v61 = vunpack.i.h.bf16 %v4791_v27  ;;  %v4792_v6 = vunpack.i.l.bf16 %v4791_v27 }
 0x1c5   : > { %v1626_v29 = vsel %vm1571_vm2, %v4783_v14, %v4787_v59  ;;  %5080 = vrot.lane.b32.xlu0 %v6140_v52, %s5714_s13  ;;  %v1627_v25 = vsel %vm1571_vm2, %v4787_v59, %v4788_v21  ;;  %v7412_v14 = vld [vmem:[#allocation16_spill] sm:$0xff] }
 0x1c6   : > { %v4796_v36 = vpop.permute.xlu1 %4795  ;;  %v4110_v38 = vpack.c.bf16 %v1627_v25, %v1625_v49  ;;  %v4112_v24 = vpack.c.bf16 %v1626_v29, %v1624_v16  ;;  %v1992_v51 = vsel %vm1991_vm3, %v4792_v6, %v4793_v61 }
 0x1c7   : > { %v4798_v30 = vunpack.i.h.bf16 %v4796_v36  ;;  %v4797_v5 = vunpack.i.l.bf16 %v4796_v36  ;;  %v4801_v33 = vpop.permute.xlu0 %4800 }
 0x1c8   : > { %5085 = vrot.lane.b32.xlu1 %v7410_v54, %s5714_s13  ;;  %4111 = vmatprep.subr.bf16.mxu0 %v4110_v38  ;;  %v4803_v12 = vunpack.i.h.bf16 %v4801_v33  ;;  %v4802_v10 = vunpack.i.l.bf16 %v4801_v33 }
 0x1c9   : > { %4113 = vmatpush1.bf16.msra.mxu0 %v4112_v24  ;;  %5090 = vrot.lane.b32.xlu0 %v7411_v57, %s5713_s10  ;;  %v1993_v7 = vsel %vm1991_vm3, %v4793_v61, %v4797_v5 }
 0x1ca   : > { %v4806_v43 = vpop.permute.xlu1 %4805  ;;  %v1994_v44 = vsel %vm1991_vm3, %v4798_v30, %v4802_v10  ;;  %v1995_v42 = vsel %vm1991_vm3, %v4802_v10, %v4803_v12 }
 0x1cb   : > { %v4808_v46 = vunpack.i.h.bf16 %v4806_v43  ;;  %v4807_v60 = vunpack.i.l.bf16 %v4806_v43  ;;  %v4811_v4 = vpop.permute.xlu0 %4810  ;;  %v4114_v9 = vpack.c.bf16 %v1995_v42, %v1993_v7  ;;  %v4116_v19 = vpack.c.bf16 %v1994_v44, %v1992_v51  ;;  %v7413_v43 = vld [vmem:[#allocation19_spill] sm:$0xff] }
 0x1cc   : > { %5095 = vrot.lane.b32.xlu1 %v6160_v0, %s5713_s10  ;;  %v4813_v21 = vunpack.i.h.bf16 %v4811_v4  ;;  %v4812_v59 = vunpack.i.l.bf16 %v4811_v4  ;;  %1761 = vmatmul.mubr.f32.vlgmr.msra.gmra.mrb[8].mxu0 %v3857_v55 }
 0x1cd   : > { %5100 = vrot.lane.b32.xlu0 %v7412_v14, %s5713_s10  ;;  %4115 = vmatprep.subr.bf16.mxu1 %v4114_v9  ;;  %v2413_v27 = vsel %vm2411_vm4, %v4807_v60, %v4808_v46 }
 0x1ce   : > { %v4816_v16 = vpop.permute.xlu1 %4815  ;;  %4117 = vmatpush1.bf16.msra.mxu1 %v4116_v19  ;;  %v2415_v29 = vsel %vm2411_vm4, %v4812_v59, %v4813_v21 }
 0x1cf   : > { %v4818_v49 = vunpack.i.h.bf16 %v4816_v16  ;;  %v4817_v25 = vunpack.i.l.bf16 %v4816_v16  ;;  %v4821_v36 = vpop.permute.xlu0 %4820  ;;  %v4170_v61 = vpack.c.bf16 %v2415_v29, %v2413_v27 }
 0x1d0   : > { %5105 = vrot.lane.b32.xlu1 %v7411_v57, %s5714_s13  ;;  %v4823_v24 = vunpack.i.h.bf16 %v4821_v36  ;;  %v4822_v30 = vunpack.i.l.bf16 %v4821_v36 }
 0x1d1   : > { %v2412_v6 = vsel %vm2411_vm4, %v4817_v25, %v4807_v60  ;;  %v2414_v38 = vsel %vm2411_vm4, %v4818_v49, %v4812_v59  ;;  %5110 = vrot.lane.b32.xlu0 %v6160_v0, %s5714_s13  ;;  %4171 = vmatprep.subr.bf16.mxu0 %v4170_v61  ;;  %v7414_v49 = vld [vmem:[#allocation18_spill] sm:$0xff] }
 0x1d2   : > { %v4826_v5 = vpop.permute.xlu1 %4825  ;;  %v4172_v33 = vpack.c.bf16 %v2414_v38, %v2412_v6  ;;  %v1997_v44 = vsel %vm1991_vm3, %v4822_v30, %v4823_v24 }
 0x1d3   : > { %v4828_v12 = vunpack.i.h.bf16 %v4826_v5  ;;  %v4827_v10 = vunpack.i.l.bf16 %v4826_v5  ;;  %v4831_v7 = vpop.permute.xlu0 %4830 }
 0x1d4   : > { %5115 = vrot.lane.b32.xlu1 %v7412_v14, %s5714_s13  ;;  %4173 = vmatpush1.bf16.msra.mxu0 %v4172_v33  ;;  %v4833_v55 = vunpack.i.h.bf16 %v4831_v7  ;;  %v4832_v51 = vunpack.i.l.bf16 %v4831_v7 }
 0x1d5   : > { %5120 = vrot.lane.b32.xlu0 %v7413_v43, %s5713_s10  ;;  %v1999_v42 = vsel %vm1991_vm3, %v4827_v10, %v4828_v12 }
 0x1d6   : > { %v4836_v46 = vpop.permute.xlu1 %4835  ;;  %v1998_v60 = vsel %vm1991_vm3, %v4833_v55, %v4827_v10  ;;  %v1996_v4 = vsel %vm1991_vm3, %v4832_v51, %v4822_v30  ;;  %v4118_v9 = vpack.c.bf16 %v1999_v42, %v1997_v44 }
 0x1d7   : > { %v4838_v19 = vunpack.i.h.bf16 %v4836_v46  ;;  %v4837_v21 = vunpack.i.l.bf16 %v4836_v46  ;;  %v4841_v59 = vpop.permute.xlu0 %4840  ;;  %v4120_v27 = vpack.c.bf16 %v1998_v60, %v1996_v4  ;;  %v7415_v4 = vld [vmem:[#allocation21_spill] sm:$0xff] }
 0x1d8   : > { %5125 = vrot.lane.b32.xlu1 %v6180_v20, %s5713_s10  ;;  %4119 = vmatprep.subr.bf16.mxu1 %v4118_v9  ;;  %v4843_v16 = vunpack.i.h.bf16 %v4841_v59  ;;  %v4842_v29 = vunpack.i.l.bf16 %v4841_v59 }
 0x1d9   : > { %5130 = vrot.lane.b32.xlu0 %v7414_v49, %s5713_s10  ;;  %4121 = vmatpush1.bf16.msra.mxu1 %v4120_v27  ;;  %v2417_v25 = vsel %vm2411_vm4, %v4837_v21, %v4838_v19 }
 0x1da   : > { %v4846_v36 = vpop.permute.xlu1 %4845  ;;  %v2419_v61 = vsel %vm2411_vm4, %v4842_v29, %v4843_v16 }
 0x1db   : > { %v4848_v6 = vunpack.i.h.bf16 %v4846_v36  ;;  %v4847_v38 = vunpack.i.l.bf16 %v4846_v36  ;;  %v4851_v24 = vpop.permute.xlu0 %4850  ;;  %v4174_v30 = vpack.c.bf16 %v2419_v61, %v2417_v25 }
 0x1dc   : > { %5135 = vrot.lane.b32.xlu1 %v7413_v43, %s5714_s13  ;;  %v4853_v12 = vunpack.i.h.bf16 %v4851_v24  ;;  %v4852_v10 = vunpack.i.l.bf16 %v4851_v24  ;;  %v7416_v24 = vld [vmem:[#allocation20_spill] sm:$0xff] }
 0x1dd   : > { %v2416_v5 = vsel %vm2411_vm4, %v4847_v38, %v4837_v21  ;;  %v2418_v33 = vsel %vm2411_vm4, %v4848_v6, %v4842_v29  ;;  %5140 = vrot.lane.b32.xlu0 %v6180_v20, %s5714_s13  ;;  %4175 = vmatprep.subr.bf16.mxu0 %v4174_v30 }
 0x1de   : > { %v4856_v7 = vpop.permute.xlu1 %4855  ;;  %v4176_v55 = vpack.c.bf16 %v2418_v33, %v2416_v5  ;;  %v2001_v9 = vsel %vm1991_vm3, %v4852_v10, %v4853_v12 }
 0x1df   : > { %v4858_v51 = vunpack.i.h.bf16 %v4856_v7  ;;  %v4857_v44 = vunpack.i.l.bf16 %v4856_v7  ;;  %v4861_v42 = vpop.permute.xlu0 %4860 }
 0x1e0   : > { %5145 = vrot.lane.b32.xlu1 %v7414_v49, %s5714_s13  ;;  %4177 = vmatpush1.bf16.msra.mxu0 %v4176_v55  ;;  %v4863_v46 = vunpack.i.h.bf16 %v4861_v42  ;;  %v4862_v60 = vunpack.i.l.bf16 %v4861_v42 }
 0x1e1   : > { %5150 = vrot.lane.b32.xlu0 %v7415_v4, %s5713_s10  ;;  %v2003_v19 = vsel %vm1991_vm3, %v4857_v44, %v4858_v51 }
 0x1e2   : > { %v4866_v21 = vpop.permute.xlu1 %4865  ;;  %v2002_v59 = vsel %vm1991_vm3, %v4863_v46, %v4857_v44  ;;  %v2000_v27 = vsel %vm1991_vm3, %v4862_v60, %v4852_v10  ;;  %v4122_v16 = vpack.c.bf16 %v2003_v19, %v2001_v9  ;;  %v3847_v60 = vld [vmem:[%s7347_s2 + $0x58] sm:$0xff] }
 0x1e3   : > { %v4868_v29 = vunpack.i.h.bf16 %v4866_v21  ;;  %v4867_v25 = vunpack.i.l.bf16 %v4866_v21  ;;  %v4871_v36 = vpop.permute.xlu0 %4870  ;;  %v4124_v61 = vpack.c.bf16 %v2002_v59, %v2000_v27  ;;  %3853 = vmatprep.mubr.msk.f32.mxu1 %vm676_vm0, %v3847_v60  ;;  %v3846_v21 = vld [vmem:[%s7347_s2 + $0x50] sm:$0xff] }
 0x1e4   : > { %5155 = vrot.lane.b32.xlu1 %v6200_v34, %s5713_s10  ;;  %4123 = vmatprep.subr.bf16.mxu1 %v4122_v16  ;;  %v4873_v6 = vunpack.i.h.bf16 %v4871_v36  ;;  %v4872_v38 = vunpack.i.l.bf16 %v4871_v36  ;;  %v7417_v36 = vld [vmem:[#allocation23_spill] sm:$0xff] }
 0x1e5   : > { %5160 = vrot.lane.b32.xlu0 %v7416_v24, %s5713_s10  ;;  %4125 = vmatpush1.bf16.msra.mxu1 %v4124_v61  ;;  %v2421_v30 = vsel %vm2411_vm4, %v4867_v25, %v4868_v29 }
 0x1e6   : > { %v4876_v5 = vpop.permute.xlu1 %4875  ;;  %v2423_v33 = vsel %vm2411_vm4, %v4872_v38, %v4873_v6  ;;  %1347 = vmatmul.mubr.f32.gmra.mrb[2].mxu1 %v3846_v21  ;;  %v7418_v21 = vld [vmem:[#allocation22_spill] sm:$0xff] }
 0x1e7   : > { %v4878_v12 = vunpack.i.h.bf16 %v4876_v5  ;;  %v4877_v10 = vunpack.i.l.bf16 %v4876_v5  ;;  %v4881_v7 = vpop.permute.xlu0 %4880  ;;  %v4178_v55 = vpack.c.bf16 %v2423_v33, %v2421_v30  ;;  %v3849_v30 = vld [vmem:[%s7347_s2 + $0x68] sm:$0xff] }
 0x1e8   : > { %5165 = vrot.lane.b32.xlu1 %v7415_v4, %s5714_s13  ;;  %v4883_v42 = vunpack.i.h.bf16 %v4881_v7  ;;  %v4882_v46 = vunpack.i.l.bf16 %v4881_v7  ;;  %v3859_v7 = vld [vmem:[%s7347_s2 + $0x90] sm:$0xff]  ;;  %3854 = vmatprep.mubr.msk.f32.mxu1 %vm676_vm0, %v3849_v30 }
 0x1e9   : > { %v2420_v51 = vsel %vm2411_vm4, %v4877_v10, %v4867_v25  ;;  %v2422_v44 = vsel %vm2411_vm4, %v4878_v12, %v4872_v38  ;;  %5170 = vrot.lane.b32.xlu0 %v6200_v34, %s5714_s13  ;;  %4179 = vmatprep.subr.bf16.mxu0 %v4178_v55  ;;  %v3860_v38 = vld [vmem:[%s7347_s2 + $0x98] sm:$0xff]  ;;  %v3848_v55 = vld [vmem:[%s7347_s2 + $0x60] sm:$0xff] }
 0x1ea   : > { %v4886_v9 = vpop.permute.xlu1 %4885  ;;  %v4180_v19 = vpack.c.bf16 %v2422_v44, %v2420_v51  ;;  %v2005_v61 = vsel %vm1991_vm3, %v4882_v46, %v4883_v42  ;;  %3866 = vmatprep.mubr.msk.f32.mxu0 %vm676_vm0, %v3860_v38  ;;  %1353 = vmatmul.mubr.f32.gmra.mrb[4].mxu1 %v3848_v55 }
 0x1eb   : > { %v4888_v59 = vunpack.i.h.bf16 %v4886_v9  ;;  %v4887_v27 = vunpack.i.l.bf16 %v4886_v9  ;;  %v4891_v16 = vpop.permute.xlu0 %4890  ;;  %1767 = vmatmul.mubr.f32.gmra.mrb[10].mxu0 %v3859_v7 }
 0x1ec   : > { %5175 = vrot.lane.b32.xlu1 %v7416_v24, %s5714_s13  ;;  %4181 = vmatpush1.bf16.msra.mxu0 %v4180_v19  ;;  %v4893_v29 = vunpack.i.h.bf16 %v4891_v16  ;;  %v4892_v25 = vunpack.i.l.bf16 %v4891_v16  ;;  %v3862_v19 = vld [vmem:[%s7347_s2 + $0xa8] sm:$0xff] }
 0x1ed   : > { %5180 = vrot.lane.b32.xlu0 %v7417_v36, %s5713_s10  ;;  %v2007_v6 = vsel %vm1991_vm3, %v4887_v27, %v4888_v59  ;;  %3867 = vmatprep.mubr.msk.f32.mxu0 %vm676_vm0, %v3862_v19 }
 0x1ee   : > { %v4896_v5 = vpop.permute.xlu1 %4895  ;;  %v2006_v33 = vsel %vm1991_vm3, %v4893_v29, %v4887_v27  ;;  %v2004_v12 = vsel %vm1991_vm3, %v4892_v25, %v4882_v46  ;;  %v4126_v10 = vpack.c.bf16 %v2007_v6, %v2005_v61  ;;  %v3851_v27 = vld [vmem:[%s7347_s2 + $0x78] sm:$0xff]  ;;  %v3861_v25 = vld [vmem:[%s7347_s2 + $0xa0] sm:$0xff]  ;;  %v3850_v61 = vld [vmem:[%s7347_s2 + $0x70] sm:$0xff] }
 0x1ef   : > { %v4898_v51 = vunpack.i.h.bf16 %v4896_v5  ;;  %v4897_v44 = vunpack.i.l.bf16 %v4896_v5  ;;  %v4901_v42 = vpop.permute.xlu0 %4900  ;;  %v4128_v60 = vpack.c.bf16 %v2006_v33, %v2004_v12  ;;  %3855 = vmatprep.mubr.msk.f32.mxu1 %vm676_vm0, %v3851_v27  ;;  %1773 = vmatmul.mubr.f32.gmra.mrb[12].mxu0 %v3861_v25  ;;  %v3864_v33 = vld [vmem:[%s7347_s2 + $0xb8] sm:$0xff]  ;;  %v3884_v25 = vld [vmem:[%s7347_s2 + $0x108] sm:$0xff] }
 0x1f0   : > { %5185 = vrot.lane.b32.xlu1 %v6220_v2, %s5713_s10  ;;  %4127 = vmatprep.subr.bf16.mxu1 %v4126_v10  ;;  %v4903_v46 = vunpack.i.h.bf16 %v4901_v42  ;;  %v4902_v9 = vunpack.i.l.bf16 %v4901_v42 }
 0x1f1   : > { %5190 = vrot.lane.b32.xlu0 %v7418_v21, %s5713_s10  ;;  %4129 = vmatpush1.bf16.msra.mxu1 %v4128_v60  ;;  %v2425_v59 = vsel %vm2411_vm4, %v4897_v44, %v4898_v51  ;;  %v3871_v51 = vld [vmem:[%s7347_s2 + $0xc8] sm:$0xff] }
 0x1f2   : > { %v4906_v16 = vpop.permute.xlu1 %4905  ;;  %v2427_v29 = vsel %vm2411_vm4, %v4902_v9, %v4903_v46  ;;  %1359 = vmatmul.mubr.f32.gmra.mrb[6].mxu1 %v3850_v61  ;;  %3868 = vmatprep.mubr.msk.f32.mxu0 %vm676_vm0, %v3864_v33 }
 0x1f3   : > { %v4908_v6 = vunpack.i.h.bf16 %v4906_v16  ;;  %v4907_v38 = vunpack.i.l.bf16 %v4906_v16  ;;  %v4911_v30 = vpop.permute.xlu0 %4910  ;;  %v4182_v5 = vpack.c.bf16 %v2427_v29, %v2425_v59  ;;  %3878 = vmatprep.mubr.msk.f32.mxu1 %vm676_vm0, %v3871_v51 }
 0x1f4   : > { %5195 = vrot.lane.b32.xlu1 %v7417_v36, %s5714_s13  ;;  %v4913_v7 = vunpack.i.h.bf16 %v4911_v30  ;;  %v4912_v55 = vunpack.i.l.bf16 %v4911_v30 }
 0x1f5   : > { %v2424_v12 = vsel %vm2411_vm4, %v4907_v38, %v4897_v44  ;;  %v2426_v10 = vsel %vm2411_vm4, %v4908_v6, %v4902_v9  ;;  %5200 = vrot.lane.b32.xlu0 %v6220_v2, %s5714_s13  ;;  %4183 = vmatprep.subr.bf16.mxu0 %v4182_v5  ;;  %v3863_v44 = vld [vmem:[%s7347_s2 + $0xb0] sm:$0xff] }
 0x1f6   : > { %v4916_v42 = vpop.permute.xlu1 %4915  ;;  %v4184_v60 = vpack.c.bf16 %v2426_v10, %v2424_v12  ;;  %1779 = vmatmul.mubr.f32.gmra.mrb[14].mxu0 %v3863_v44  ;;  %v2009_v16 = vsel %vm1991_vm3, %v4912_v55, %v4913_v7 }
 0x1f7   : > { %v4918_v46 = vunpack.i.h.bf16 %v4916_v42  ;;  %v4917_v9 = vunpack.i.l.bf16 %v4916_v42  ;;  %v4921_v19 = vpop.permute.xlu0 %4920  ;;  %3891 = vmatprep.mubr.msk.f32.mxu0 %vm676_vm0, %v3884_v25 }
 0x1f8   : > { %5205 = vrot.lane.b32.xlu1 %v7418_v21, %s5714_s13  ;;  %4185 = vmatpush1.bf16.msra.mxu0 %v4184_v60  ;;  %v4923_v59 = vunpack.i.h.bf16 %v4921_v19  ;;  %v4922_v27 = vunpack.i.l.bf16 %v4921_v19  ;;  %s5716_s13 = smov 122  }
 0x1f9   : > { %5210 = vrot.lane.b32.xlu0 %v5940_v31, %s5715_s27  ;;  %v2011_v29 = vsel %vm1991_vm3, %v4917_v9, %v4918_v46 }
 0x1fa   : > { %v4926_v61 = vpop.permute.xlu1 %4925  ;;  %v2010_v6 = vsel %vm1991_vm3, %v4923_v59, %v4917_v9  ;;  %v2008_v38 = vsel %vm1991_vm3, %v4922_v27, %v4912_v55  ;;  %v4130_v30 = vpack.c.bf16 %v2011_v29, %v2009_v16 }
 0x1fb   : > { %v4928_v5 = vunpack.i.h.bf16 %v4926_v61  ;;  %v4927_v33 = vunpack.i.l.bf16 %v4926_v61  ;;  %v4931_v12 = vpop.permute.xlu0 %4930  ;;  %v4132_v10 = vpack.c.bf16 %v2010_v6, %v2008_v38 }
 0x1fc   : > { %5215 = vrot.lane.b32.xlu1 %v5942_v32, %s5715_s27  ;;  %4131 = vmatprep.subr.bf16.mxu1 %v4130_v30  ;;  %v4933_v7 = vunpack.i.h.bf16 %v4931_v12  ;;  %v4932_v51 = vunpack.i.l.bf16 %v4931_v12 }
 0x1fd   : > { %5220 = vrot.lane.b32.xlu0 %v5932_v23, %s5715_s27  ;;  %4133 = vmatpush1.bf16.msra.mxu1 %v4132_v10  ;;  %v2429_v42 = vsel %vm2411_vm4, %v4927_v33, %v4928_v5 }
 0x1fe   : > { %v4936_v55 = vpop.permute.xlu1 %4935  ;;  %v2431_v60 = vsel %vm2411_vm4, %v4932_v51, %v4933_v7 }
 0x1ff   : > { %v4938_v44 = vunpack.i.h.bf16 %v4936_v55  ;;  %v4937_v46 = vunpack.i.l.bf16 %v4936_v55  ;;  %v4941_v9 = vpop.permute.xlu0 %4940  ;;  %v4186_v19 = vpack.c.bf16 %v2431_v60, %v2429_v42 }
 0x200   : > { %5225 = vrot.lane.b32.xlu1 %v5940_v31, %s5716_s13  ;;  %v4943_v16 = vunpack.i.h.bf16 %v4941_v9  ;;  %v4942_v29 = vunpack.i.l.bf16 %v4941_v9 }
 0x201   : > { %v2428_v59 = vsel %vm2411_vm4, %v4937_v46, %v4927_v33  ;;  %v2430_v27 = vsel %vm2411_vm4, %v4938_v44, %v4932_v51  ;;  %5230 = vrot.lane.b32.xlu0 %v5942_v32, %s5716_s13  ;;  %4187 = vmatprep.subr.bf16.mxu0 %v4186_v19 }
 0x202   : > { %v4946_v25 = vpop.permute.xlu1 %4945  ;;  %v4188_v61 = vpack.c.bf16 %v2430_v27, %v2428_v59  ;;  %v2013_v33 = vsel %vm1991_vm3, %v4942_v29, %v4943_v16 }
 0x203   : > { %v4948_v6 = vunpack.i.h.bf16 %v4946_v25  ;;  %v4947_v38 = vunpack.i.l.bf16 %v4946_v25  ;;  %v4951_v30 = vpop.permute.xlu0 %4950 }
 0x204   : > { %5235 = vrot.lane.b32.xlu1 %v5932_v23, %s5716_s13  ;;  %4189 = vmatpush1.bf16.msra.mxu0 %v4188_v61  ;;  %v4953_v31 = vunpack.i.h.bf16 %v4951_v30  ;;  %v4952_v5 = vunpack.i.l.bf16 %v4951_v30 }
 0x205   : > { %5240 = vrot.lane.b32.xlu0 %v5950_v37, %s5715_s27  ;;  %v2015_v12 = vsel %vm1991_vm3, %v4947_v38, %v4948_v6 }
 0x206   : > { %v4956_v32 = vpop.permute.xlu1 %4955  ;;  %v2014_v10 = vsel %vm1991_vm3, %v4953_v31, %v4947_v38  ;;  %v2012_v7 = vsel %vm1991_vm3, %v4952_v5, %v4942_v29  ;;  %v4134_v51 = vpack.c.bf16 %v2015_v12, %v2013_v33 }
 0x207   : > { %v4958_v42 = vunpack.i.h.bf16 %v4956_v32  ;;  %v4957_v55 = vunpack.i.l.bf16 %v4956_v32  ;;  %v4961_v60 = vpop.permute.xlu0 %4960  ;;  %v4136_v23 = vpack.c.bf16 %v2014_v10, %v2012_v7 }
 0x208   : > { %5245 = vrot.lane.b32.xlu1 %v5957_v47, %s5715_s27  ;;  %4135 = vmatprep.subr.bf16.mxu1 %v4134_v51  ;;  %v4963_v44 = vunpack.i.h.bf16 %v4961_v60  ;;  %v4962_v46 = vunpack.i.l.bf16 %v4961_v60 }
 0x209   : > { %5250 = vrot.lane.b32.xlu0 %v5959_v48, %s5715_s27  ;;  %4137 = vmatpush1.bf16.msra.mxu1 %v4136_v23  ;;  %v2433_v9 = vsel %vm2411_vm4, %v4957_v55, %v4958_v42 }
 0x20a   : > { %v4966_v19 = vpop.permute.xlu1 %4965  ;;  %v2435_v59 = vsel %vm2411_vm4, %v4962_v46, %v4963_v44 }
 0x20b   : > { %v4968_v27 = vunpack.i.h.bf16 %v4966_v19  ;;  %v4967_v16 = vunpack.i.l.bf16 %v4966_v19  ;;  %v4971_v29 = vpop.permute.xlu0 %4970  ;;  %v4190_v25 = vpack.c.bf16 %v2435_v59, %v2433_v9 }
 0x20c   : > { %5255 = vrot.lane.b32.xlu1 %v5950_v37, %s5716_s13  ;;  %v4973_v38 = vunpack.i.h.bf16 %v4971_v29  ;;  %v4972_v30 = vunpack.i.l.bf16 %v4971_v29 }
 0x20d   : > { %v2432_v61 = vsel %vm2411_vm4, %v4967_v16, %v4957_v55  ;;  %v2434_v6 = vsel %vm2411_vm4, %v4968_v27, %v4962_v46  ;;  %5260 = vrot.lane.b32.xlu0 %v5957_v47, %s5716_s13  ;;  %4191 = vmatprep.subr.bf16.mxu0 %v4190_v25 }
 0x20e   : > { %v4976_v31 = vpop.permute.xlu1 %4975  ;;  %v4192_v5 = vpack.c.bf16 %v2434_v6, %v2432_v61  ;;  %v2017_v7 = vsel %vm1991_vm3, %v4972_v30, %v4973_v38 }
 0x20f   : > { %v4978_v33 = vunpack.i.h.bf16 %v4976_v31  ;;  %v4977_v12 = vunpack.i.l.bf16 %v4976_v31  ;;  %v4981_v32 = vpop.permute.xlu0 %4980 }
 0x210   : > { %5265 = vrot.lane.b32.xlu1 %v5959_v48, %s5716_s13  ;;  %4193 = vmatpush1.bf16.msra.mxu0 %v4192_v5  ;;  %v4983_v37 = vunpack.i.h.bf16 %v4981_v32  ;;  %v4982_v10 = vunpack.i.l.bf16 %v4981_v32 }
 0x211   : > { %5270 = vrot.lane.b32.xlu0 %v5966_v53, %s5715_s27  ;;  %v2019_v51 = vsel %vm1991_vm3, %v4977_v12, %v4978_v33 }
 0x212   : > { %v4986_v47 = vpop.permute.xlu1 %4985  ;;  %v2018_v42 = vsel %vm1991_vm3, %v4983_v37, %v4977_v12  ;;  %v2016_v55 = vsel %vm1991_vm3, %v4982_v10, %v4972_v30  ;;  %v4138_v60 = vpack.c.bf16 %v2019_v51, %v2017_v7 }
 0x213   : > { %v4988_v23 = vunpack.i.h.bf16 %v4986_v47  ;;  %v4987_v44 = vunpack.i.l.bf16 %v4986_v47  ;;  %v4991_v46 = vpop.permute.xlu0 %4990  ;;  %v4140_v48 = vpack.c.bf16 %v2018_v42, %v2016_v55 }
 0x214   : > { %5275 = vrot.lane.b32.xlu1 %v5975_v63, %s5715_s27  ;;  %4139 = vmatprep.subr.bf16.mxu1 %v4138_v60  ;;  %v4993_v9 = vunpack.i.h.bf16 %v4991_v46  ;;  %v4992_v19 = vunpack.i.l.bf16 %v4991_v46 }
 0x215   : > { %5280 = vrot.lane.b32.xlu0 %v5977_v1, %s5715_s27  ;;  %4141 = vmatpush1.bf16.msra.mxu1 %v4140_v48  ;;  %v2437_v59 = vsel %vm2411_vm4, %v4987_v44, %v4988_v23 }
 0x216   : > { %v4996_v27 = vpop.permute.xlu1 %4995  ;;  %v2439_v16 = vsel %vm2411_vm4, %v4992_v19, %v4993_v9 }
 0x217   : > { %v4998_v29 = vunpack.i.h.bf16 %v4996_v27  ;;  %v4997_v25 = vunpack.i.l.bf16 %v4996_v27  ;;  %v5001_v61 = vpop.permute.xlu0 %5000  ;;  %v4194_v6 = vpack.c.bf16 %v2439_v16, %v2437_v59 }
 0x218   : > { %5285 = vrot.lane.b32.xlu1 %v5966_v53, %s5716_s13  ;;  %v5003_v31 = vunpack.i.h.bf16 %v5001_v61  ;;  %v5002_v5 = vunpack.i.l.bf16 %v5001_v61 }
 0x219   : > { %v2436_v38 = vsel %vm2411_vm4, %v4997_v25, %v4987_v44  ;;  %v2438_v30 = vsel %vm2411_vm4, %v4998_v29, %v4992_v19  ;;  %5290 = vrot.lane.b32.xlu0 %v5975_v63, %s5716_s13  ;;  %4195 = vmatprep.subr.bf16.mxu0 %v4194_v6 }
 0x21a   : > { %v5006_v33 = vpop.permute.xlu1 %5005  ;;  %v4196_v12 = vpack.c.bf16 %v2438_v30, %v2436_v38  ;;  %v2021_v51 = vsel %vm1991_vm3, %v5002_v5, %v5003_v31 }
 0x21b   : > { %v5008_v32 = vunpack.i.h.bf16 %v5006_v33  ;;  %v5007_v37 = vunpack.i.l.bf16 %v5006_v33  ;;  %v5011_v10 = vpop.permute.xlu0 %5010 }
 0x21c   : > { %5295 = vrot.lane.b32.xlu1 %v5977_v1, %s5716_s13  ;;  %4197 = vmatpush1.bf16.msra.mxu0 %v4196_v12  ;;  %v5013_v53 = vunpack.i.h.bf16 %v5011_v10  ;;  %v5012_v7 = vunpack.i.l.bf16 %v5011_v10 }
 0x21d   : > { %5300 = vrot.lane.b32.xlu0 %v5991_v8, %s5715_s27  ;;  %v2023_v47 = vsel %vm1991_vm3, %v5007_v37, %v5008_v32 }
 0x21e   : > { %v5016_v63 = vpop.permute.xlu1 %5015  ;;  %v2022_v42 = vsel %vm1991_vm3, %v5013_v53, %v5007_v37  ;;  %v2020_v55 = vsel %vm1991_vm3, %v5012_v7, %v5002_v5  ;;  %v4142_v60 = vpack.c.bf16 %v2023_v47, %v2021_v51 }
 0x21f   : > { %v5018_v23 = vunpack.i.h.bf16 %v5016_v63  ;;  %v5017_v44 = vunpack.i.l.bf16 %v5016_v63  ;;  %v5021_v46 = vpop.permute.xlu0 %5020  ;;  %v4144_v1 = vpack.c.bf16 %v2022_v42, %v2020_v55 }
 0x220   : > { %5305 = vrot.lane.b32.xlu1 %v6000_v17, %s5715_s27  ;;  %4143 = vmatprep.subr.bf16.mxu1 %v4142_v60  ;;  %v5023_v48 = vunpack.i.h.bf16 %v5021_v46  ;;  %v5022_v9 = vunpack.i.l.bf16 %v5021_v46 }
 0x221   : > { %5310 = vrot.lane.b32.xlu0 %v6002_v18, %s5715_s27  ;;  %4145 = vmatpush1.bf16.msra.mxu1 %v4144_v1  ;;  %v2441_v19 = vsel %vm2411_vm4, %v5017_v44, %v5018_v23 }
 0x222   : > { %v5026_v59 = vpop.permute.xlu1 %5025  ;;  %v2443_v27 = vsel %vm2411_vm4, %v5022_v9, %v5023_v48 }
 0x223   : > { %v5028_v16 = vunpack.i.h.bf16 %v5026_v59  ;;  %v5027_v29 = vunpack.i.l.bf16 %v5026_v59  ;;  %v5031_v25 = vpop.permute.xlu0 %5030  ;;  %v4198_v61 = vpack.c.bf16 %v2443_v27, %v2441_v19 }
 0x224   : > { %5315 = vrot.lane.b32.xlu1 %v5991_v8, %s5716_s13  ;;  %v5033_v30 = vunpack.i.h.bf16 %v5031_v25  ;;  %v5032_v31 = vunpack.i.l.bf16 %v5031_v25 }
 0x225   : > { %v2440_v6 = vsel %vm2411_vm4, %v5027_v29, %v5017_v44  ;;  %v2442_v38 = vsel %vm2411_vm4, %v5028_v16, %v5022_v9  ;;  %5320 = vrot.lane.b32.xlu0 %v6000_v17, %s5716_s13  ;;  %4199 = vmatprep.subr.bf16.mxu0 %v4198_v61 }
 0x226   : > { %v5036_v5 = vpop.permute.xlu1 %5035  ;;  %v4200_v33 = vpack.c.bf16 %v2442_v38, %v2440_v6  ;;  %v2025_v53 = vsel %vm1991_vm3, %v5032_v31, %v5033_v30 }
 0x227   : > { %v5038_v12 = vunpack.i.h.bf16 %v5036_v5  ;;  %v5037_v32 = vunpack.i.l.bf16 %v5036_v5  ;;  %v5041_v37 = vpop.permute.xlu0 %5040 }
 0x228   : > { %5325 = vrot.lane.b32.xlu1 %v6002_v18, %s5716_s13  ;;  %4201 = vmatpush1.bf16.msra.mxu0 %v4200_v33  ;;  %v5043_v8 = vunpack.i.h.bf16 %v5041_v37  ;;  %v5042_v10 = vunpack.i.l.bf16 %v5041_v37 }
 0x229   : > { %5330 = vrot.lane.b32.xlu0 %v7398_v26, %s5715_s27  ;;  %v2027_v7 = vsel %vm1991_vm3, %v5037_v32, %v5038_v12 }
 0x22a   : > { %v5046_v17 = vpop.permute.xlu1 %5045  ;;  %v2026_v51 = vsel %vm1991_vm3, %v5043_v8, %v5037_v32  ;;  %v2024_v47 = vsel %vm1991_vm3, %v5042_v10, %v5032_v31  ;;  %v4146_v63 = vpack.c.bf16 %v2027_v7, %v2025_v53 }
 0x22b   : > { %v5048_v42 = vunpack.i.h.bf16 %v5046_v17  ;;  %v5047_v55 = vunpack.i.l.bf16 %v5046_v17  ;;  %v5051_v60 = vpop.permute.xlu0 %5050  ;;  %v4148_v18 = vpack.c.bf16 %v2026_v51, %v2024_v47 }
 0x22c   : > { %5335 = vrot.lane.b32.xlu1 %v6026_v41, %s5715_s27  ;;  %4147 = vmatprep.subr.bf16.mxu1 %v4146_v63  ;;  %v5053_v23 = vunpack.i.h.bf16 %v5051_v60  ;;  %v5052_v44 = vunpack.i.l.bf16 %v5051_v60 }
 0x22d   : > { %5340 = vrot.lane.b32.xlu0 %v7399_v3, %s5715_s27  ;;  %4149 = vmatpush1.bf16.msra.mxu1 %v4148_v18  ;;  %v2445_v46 = vsel %vm2411_vm4, %v5047_v55, %v5048_v42 }
 0x22e   : > { %v5056_v1 = vpop.permute.xlu1 %5055  ;;  %v2447_v48 = vsel %vm2411_vm4, %v5052_v44, %v5053_v23 }
 0x22f   : > { %v5058_v9 = vunpack.i.h.bf16 %v5056_v1  ;;  %v5057_v19 = vunpack.i.l.bf16 %v5056_v1  ;;  %v5061_v59 = vpop.permute.xlu0 %5060  ;;  %v4202_v27 = vpack.c.bf16 %v2447_v48, %v2445_v46 }
 0x230   : > { %5345 = vrot.lane.b32.xlu1 %v7398_v26, %s5716_s13  ;;  %v5063_v25 = vunpack.i.h.bf16 %v5061_v59  ;;  %v5062_v61 = vunpack.i.l.bf16 %v5061_v59 }
 0x231   : > { %v2444_v16 = vsel %vm2411_vm4, %v5057_v19, %v5047_v55  ;;  %v2446_v29 = vsel %vm2411_vm4, %v5058_v9, %v5052_v44  ;;  %5350 = vrot.lane.b32.xlu0 %v6026_v41, %s5716_s13  ;;  %4203 = vmatprep.subr.bf16.mxu0 %v4202_v27 }
 0x232   : > { %v5066_v6 = vpop.permute.xlu1 %5065  ;;  %v4204_v38 = vpack.c.bf16 %v2446_v29, %v2444_v16  ;;  %v2029_v12 = vsel %vm1991_vm3, %v5062_v61, %v5063_v25 }
 0x233   : > { %v5068_v30 = vunpack.i.h.bf16 %v5066_v6  ;;  %v5067_v31 = vunpack.i.l.bf16 %v5066_v6  ;;  %v5071_v5 = vpop.permute.xlu0 %5070 }
 0x234   : > { %5355 = vrot.lane.b32.xlu1 %v7399_v3, %s5716_s13  ;;  %4205 = vmatpush1.bf16.msra.mxu0 %v4204_v38  ;;  %v5073_v26 = vunpack.i.h.bf16 %v5071_v5  ;;  %v5072_v33 = vunpack.i.l.bf16 %v5071_v5 }
 0x235   : > { %5360 = vrot.lane.b32.xlu0 %v7400_v39, %s5715_s27  ;;  %v2031_v32 = vsel %vm1991_vm3, %v5067_v31, %v5068_v30 }
 0x236   : > { %v5076_v41 = vpop.permute.xlu1 %5075  ;;  %v2030_v37 = vsel %vm1991_vm3, %v5073_v26, %v5067_v31  ;;  %v2028_v8 = vsel %vm1991_vm3, %v5072_v33, %v5062_v61  ;;  %v4150_v10 = vpack.c.bf16 %v2031_v32, %v2029_v12 }
 0x237   : > { %v5078_v53 = vunpack.i.h.bf16 %v5076_v41  ;;  %v5077_v7 = vunpack.i.l.bf16 %v5076_v41  ;;  %v5081_v17 = vpop.permute.xlu0 %5080  ;;  %v4152_v3 = vpack.c.bf16 %v2030_v37, %v2028_v8 }
 0x238   : > { %5365 = vrot.lane.b32.xlu1 %v7401_v62, %s5715_s27  ;;  %4151 = vmatprep.subr.bf16.mxu1 %v4150_v10  ;;  %v5083_v51 = vunpack.i.h.bf16 %v5081_v17  ;;  %v5082_v47 = vunpack.i.l.bf16 %v5081_v17 }
 0x239   : > { %5370 = vrot.lane.b32.xlu0 %v7402_v11, %s5715_s27  ;;  %4153 = vmatpush1.bf16.msra.mxu1 %v4152_v3  ;;  %v2449_v63 = vsel %vm2411_vm4, %v5077_v7, %v5078_v53 }
 0x23a   : > { %v5086_v42 = vpop.permute.xlu1 %5085  ;;  %v2451_v55 = vsel %vm2411_vm4, %v5082_v47, %v5083_v51 }
 0x23b   : > { %v5088_v60 = vunpack.i.h.bf16 %v5086_v42  ;;  %v5087_v18 = vunpack.i.l.bf16 %v5086_v42  ;;  %v5091_v23 = vpop.permute.xlu0 %5090  ;;  %v4206_v44 = vpack.c.bf16 %v2451_v55, %v2449_v63 }
 0x23c   : > { %5375 = vrot.lane.b32.xlu1 %v7400_v39, %s5716_s13  ;;  %v5093_v48 = vunpack.i.h.bf16 %v5091_v23  ;;  %v5092_v9 = vunpack.i.l.bf16 %v5091_v23 }
 0x23d   : > { %v2448_v46 = vsel %vm2411_vm4, %v5087_v18, %v5077_v7  ;;  %v2450_v1 = vsel %vm2411_vm4, %v5088_v60, %v5082_v47  ;;  %5380 = vrot.lane.b32.xlu0 %v7401_v62, %s5716_s13  ;;  %4207 = vmatprep.subr.bf16.mxu0 %v4206_v44 }
 0x23e   : > { %v5096_v19 = vpop.permute.xlu1 %5095  ;;  %v4208_v59 = vpack.c.bf16 %v2450_v1, %v2448_v46  ;;  %v2033_v61 = vsel %vm1991_vm3, %v5092_v9, %v5093_v48 }
 0x23f   : > { %v5098_v27 = vunpack.i.h.bf16 %v5096_v19  ;;  %v5097_v16 = vunpack.i.l.bf16 %v5096_v19  ;;  %v5101_v29 = vpop.permute.xlu0 %5100 }
 0x240   : > { %5385 = vrot.lane.b32.xlu1 %v7402_v11, %s5716_s13  ;;  %4209 = vmatpush1.bf16.msra.mxu0 %v4208_v59  ;;  %v5103_v39 = vunpack.i.h.bf16 %v5101_v29  ;;  %v5102_v25 = vunpack.i.l.bf16 %v5101_v29 }
 0x241   : > { %5390 = vrot.lane.b32.xlu0 %v7403_v50, %s5715_s27  ;;  %v2035_v6 = vsel %vm1991_vm3, %v5097_v16, %v5098_v27 }
 0x242   : > { %v5106_v62 = vpop.permute.xlu1 %5105  ;;  %v2034_v38 = vsel %vm1991_vm3, %v5103_v39, %v5097_v16  ;;  %v2032_v30 = vsel %vm1991_vm3, %v5102_v25, %v5092_v9  ;;  %v4154_v31 = vpack.c.bf16 %v2035_v6, %v2033_v61 }
 0x243   : > { %v5108_v5 = vunpack.i.h.bf16 %v5106_v62  ;;  %v5107_v26 = vunpack.i.l.bf16 %v5106_v62  ;;  %v5111_v33 = vpop.permute.xlu0 %5110  ;;  %v4156_v11 = vpack.c.bf16 %v2034_v38, %v2032_v30 }
 0x244   : > { %5395 = vrot.lane.b32.xlu1 %v6076_v28, %s5715_s27  ;;  %4155 = vmatprep.subr.bf16.mxu1 %v4154_v31  ;;  %v5113_v12 = vunpack.i.h.bf16 %v5111_v33  ;;  %v5112_v32 = vunpack.i.l.bf16 %v5111_v33 }
 0x245   : > { %5400 = vrot.lane.b32.xlu0 %v7404_v15, %s5715_s27  ;;  %4157 = vmatpush1.bf16.msra.mxu1 %v4156_v11  ;;  %v2453_v41 = vsel %vm2411_vm4, %v5107_v26, %v5108_v5 }
 0x246   : > { %v5116_v37 = vpop.permute.xlu1 %5115  ;;  %v2455_v8 = vsel %vm2411_vm4, %v5112_v32, %v5113_v12 }
 0x247   : > { %v5118_v10 = vunpack.i.h.bf16 %v5116_v37  ;;  %v5117_v53 = vunpack.i.l.bf16 %v5116_v37  ;;  %v5121_v7 = vpop.permute.xlu0 %5120  ;;  %v4210_v17 = vpack.c.bf16 %v2455_v8, %v2453_v41 }
 0x248   : > { %5405 = vrot.lane.b32.xlu1 %v7403_v50, %s5716_s13  ;;  %v5123_v47 = vunpack.i.h.bf16 %v5121_v7  ;;  %v5122_v63 = vunpack.i.l.bf16 %v5121_v7 }
 0x249   : > { %v2452_v3 = vsel %vm2411_vm4, %v5117_v53, %v5107_v26  ;;  %v2454_v51 = vsel %vm2411_vm4, %v5118_v10, %v5112_v32  ;;  %5410 = vrot.lane.b32.xlu0 %v6076_v28, %s5716_s13  ;;  %4211 = vmatprep.subr.bf16.mxu0 %v4210_v17 }
 0x24a   : > { %v5126_v42 = vpop.permute.xlu1 %5125  ;;  %v4212_v55 = vpack.c.bf16 %v2454_v51, %v2452_v3  ;;  %v2037_v46 = vsel %vm1991_vm3, %v5122_v63, %v5123_v47 }
 0x24b   : > { %v5128_v60 = vunpack.i.h.bf16 %v5126_v42  ;;  %v5127_v18 = vunpack.i.l.bf16 %v5126_v42  ;;  %v5131_v23 = vpop.permute.xlu0 %5130 }
 0x24c   : > { %5415 = vrot.lane.b32.xlu1 %v7404_v15, %s5716_s13  ;;  %4213 = vmatpush1.bf16.msra.mxu0 %v4212_v55  ;;  %v5133_v50 = vunpack.i.h.bf16 %v5131_v23  ;;  %v5132_v44 = vunpack.i.l.bf16 %v5131_v23 }
 0x24d   : > { %5420 = vrot.lane.b32.xlu0 %v7405_v13, %s5715_s27  ;;  %v2039_v1 = vsel %vm1991_vm3, %v5127_v18, %v5128_v60 }
 0x24e   : > { %v5136_v28 = vpop.permute.xlu1 %5135  ;;  %v2038_v48 = vsel %vm1991_vm3, %v5133_v50, %v5127_v18  ;;  %v2036_v9 = vsel %vm1991_vm3, %v5132_v44, %v5122_v63  ;;  %v4158_v19 = vpack.c.bf16 %v2039_v1, %v2037_v46 }
 0x24f   : > { %v5138_v59 = vunpack.i.h.bf16 %v5136_v28  ;;  %v5137_v27 = vunpack.i.l.bf16 %v5136_v28  ;;  %v5141_v16 = vpop.permute.xlu0 %5140  ;;  %v4160_v15 = vpack.c.bf16 %v2038_v48, %v2036_v9 }
 0x250   : > { %5425 = vrot.lane.b32.xlu1 %v6096_v58, %s5715_s27  ;;  %4159 = vmatprep.subr.bf16.mxu1 %v4158_v19  ;;  %v5143_v29 = vunpack.i.h.bf16 %v5141_v16  ;;  %v5142_v39 = vunpack.i.l.bf16 %v5141_v16 }
 0x251   : > { %5430 = vrot.lane.b32.xlu0 %v7406_v22, %s5715_s27  ;;  %4161 = vmatpush1.bf16.msra.mxu1 %v4160_v15  ;;  %v2457_v25 = vsel %vm2411_vm4, %v5137_v27, %v5138_v59 }
 0x252   : > { %v5146_v61 = vpop.permute.xlu1 %5145  ;;  %v2459_v6 = vsel %vm2411_vm4, %v5142_v39, %v5143_v29 }
 0x253   : > { %v5148_v62 = vunpack.i.h.bf16 %v5146_v61  ;;  %v5147_v38 = vunpack.i.l.bf16 %v5146_v61  ;;  %v5151_v30 = vpop.permute.xlu0 %5150  ;;  %v4214_v31 = vpack.c.bf16 %v2459_v6, %v2457_v25 }
 0x254   : > { %5435 = vrot.lane.b32.xlu1 %v7405_v13, %s5716_s13  ;;  %v5153_v33 = vunpack.i.h.bf16 %v5151_v30  ;;  %v5152_v11 = vunpack.i.l.bf16 %v5151_v30 }
 0x255   : > { %v2456_v5 = vsel %vm2411_vm4, %v5147_v38, %v5137_v27  ;;  %v2458_v26 = vsel %vm2411_vm4, %v5148_v62, %v5142_v39  ;;  %5440 = vrot.lane.b32.xlu0 %v6096_v58, %s5716_s13  ;;  %4215 = vmatprep.subr.bf16.mxu0 %v4214_v31 }
 0x256   : > { %v5156_v12 = vpop.permute.xlu1 %5155  ;;  %v4216_v32 = vpack.c.bf16 %v2458_v26, %v2456_v5  ;;  %v2041_v53 = vsel %vm1991_vm3, %v5152_v11, %v5153_v33 }
 0x257   : > { %v5158_v41 = vunpack.i.h.bf16 %v5156_v12  ;;  %v5157_v37 = vunpack.i.l.bf16 %v5156_v12  ;;  %v5161_v8 = vpop.permute.xlu0 %5160 }
 0x258   : > { %5445 = vrot.lane.b32.xlu1 %v7406_v22, %s5716_s13  ;;  %4217 = vmatpush1.bf16.msra.mxu0 %v4216_v32  ;;  %v5163_v13 = vunpack.i.h.bf16 %v5161_v8  ;;  %v5162_v10 = vunpack.i.l.bf16 %v5161_v8  ;;  %v3870_v32 = vld [vmem:[%s7347_s2 + $0xc0] sm:$0xff] }
 0x259   : > { %5450 = vrot.lane.b32.xlu0 %v7407_v35, %s5715_s27  ;;  %v2043_v7 = vsel %vm1991_vm3, %v5157_v37, %v5158_v41 }
 0x25a   : > { %v5166_v58 = vpop.permute.xlu1 %5165  ;;  %v2042_v17 = vsel %vm1991_vm3, %v5163_v13, %v5157_v37  ;;  %v2040_v3 = vsel %vm1991_vm3, %v5162_v10, %v5152_v11  ;;  %v4162_v51 = vpack.c.bf16 %v2043_v7, %v2041_v53  ;;  %v3873_v7 = vld [vmem:[%s7347_s2 + $0xd8] sm:$0xff] }
 0x25b   : > { %v5168_v47 = vunpack.i.h.bf16 %v5166_v58  ;;  %v5167_v63 = vunpack.i.l.bf16 %v5166_v58  ;;  %v5171_v42 = vpop.permute.xlu0 %5170  ;;  %v4164_v22 = vpack.c.bf16 %v2042_v17, %v2040_v3 }
 0x25c   : > { %5455 = vrot.lane.b32.xlu1 %v6120_v40, %s5715_s27  ;;  %4163 = vmatprep.subr.bf16.mxu1 %v4162_v51  ;;  %v5173_v55 = vunpack.i.h.bf16 %v5171_v42  ;;  %v5172_v60 = vunpack.i.l.bf16 %v5171_v42 }
 0x25d   : > { %5460 = vrot.lane.b32.xlu0 %v7408_v56, %s5715_s27  ;;  %4165 = vmatpush1.bf16.msra.mxu1 %v4164_v22  ;;  %v2461_v18 = vsel %vm2411_vm4, %v5167_v63, %v5168_v47 }
 0x25e   : > { %v5176_v23 = vpop.permute.xlu1 %5175  ;;  %v2463_v50 = vsel %vm2411_vm4, %v5172_v60, %v5173_v55 }
 0x25f   : > { %v5178_v44 = vunpack.i.h.bf16 %v5176_v23  ;;  %v5177_v46 = vunpack.i.l.bf16 %v5176_v23  ;;  %v5181_v1 = vpop.permute.xlu0 %5180  ;;  %v4218_v28 = vpack.c.bf16 %v2463_v50, %v2461_v18  ;;  %v3883_v23 = vld [vmem:[%s7347_s2 + $0x100] sm:$0xff] }
 0x260   : > { %5465 = vrot.lane.b32.xlu1 %v7407_v35, %s5716_s13  ;;  %v5183_v19 = vunpack.i.h.bf16 %v5181_v1  ;;  %v5182_v59 = vunpack.i.l.bf16 %v5181_v1 }
 0x261   : > { %v2460_v48 = vsel %vm2411_vm4, %v5177_v46, %v5167_v63  ;;  %v2462_v9 = vsel %vm2411_vm4, %v5178_v44, %v5172_v60  ;;  %5470 = vrot.lane.b32.xlu0 %v6120_v40, %s5716_s13  ;;  %4219 = vmatprep.subr.bf16.mxu0 %v4218_v28  ;;  %v3875_v60 = vld [vmem:[%s7347_s2 + $0xe8] sm:$0xff] }
 0x262   : > { %v5186_v27 = vpop.permute.xlu1 %5185  ;;  %v4220_v16 = vpack.c.bf16 %v2462_v9, %v2460_v48  ;;  %v2045_v61 = vsel %vm1991_vm3, %v5182_v59, %v5183_v19 }
 0x263   : > { %v5188_v15 = vunpack.i.h.bf16 %v5186_v27  ;;  %v5187_v29 = vunpack.i.l.bf16 %v5186_v27  ;;  %v5191_v39 = vpop.permute.xlu0 %5190  ;;  %v3886_v27 = vld [vmem:[%s7347_s2 + $0x118] sm:$0xff] }
 0x264   : > { %5475 = vrot.lane.b32.xlu1 %v7408_v56, %s5716_s13  ;;  %4221 = vmatpush1.bf16.msra.mxu0 %v4220_v16  ;;  %v5193_v35 = vunpack.i.h.bf16 %v5191_v39  ;;  %v5192_v25 = vunpack.i.l.bf16 %v5191_v39  ;;  %v3874_v16 = vld [vmem:[%s7347_s2 + $0xe0] sm:$0xff]  ;;  %v3885_v39 = vld [vmem:[%s7347_s2 + $0x110] sm:$0xff] }
 0x265   : > { %5480 = vrot.lane.b32.xlu0 %v7409_v45, %s5715_s27  ;;  %v2047_v6 = vsel %vm1991_vm3, %v5187_v29, %v5188_v15 }
 0x266   : > { %v5196_v40 = vpop.permute.xlu1 %5195  ;;  %v2046_v62 = vsel %vm1991_vm3, %v5193_v35, %v5187_v29  ;;  %v2044_v38 = vsel %vm1991_vm3, %v5192_v25, %v5182_v59  ;;  %v4166_v30 = vpack.c.bf16 %v2047_v6, %v2045_v61  ;;  %v3877_v35 = vld [vmem:[%s7347_s2 + $0xf8] sm:$0xff]  ;;  %v3888_v61 = vld [vmem:[%s7347_s2 + $0x128] sm:$0xff] }
 0x267   : > { %v5198_v31 = vunpack.i.h.bf16 %v5196_v40  ;;  %v5197_v5 = vunpack.i.l.bf16 %v5196_v40  ;;  %v4168_v26 = vpack.c.bf16 %v2046_v62, %v2044_v38  ;;  %v5201_v56 = vpop.permute.xlu0 %5200 }
 0x268   : > { %5485 = vrot.lane.b32.xlu1 %v6140_v52, %s5715_s27  ;;  %4167 = vmatprep.subr.bf16.mxu1 %v4166_v30  ;;  %v5203_v33 = vunpack.i.h.bf16 %v5201_v56  ;;  %v5202_v11 = vunpack.i.l.bf16 %v5201_v56 }
 0x269   : > { %5490 = vrot.lane.b32.xlu0 %v7410_v54, %s5715_s27  ;;  %4169 = vmatpush1.bf16.msra.mxu1 %v4168_v26  ;;  %v2465_v12 = vsel %vm2411_vm4, %v5197_v5, %v5198_v31  ;;  %v3887_v26 = vld [vmem:[%s7347_s2 + $0x120] sm:$0xff] }
 0x26a   : > { %v5206_v41 = vpop.permute.xlu1 %5205  ;;  %v2467_v37 = vsel %vm2411_vm4, %v5202_v11, %v5203_v33 }
 0x26b   : > { %v5208_v8 = vunpack.i.h.bf16 %v5206_v41  ;;  %v5207_v13 = vunpack.i.l.bf16 %v5206_v41  ;;  %v5211_v10 = vpop.permute.xlu0 %5210  ;;  %v4222_v53 = vpack.c.bf16 %v2467_v37, %v2465_v12 }
 0x26c   : > { %5495 = vrot.lane.b32.xlu1 %v7409_v45, %s5716_s13  ;;  %2181 = vmatmul.mubr.f32.vlgmr.msra.gmra.mrb[8].mxu1 %v3870_v32  ;;  %v5213_v3 = vunpack.i.h.bf16 %v5211_v10  ;;  %v5212_v51 = vunpack.i.l.bf16 %v5211_v10  ;;  %v3872_v45 = vld [vmem:[%s7347_s2 + $0xd0] sm:$0xff] }
 0x26d   : > { %v2464_v58 = vsel %vm2411_vm4, %v5207_v13, %v5197_v5  ;;  %v2466_v17 = vsel %vm2411_vm4, %v5208_v8, %v5202_v11  ;;  %5500 = vrot.lane.b32.xlu0 %v6140_v52, %s5716_s13  ;;  %4223 = vmatprep.subr.bf16.mxu0 %v4222_v53  ;;  %v3876_v5 = vld [vmem:[%s7347_s2 + $0xf0] sm:$0xff] }
 0x26e   : > { %v4224_v47 = vpack.c.bf16 %v2466_v17, %v2464_v58  ;;  %v5216_v63 = vpop.permute.xlu1 %5215  ;;  %3879 = vmatprep.mubr.msk.f32.mxu1 %vm676_vm0, %v3873_v7  ;;  %v2833_v50 = vsel %vm2831_vm5, %v5212_v51, %v5213_v3 }
 0x26f   : > { %v5218_v42 = vunpack.i.h.bf16 %v5216_v63  ;;  %v5217_v22 = vunpack.i.l.bf16 %v5216_v63  ;;  %v5221_v55 = vpop.permute.xlu0 %5220 }
 0x270   : > { %5505 = vrot.lane.b32.xlu1 %v7410_v54, %s5716_s13  ;;  %4225 = vmatpush1.bf16.msra.mxu0 %v4224_v47  ;;  %v5223_v52 = vunpack.i.h.bf16 %v5221_v55  ;;  %v5222_v18 = vunpack.i.l.bf16 %v5221_v55 }
 0x271   : > { %5510 = vrot.lane.b32.xlu0 %v7411_v57, %s5715_s27  ;;  %v2835_v44 = vsel %vm2831_vm5, %v5217_v22, %v5218_v42  ;;  %2187 = vmatmul.mubr.f32.gmra.mrb[10].mxu1 %v3872_v45 }
 0x272   : > { %v5226_v46 = vpop.permute.xlu1 %5225  ;;  %v2834_v1 = vsel %vm2831_vm5, %v5223_v52, %v5217_v22  ;;  %v2832_v54 = vsel %vm2831_vm5, %v5222_v18, %v5212_v51  ;;  %v4226_v28 = vpack.c.bf16 %v2835_v44, %v2833_v50  ;;  %3880 = vmatprep.mubr.msk.f32.mxu1 %vm676_vm0, %v3875_v60 }
 0x273   : > { %v5228_v48 = vunpack.i.h.bf16 %v5226_v46  ;;  %v5227_v9 = vunpack.i.l.bf16 %v5226_v46  ;;  %v4228_v19 = vpack.c.bf16 %v2834_v1, %v2832_v54  ;;  %v5231_v59 = vpop.permute.xlu0 %5230  ;;  %2601 = vmatmul.mubr.f32.vlgmr.msra.gmra.mrb[16].mxu0 %v3883_v23 }
 0x274   : > { %5515 = vrot.lane.b32.xlu1 %v6160_v0, %s5715_s27  ;;  %4227 = vmatprep.subr.bf16.mxu1 %v4226_v28  ;;  %v5233_v15 = vunpack.i.h.bf16 %v5231_v59  ;;  %v5232_v29 = vunpack.i.l.bf16 %v5231_v59 }
 0x275   : > { %5520 = vrot.lane.b32.xlu0 %v7412_v14, %s5715_s27  ;;  %4229 = vmatpush1.bf16.msra.mxu1 %v4228_v19  ;;  %v3253_v25 = vsel %vm3251_vm6, %v5227_v9, %v5228_v48 }
 0x276   : > { %v5236_v6 = vpop.permute.xlu1 %5235  ;;  %v3255_v40 = vsel %vm3251_vm6, %v5232_v29, %v5233_v15  ;;  %3892 = vmatprep.mubr.msk.f32.mxu0 %vm676_vm0, %v3886_v27  ;;  %2193 = vmatmul.mubr.f32.gmra.mrb[12].mxu1 %v3874_v16 }
 0x277   : > { %v5238_v62 = vunpack.i.h.bf16 %v5236_v6  ;;  %v5237_v38 = vunpack.i.l.bf16 %v5236_v6  ;;  %v5241_v30 = vpop.permute.xlu0 %5240  ;;  %v4282_v31 = vpack.c.bf16 %v3255_v40, %v3253_v25  ;;  %2607 = vmatmul.mubr.f32.gmra.mrb[18].mxu0 %v3885_v39  ;;  %3881 = vmatprep.mubr.msk.f32.mxu1 %vm676_vm0, %v3877_v35 }
 0x278   : > { %5525 = vrot.lane.b32.xlu1 %v7411_v57, %s5716_s13  ;;  %3893 = vmatprep.mubr.msk.f32.mxu0 %vm676_vm0, %v3888_v61  ;;  %v5243_v11 = vunpack.i.h.bf16 %v5241_v30  ;;  %v5242_v12 = vunpack.i.l.bf16 %v5241_v30  ;;  %v3890_v57 = vld [vmem:[%s7347_s2 + $0x138] sm:$0xff] }
 0x279   : > { %v3252_v56 = vsel %vm3251_vm6, %v5237_v38, %v5227_v9  ;;  %v3254_v33 = vsel %vm3251_vm6, %v5238_v62, %v5232_v29  ;;  %5530 = vrot.lane.b32.xlu0 %v6160_v0, %s5716_s13  ;;  %4283 = vmatprep.subr.bf16.mxu0 %v4282_v31  ;;  %v3889_v0 = vld [vmem:[%s7347_s2 + $0x130] sm:$0xff] }
 0x27a   : > { %v4284_v32 = vpack.c.bf16 %v3254_v33, %v3252_v56  ;;  %v5246_v41 = vpop.permute.xlu1 %5245  ;;  %2199 = vmatmul.mubr.f32.gmra.mrb[14].mxu1 %v3876_v5  ;;  %v2837_v7 = vsel %vm2831_vm5, %v5242_v12, %v5243_v11 }
 0x27b   : > { %v5248_v37 = vunpack.i.h.bf16 %v5246_v41  ;;  %v5247_v8 = vunpack.i.l.bf16 %v5246_v41  ;;  %v5251_v13 = vpop.permute.xlu0 %5250  ;;  %2613 = vmatmul.mubr.f32.gmra.mrb[20].mxu0 %v3887_v26 }
 0x27c   : > { %5535 = vrot.lane.b32.xlu1 %v7412_v14, %s5716_s13  ;;  %4285 = vmatpush1.bf16.msra.mxu0 %v4284_v32  ;;  %v5253_v10 = vunpack.i.h.bf16 %v5251_v13  ;;  %v5252_v53 = vunpack.i.l.bf16 %v5251_v13 }
 0x27d   : > { %5540 = vrot.lane.b32.xlu0 %v7413_v43, %s5715_s27  ;;  %v2839_v58 = vsel %vm2831_vm5, %v5247_v8, %v5248_v37  ;;  %3894 = vmatprep.mubr.msk.f32.mxu0 %vm676_vm0, %v3890_v57 }
 0x27e   : > { %v5256_v17 = vpop.permute.xlu1 %5255  ;;  %v2838_v3 = vsel %vm2831_vm5, %v5253_v10, %v5247_v8  ;;  %v2836_v14 = vsel %vm2831_vm5, %v5252_v53, %v5242_v12  ;;  %v4230_v51 = vpack.c.bf16 %v2839_v58, %v2837_v7  ;;  %v3897_v58 = vld [vmem:[%s7347_s2 + $0x148] sm:$0xff] }
 0x27f   : > { %v5258_v47 = vunpack.i.h.bf16 %v5256_v17  ;;  %v5257_v63 = vunpack.i.l.bf16 %v5256_v17  ;;  %v4232_v45 = vpack.c.bf16 %v2838_v3, %v2836_v14  ;;  %v5261_v42 = vpop.permute.xlu0 %5260  ;;  %2619 = vmatmul.mubr.f32.gmra.mrb[22].mxu0 %v3889_v0  ;;  %3904 = vmatprep.mubr.msk.f32.mxu1 %vm676_vm0, %v3897_v58  ;;  %v778_v58 = vld [vmem:[%s7346_s1] ss:$8 sm:$0x3] }
 0x280   : > { %5545 = vrot.lane.b32.xlu1 %v6180_v20, %s5715_s27  ;;  %4231 = vmatprep.subr.bf16.mxu1 %v4230_v51  ;;  %v5263_v22 = vunpack.i.h.bf16 %v5261_v42  ;;  %v5262_v55 = vunpack.i.l.bf16 %v5261_v42 }
 0x281   : > { %5550 = vrot.lane.b32.xlu0 %v7414_v49, %s5715_s27  ;;  %4233 = vmatpush1.bf16.msra.mxu1 %v4232_v45  ;;  %v3257_v60 = vsel %vm3251_vm6, %v5257_v63, %v5258_v47 }
 0x282   : > { %v5266_v52 = vpop.permute.xlu1 %5265  ;;  %v3259_v18 = vsel %vm3251_vm6, %v5262_v55, %v5263_v22 }
 0x283   : > { %v5268_v23 = vunpack.i.h.bf16 %v5266_v52  ;;  %v5267_v50 = vunpack.i.l.bf16 %v5266_v52  ;;  %v5271_v44 = vpop.permute.xlu0 %5270  ;;  %v4286_v46 = vpack.c.bf16 %v3259_v18, %v3257_v60  ;;  %v3910_v60 = vld [vmem:[%s7347_s2 + $0x188] sm:$0xff] }
 0x284   : > { %5555 = vrot.lane.b32.xlu1 %v7413_v43, %s5716_s13  ;;  %v5273_v28 = vunpack.i.h.bf16 %v5271_v44  ;;  %v5272_v48 = vunpack.i.l.bf16 %v5271_v44  ;;  %3917 = vmatprep.mubr.msk.f32.mxu0 %vm676_vm0, %v3910_v60 }
 0x285   : > { %v3256_v1 = vsel %vm3251_vm6, %v5267_v50, %v5257_v63  ;;  %v3258_v54 = vsel %vm3251_vm6, %v5268_v23, %v5262_v55  ;;  %5560 = vrot.lane.b32.xlu0 %v6180_v20, %s5716_s13  ;;  %4287 = vmatprep.subr.bf16.mxu0 %v4286_v46 }
 0x286   : > { %v4288_v9 = vpack.c.bf16 %v3258_v54, %v3256_v1  ;;  %v5276_v19 = vpop.permute.xlu1 %5275  ;;  %v2841_v29 = vsel %vm2831_vm5, %v5272_v48, %v5273_v28 }
 0x287   : > { %v5278_v59 = vunpack.i.h.bf16 %v5276_v19  ;;  %v5277_v27 = vunpack.i.l.bf16 %v5276_v19  ;;  %v5281_v16 = vpop.permute.xlu0 %5280 }
 0x288   : > { %5565 = vrot.lane.b32.xlu1 %v7414_v49, %s5716_s13  ;;  %4289 = vmatpush1.bf16.msra.mxu0 %v4288_v9  ;;  %v5283_v43 = vunpack.i.h.bf16 %v5281_v16  ;;  %v5282_v15 = vunpack.i.l.bf16 %v5281_v16 }
 0x289   : > { %5570 = vrot.lane.b32.xlu0 %v7415_v4, %s5715_s27  ;;  %v2843_v39 = vsel %vm2831_vm5, %v5277_v27, %v5278_v59 }
 0x28a   : > { %v5286_v20 = vpop.permute.xlu1 %5285  ;;  %v2842_v35 = vsel %vm2831_vm5, %v5283_v43, %v5277_v27  ;;  %v2840_v25 = vsel %vm2831_vm5, %v5282_v15, %v5272_v48  ;;  %v4234_v61 = vpack.c.bf16 %v2843_v39, %v2841_v29 }
 0x28b   : > { %v5288_v6 = vunpack.i.h.bf16 %v5286_v20  ;;  %v5287_v40 = vunpack.i.l.bf16 %v5286_v20  ;;  %v4236_v62 = vpack.c.bf16 %v2842_v35, %v2840_v25  ;;  %v5291_v49 = vpop.permute.xlu0 %5290 }
 0x28c   : > { %5575 = vrot.lane.b32.xlu1 %v6200_v34, %s5715_s27  ;;  %4235 = vmatprep.subr.bf16.mxu1 %v4234_v61  ;;  %v5293_v38 = vunpack.i.h.bf16 %v5291_v49  ;;  %v5292_v30 = vunpack.i.l.bf16 %v5291_v49 }
 0x28d   : > { %5580 = vrot.lane.b32.xlu0 %v7416_v24, %s5715_s27  ;;  %4237 = vmatpush1.bf16.msra.mxu1 %v4236_v62  ;;  %v3261_v31 = vsel %vm3251_vm6, %v5287_v40, %v5288_v6 }
 0x28e   : > { %v5296_v5 = vpop.permute.xlu1 %5295  ;;  %v3263_v26 = vsel %vm3251_vm6, %v5292_v30, %v5293_v38 }
 0x28f   : > { %v5298_v56 = vunpack.i.h.bf16 %v5296_v5  ;;  %v5297_v33 = vunpack.i.l.bf16 %v5296_v5  ;;  %v5301_v11 = vpop.permute.xlu0 %5300  ;;  %v4290_v12 = vpack.c.bf16 %v3263_v26, %v3261_v31 }
 0x290   : > { %5585 = vrot.lane.b32.xlu1 %v7415_v4, %s5716_s13  ;;  %v5303_v57 = vunpack.i.h.bf16 %v5301_v11  ;;  %v5302_v37 = vunpack.i.l.bf16 %v5301_v11  ;;  %v755_v11 = vpop.f32.mrb[0].mxu0 }
 0x291   : > { %v3260_v32 = vsel %vm3251_vm6, %v5297_v33, %v5287_v40  ;;  %v3262_v41 = vsel %vm3251_vm6, %v5298_v56, %v5292_v30  ;;  %5590 = vrot.lane.b32.xlu0 %v6200_v34, %s5716_s13  ;;  %4291 = vmatprep.subr.bf16.mxu0 %v4290_v12  ;;  %v780_v12 = vlaneseq }
 0x292   : > { %v4292_v8 = vpack.c.bf16 %v3262_v41, %v3260_v32  ;;  %v5306_v13 = vpop.permute.xlu1 %5305  ;;  %v2845_v34 = vsel %vm2831_vm5, %v5302_v37, %v5303_v57  ;;  %v757_v41 = vpop.f32.mrb[1].mxu0 }
 0x293   : > { %v5308_v10 = vunpack.i.h.bf16 %v5306_v13  ;;  %v5307_v53 = vunpack.i.l.bf16 %v5306_v13  ;;  %v5311_v0 = vpop.permute.xlu0 %5310  ;;  %v1342_v57 = vpop.f32.mrb[0].mxu1 }
 0x294   : > { %5595 = vrot.lane.b32.xlu1 %v7416_v24, %s5716_s13  ;;  %4293 = vmatpush1.bf16.msra.mxu0 %v4292_v8  ;;  %v5313_v4 = vunpack.i.h.bf16 %v5311_v0  ;;  %v5312_v7 = vunpack.i.l.bf16 %v5311_v0  ;;  %v1344_v0 = vpop.f32.mrb[1].mxu1 }
 0x295   : > { %5600 = vrot.lane.b32.xlu0 %v7417_v36, %s5715_s27  ;;  %v2847_v17 = vsel %vm2831_vm5, %v5307_v53, %v5308_v10  ;;  %v781_v10 = vshrl.u32 %v780_v12, 7 }
 0x296   : > { %v5316_v3 = vpop.permute.xlu1 %5315  ;;  %v2846_v14 = vsel %vm2831_vm5, %v5313_v4, %v5307_v53  ;;  %v2844_v24 = vsel %vm2831_vm5, %v5312_v7, %v5302_v37  ;;  %v4238_v51 = vpack.c.bf16 %v2847_v17, %v2845_v34  ;;  %v7052_v53 = vpop.f32.mrb[2].mxu0 }
 0x297   : > { %v5318_v47 = vunpack.i.h.bf16 %v5316_v3  ;;  %v5317_v63 = vunpack.i.l.bf16 %v5316_v3  ;;  %v4240_v45 = vpack.c.bf16 %v2846_v14, %v2844_v24  ;;  %v5321_v42 = vpop.permute.xlu0 %5320  ;;  %v7057_v34 = vpop.f32.mrb[3].mxu0  ;;  %v7059_v24 = vsub.s32 0, %v781_v10 }
 0x298   : > { %5605 = vrot.lane.b32.xlu1 %v6220_v2, %s5715_s27  ;;  %4239 = vmatprep.subr.bf16.mxu1 %v4238_v51  ;;  %v5323_v22 = vunpack.i.h.bf16 %v5321_v42  ;;  %v5322_v55 = vunpack.i.l.bf16 %v5321_v42  ;;  %v7061_v51 = vsub.s32 1, %v781_v10 }
 0x299   : > { %5610 = vrot.lane.b32.xlu0 %v7418_v21, %s5715_s27  ;;  %4241 = vmatpush1.bf16.msra.mxu1 %v4240_v45  ;;  %v3265_v52 = vsel %vm3251_vm6, %v5317_v63, %v5318_v47  ;;  %v7063_v47 = vpop.f32.mrb[4].mxu0 }
 0x29a   : > { %v5326_v18 = vpop.permute.xlu1 %5325  ;;  %v3267_v23 = vsel %vm3251_vm6, %v5322_v55, %v5323_v22  ;;  %v7068_v22 = vpop.f32.mrb[5].mxu0 }
 0x29b   : > { %v5328_v50 = vunpack.i.h.bf16 %v5326_v18  ;;  %v5327_v44 = vunpack.i.l.bf16 %v5326_v18  ;;  %v5331_v46 = vpop.permute.xlu0 %5330  ;;  %v4294_v1 = vpack.c.bf16 %v3267_v23, %v3265_v52  ;;  %v7073_v52 = vrot.slane %v778_v58, %v7059_v24  ;;  %v7078_v23 = vpop.f32.mrb[6].mxu0 }
 0x29c   : > { %5615 = vrot.lane.b32.xlu1 %v7417_v36, %s5716_s13  ;;  %v5333_v48 = vunpack.i.h.bf16 %v5331_v46  ;;  %v5332_v9 = vunpack.i.l.bf16 %v5331_v46  ;;  %v7076_v18 = vrot.slane %v778_v58, %v7061_v51 }
 0x29d   : > { %v3264_v54 = vsel %vm3251_vm6, %v5327_v44, %v5317_v63  ;;  %v3266_v28 = vsel %vm3251_vm6, %v5328_v50, %v5322_v55  ;;  %5620 = vrot.lane.b32.xlu0 %v6220_v2, %s5716_s13  ;;  %4295 = vmatprep.subr.bf16.mxu0 %v4294_v1  ;;  %v3856_v63 = vld [vmem:[%s7346_s1 + $0x1] ss:$8 sm:$0x3] }
 0x29e   : > { %v4296_v19 = vpack.c.bf16 %v3266_v28, %v3264_v54  ;;  %v5336_v59 = vpop.permute.xlu1 %5335  ;;  %v2849_v29 = vsel %vm2831_vm5, %v5332_v9, %v5333_v48  ;;  %v7083_v54 = vrot.slane %v3856_v63, %v7059_v24  ;;  %v7085_v28 = vpop.f32.mrb[7].mxu0 }
 0x29f   : > { %v5338_v27 = vunpack.i.h.bf16 %v5336_v59  ;;  %v5337_v16 = vunpack.i.l.bf16 %v5336_v59  ;;  %v5341_v43 = vpop.permute.xlu0 %5340 }
 0x2a0   : > { %5625 = vrot.lane.b32.xlu1 %v7418_v21, %s5716_s13  ;;  %4297 = vmatpush1.bf16.msra.mxu0 %v4296_v19  ;;  %v5343_v36 = vunpack.i.h.bf16 %v5341_v43  ;;  %v5342_v15 = vunpack.i.l.bf16 %v5341_v43 }
 0x2a1   : > { %v2851_v39 = vsel %vm2831_vm5, %v5337_v16, %v5338_v27  ;;  %v7088_v27 = vrot.slane %v3856_v63, %v7061_v51 }
 0x2a2   : > { %v5346_v20 = vpop.permute.xlu1 %5345  ;;  %v2850_v35 = vsel %vm2831_vm5, %v5343_v36, %v5337_v16  ;;  %v2848_v2 = vsel %vm2831_vm5, %v5342_v15, %v5332_v9  ;;  %v4242_v25 = vpack.c.bf16 %v2851_v39, %v2849_v29  ;;  %v1762_v16 = vpop.f32.mrb[8].mxu0  ;;  %v790_v15 = vmul.f32 %v7073_v52, %v755_v11 }
 0x2a3   : > { %v5348_v61 = vunpack.i.h.bf16 %v5346_v20  ;;  %v5347_v6 = vunpack.i.l.bf16 %v5346_v20  ;;  %v4244_v40 = vpack.c.bf16 %v2850_v35, %v2848_v2  ;;  %v5351_v62 = vpop.permute.xlu0 %5350  ;;  %v1764_v29 = vpop.f32.mrb[9].mxu0  ;;  %v791_v20 = vmul.f32 %v7076_v18, %v757_v41  ;;  %v3869_v35 = vld [vmem:[%s7346_s1 + $0x2] ss:$8 sm:$0x3] }
 0x2a4   : > { %4243 = vmatprep.subr.bf16.mxu1 %v4242_v25  ;;  %v5353_v49 = vunpack.i.h.bf16 %v5351_v62  ;;  %v5352_v21 = vunpack.i.l.bf16 %v5351_v62  ;;  %v7105_v11 = vrot.slane %v3869_v35, %v7061_v51 }
 0x2a5   : > { %4245 = vmatpush1.bf16.msra.mxu1 %v4244_v40  ;;  %v3269_v38 = vsel %vm3251_vm6, %v5347_v6, %v5348_v61  ;;  %v1378_v61 = vmul.f32 %v7083_v54, %v1342_v57 }
 0x2a6   : > { %v5356_v30 = vpop.permute.xlu1 %5355  ;;  %v3271_v31 = vsel %vm3251_vm6, %v5352_v21, %v5353_v49 }
 0x2a7   : > { %v5358_v5 = vunpack.i.h.bf16 %v5356_v30  ;;  %v5357_v26 = vunpack.i.l.bf16 %v5356_v30  ;;  %v5361_v56 = vpop.permute.xlu0 %5360  ;;  %v4298_v33 = vpack.c.bf16 %v3271_v31, %v3269_v38  ;;  %v1386_v31 = vadd.f32 %v1378_v61, %v790_v15 }
 0x2a8   : > { %v5363_v32 = vunpack.i.h.bf16 %v5361_v56  ;;  %v5362_v13 = vunpack.i.l.bf16 %v5361_v56 }
 0x2a9   : > { %v3268_v37 = vsel %vm3251_vm6, %v5357_v26, %v5347_v6  ;;  %v3270_v8 = vsel %vm3251_vm6, %v5358_v5, %v5352_v21  ;;  %4299 = vmatprep.subr.bf16.mxu0 %v4298_v33  ;;  %v1379_v21 = vmul.f32 %v7088_v27, %v1344_v0  ;;  %v7100_v5 = vrot.slane %v3869_v35, %v7059_v24 }
 0x2aa   : > { %v4300_v4 = vpack.c.bf16 %v3270_v8, %v3268_v37  ;;  %v5366_v7 = vpop.permute.xlu1 %5365  ;;  %v2853_v55 = vsel %vm2831_vm5, %v5362_v13, %v5363_v32 }
 0x2ab   : > { %v5368_v17 = vunpack.i.h.bf16 %v5366_v7  ;;  %v5367_v3 = vunpack.i.l.bf16 %v5366_v7  ;;  %v5371_v14 = vpop.permute.xlu0 %5370  ;;  %v1387_v33 = vadd.f32 %v1379_v21, %v791_v20  ;;  %v1798_v41 = vmul.f32 %v7100_v5, %v1762_v16 }
 0x2ac   : > { %4301 = vmatpush1.bf16.msra.mxu0 %v4300_v4  ;;  %v5373_v45 = vunpack.i.h.bf16 %v5371_v14  ;;  %v5372_v42 = vunpack.i.l.bf16 %v5371_v14  ;;  %v796_v21 = vmul.f32 %v7073_v52, %v7078_v23 }
 0x2ad   : > { %v2855_v60 = vsel %vm2831_vm5, %v5367_v3, %v5368_v17  ;;  %v7109_v4 = vadd.f32 %v1798_v41, %v1386_v31 }
 0x2ae   : > { %v5376_v50 = vpop.permute.xlu1 %5375  ;;  %v2854_v44 = vsel %vm2831_vm5, %v5373_v45, %v5367_v3  ;;  %v2852_v46 = vsel %vm2831_vm5, %v5372_v42, %v5362_v13  ;;  %v4246_v1 = vpack.c.bf16 %v2855_v60, %v2853_v55  ;;  %v1799_v13 = vmul.f32 %v7105_v11, %v1764_v29 }
 0x2af   : > { %v5378_v48 = vunpack.i.h.bf16 %v5376_v50  ;;  %v5377_v9 = vunpack.i.l.bf16 %v5376_v50  ;;  %v4248_v19 = vpack.c.bf16 %v2854_v44, %v2852_v46  ;;  %v5381_v59 = vpop.permute.xlu0 %5380 }
 0x2b0   : > { %4247 = vmatprep.subr.bf16.mxu1 %v4246_v1  ;;  %v5383_v43 = vunpack.i.h.bf16 %v5381_v59  ;;  %v5382_v36 = vunpack.i.l.bf16 %v5381_v59  ;;  %v7113_v17 = vadd.f32 %v1799_v13, %v1387_v33  ;;  %v793_v59 = vmul.f32 %v7076_v18, %v7057_v34 }
 0x2b1   : > { %4249 = vmatpush1.bf16.msra.mxu1 %v4248_v19  ;;  %v3273_v39 = vsel %vm3251_vm6, %v5377_v9, %v5378_v48  ;;  %v792_v48 = vmul.f32 %v7073_v52, %v7052_v53  ;;  %v794_v34 = vmul.f32 %v7073_v52, %v7063_v47  ;;  %v797_v33 = vmul.f32 %v7076_v18, %v7085_v28 }
 0x2b2   : > { %v5386_v2 = vpop.permute.xlu1 %5385  ;;  %v3275_v25 = vsel %vm3251_vm6, %v5382_v36, %v5383_v43 }
 0x2b3   : > { %v5388_v6 = vunpack.i.h.bf16 %v5386_v2  ;;  %v5387_v40 = vunpack.i.l.bf16 %v5386_v2  ;;  %v5391_v62 = vpop.permute.xlu0 %5390  ;;  %v4302_v49 = vpack.c.bf16 %v3275_v25, %v3273_v39 }
 0x2b4   : > { %v5393_v38 = vunpack.i.h.bf16 %v5391_v62  ;;  %v5392_v30 = vunpack.i.l.bf16 %v5391_v62 }
 0x2b5   : > { %v3272_v26 = vsel %vm3251_vm6, %v5387_v40, %v5377_v9  ;;  %v3274_v56 = vsel %vm3251_vm6, %v5388_v6, %v5382_v36  ;;  %4303 = vmatprep.subr.bf16.mxu0 %v4302_v49  ;;  %v795_v49 = vmul.f32 %v7076_v18, %v7068_v22 }
 0x2b6   : > { %v4304_v12 = vpack.c.bf16 %v3274_v56, %v3272_v26  ;;  %v5396_v32 = vpop.permute.xlu1 %5395  ;;  %v2857_v7 = vsel %vm2831_vm5, %v5392_v30, %v5393_v38 }
 0x2b7   : > { %v5398_v57 = vunpack.i.h.bf16 %v5396_v32  ;;  %v5397_v37 = vunpack.i.l.bf16 %v5396_v32  ;;  %v5401_v8 = vpop.permute.xlu0 %5400 }
 0x2b8   : > { %4305 = vmatpush1.bf16.msra.mxu0 %v4304_v12  ;;  %v5403_v10 = vunpack.i.h.bf16 %v5401_v8  ;;  %v5402_v0 = vunpack.i.l.bf16 %v5401_v8 }
 0x2b9   : > { %v2859_v58 = vsel %vm2831_vm5, %v5397_v37, %v5398_v57  ;;  %v1348_v16 = vpop.f32.mrb[2].mxu1 }
 0x2ba   : > { %v5406_v3 = vpop.permute.xlu1 %5405  ;;  %v2858_v14 = vsel %vm2831_vm5, %v5403_v10, %v5397_v37  ;;  %v2856_v63 = vsel %vm2831_vm5, %v5402_v0, %v5392_v30  ;;  %v4250_v45 = vpack.c.bf16 %v2859_v58, %v2857_v7  ;;  %v1380_v39 = vmul.f32 %v7083_v54, %v1348_v16  ;;  %v1350_v20 = vpop.f32.mrb[3].mxu1 }
 0x2bb   : > { %v5408_v42 = vunpack.i.h.bf16 %v5406_v3  ;;  %v5407_v55 = vunpack.i.l.bf16 %v5406_v3  ;;  %v4252_v60 = vpack.c.bf16 %v2858_v14, %v2856_v63  ;;  %v5411_v50 = vpop.permute.xlu0 %5410  ;;  %v1381_v25 = vmul.f32 %v7088_v27, %v1350_v20 }
 0x2bc   : > { %4251 = vmatprep.subr.bf16.mxu1 %v4250_v45  ;;  %v5413_v44 = vunpack.i.h.bf16 %v5411_v50  ;;  %v5412_v46 = vunpack.i.l.bf16 %v5411_v50  ;;  %v1388_v6 = vadd.f32 %v1380_v39, %v792_v48 }
 0x2bd   : > { %4253 = vmatpush1.bf16.msra.mxu1 %v4252_v60  ;;  %v3277_v1 = vsel %vm3251_vm6, %v5407_v55, %v5408_v42  ;;  %v1389_v38 = vadd.f32 %v1381_v25, %v793_v59  ;;  %v1354_v30 = vpop.f32.mrb[4].mxu1 }
 0x2be   : > { %v5416_v9 = vpop.permute.xlu1 %5415  ;;  %v3279_v19 = vsel %vm3251_vm6, %v5412_v46, %v5413_v44  ;;  %v1382_v12 = vmul.f32 %v7083_v54, %v1354_v30  ;;  %v1768_v47 = vpop.f32.mrb[10].mxu0 }
 0x2bf   : > { %v5418_v43 = vunpack.i.h.bf16 %v5416_v9  ;;  %v5417_v36 = vunpack.i.l.bf16 %v5416_v9  ;;  %v5421_v15 = vpop.permute.xlu0 %5420  ;;  %v4306_v29 = vpack.c.bf16 %v3279_v19, %v3277_v1  ;;  %v1800_v22 = vmul.f32 %v7100_v5, %v1768_v47  ;;  %v1356_v37 = vpop.f32.mrb[5].mxu1 }
 0x2c0   : > { %v5423_v35 = vunpack.i.h.bf16 %v5421_v15  ;;  %v5422_v2 = vunpack.i.l.bf16 %v5421_v15  ;;  %v1770_v52 = vpop.f32.mrb[11].mxu0  ;;  %v1390_v8 = vadd.f32 %v1382_v12, %v794_v34  ;;  %v1383_v13 = vmul.f32 %v7088_v27, %v1356_v37  ;;  %v3496_v37 = vld [vmem:[%s7348_s3 + $0x10] sm:$0xff] }
 0x2c1   : > { %v3276_v53 = vsel %vm3251_vm6, %v5417_v36, %v5407_v55  ;;  %v3278_v61 = vsel %vm3251_vm6, %v5418_v43, %v5412_v46  ;;  %4307 = vmatprep.subr.bf16.mxu0 %v4306_v29  ;;  %v1801_v10 = vmul.f32 %v7105_v11, %v1770_v52  ;;  %v7143_v58 = vadd.f32 %v1800_v22, %v1388_v6 }
 0x2c2   : > { %v4308_v40 = vpack.c.bf16 %v3278_v61, %v3276_v53  ;;  %v5426_v62 = vpop.permute.xlu1 %5425  ;;  %v2861_v57 = vsel %vm2831_vm5, %v5422_v2, %v5423_v35  ;;  %v1391_v55 = vadd.f32 %v1383_v13, %v795_v49  ;;  %v1774_v60 = vpop.f32.mrb[12].mxu0 }
 0x2c3   : > { %v5428_v31 = vunpack.i.h.bf16 %v5426_v62  ;;  %v5427_v26 = vunpack.i.l.bf16 %v5426_v62  ;;  %v5431_v56 = vpop.permute.xlu0 %5430  ;;  %v7145_v46 = vadd.f32 %v1801_v10, %v1389_v38  ;;  %v1776_v9 = vpop.f32.mrb[13].mxu0  ;;  %v1802_v59 = vmul.f32 %v7100_v5, %v1774_v60  ;;  %v3495_v38 = vld [vmem:[%s7348_s3 + $0x8] sm:$0xff]  ;;  %v3497_v10 = vld [vmem:[%s7348_s3 + $0x18] sm:$0xff] }
 0x2c4   : > { %4309 = vmatpush1.bf16.msra.mxu0 %v4308_v40  ;;  %v5433_v32 = vunpack.i.h.bf16 %v5431_v56  ;;  %v5432_v41 = vunpack.i.l.bf16 %v5431_v56  ;;  %v1803_v43 = vmul.f32 %v7105_v11, %v1776_v9  ;;  %v3587_v60 = vld [vmem:[%s7350_s5 + $0x8] sm:$0xff] }
 0x2c5   : > { %v2863_v23 = vsel %vm2831_vm5, %v5427_v26, %v5428_v31  ;;  %v1360_v3 = vpop.f32.mrb[6].mxu1  ;;  %v7153_v25 = vadd.f32 %v1802_v59, %v1390_v8 }
 0x2c6   : > { %v5436_v18 = vpop.permute.xlu1 %5435  ;;  %v2862_v28 = vsel %vm2831_vm5, %v5433_v32, %v5427_v26  ;;  %v2860_v0 = vsel %vm2831_vm5, %v5432_v41, %v5422_v2  ;;  %v4254_v7 = vpack.c.bf16 %v2863_v23, %v2861_v57  ;;  %v1384_v1 = vmul.f32 %v7083_v54, %v1360_v3  ;;  %v1362_v48 = vpop.f32.mrb[7].mxu1  ;;  %v3494_v26 = vld [vmem:[%s7348_s3] sm:$0xff] }
 0x2c7   : > { %v5438_v14 = vunpack.i.h.bf16 %v5436_v18  ;;  %v5437_v63 = vunpack.i.l.bf16 %v5436_v18  ;;  %v4256_v45 = vpack.c.bf16 %v2862_v28, %v2860_v0  ;;  %v5441_v42 = vpop.permute.xlu0 %5440  ;;  %v1385_v16 = vmul.f32 %v7088_v27, %v1362_v48 }
 0x2c8   : > { %4255 = vmatprep.subr.bf16.mxu1 %v4254_v7  ;;  %v5443_v50 = vunpack.i.h.bf16 %v5441_v42  ;;  %v5442_v44 = vunpack.i.l.bf16 %v5441_v42  ;;  %v1392_v29 = vadd.f32 %v1384_v1, %v796_v21  ;;  %v7155_v40 = vadd.f32 %v1803_v43, %v1391_v55  ;;  %v3588_v43 = vld [vmem:[%s7350_s5 + $0x10] sm:$0xff] }
 0x2c9   : > { %4257 = vmatpush1.bf16.msra.mxu1 %v4256_v45  ;;  %v3281_v19 = vsel %vm3251_vm6, %v5437_v63, %v5438_v14  ;;  %v1780_v39 = vpop.f32.mrb[14].mxu0  ;;  %v1393_v6 = vadd.f32 %v1385_v16, %v797_v33  ;;  %v3586_v45 = vld [vmem:[%s7350_s5] sm:$0xff] }
 0x2ca   : > { %v5446_v36 = vpop.permute.xlu1 %5445  ;;  %v3283_v15 = vsel %vm3251_vm6, %v5442_v44, %v5443_v50  ;;  %v1782_v53 = vpop.f32.mrb[15].mxu0  ;;  %v1804_v49 = vmul.f32 %v7100_v5, %v1780_v39  ;;  %v5717_v5 = vmov 0  }
 0x2cb   : > { %v5448_v20 = vunpack.i.h.bf16 %v5446_v36  ;;  %v5447_v35 = vunpack.i.l.bf16 %v5446_v36  ;;  %v5451_v2 = vpop.permute.xlu0 %5450  ;;  %v4310_v54 = vpack.c.bf16 %v3283_v15, %v3281_v19  ;;  %v1805_v21 = vmul.f32 %v7105_v11, %v1782_v53  ;;  %5630 = vset.pattern.permute.xlu1 %v5717_v5  ;;  %5629 = vset.pattern.permute.xlu0 %v5717_v5 }
 0x2cc   : > { %v5453_v61 = vunpack.i.h.bf16 %v5451_v2  ;;  %v5452_v34 = vunpack.i.l.bf16 %v5451_v2  ;;  %v7167_v47 = vadd.f32 %v1804_v49, %v1392_v29  ;;  %3505 = vperm.xlu1 %5630, %v3495_v38   ;;  %3500 = vperm.xlu0 %5629, %v3494_v26   ;;  %v3589_v29 = vld [vmem:[%s7350_s5 + $0x18] sm:$0xff] }
 0x2cd   : > { %v3280_v27 = vsel %vm3251_vm6, %v5447_v35, %v5437_v63  ;;  %v3282_v62 = vsel %vm3251_vm6, %v5448_v20, %v5442_v44  ;;  %4311 = vmatprep.subr.bf16.mxu0 %v4310_v54  ;;  %v7169_v32 = vadd.f32 %v1805_v21, %v1393_v6 }
 0x2ce   : > { %v4312_v30 = vpack.c.bf16 %v3282_v62, %v3280_v27  ;;  %v5456_v31 = vpop.permute.xlu1 %5455  ;;  %v2865_v57 = vsel %vm2831_vm5, %v5452_v34, %v5453_v61 }
 0x2cf   : > { %v5458_v56 = vunpack.i.h.bf16 %v5456_v31  ;;  %v5457_v33 = vunpack.i.l.bf16 %v5456_v31  ;;  %v5461_v12 = vpop.permute.xlu0 %5460 }
 0x2d0   : > { %4313 = vmatpush1.bf16.msra.mxu0 %v4312_v30  ;;  %v5463_v11 = vunpack.i.h.bf16 %v5461_v12  ;;  %v5462_v41 = vunpack.i.l.bf16 %v5461_v12  ;;  %3510 = vperm.xlu1 %5630, %v3496_v37  }
 0x2d1   : > { %v2867_v22 = vsel %vm2831_vm5, %v5457_v33, %v5458_v56  ;;  %3515 = vperm.xlu0 %5629, %v3497_v10  }
 0x2d2   : > { %v5466_v52 = vpop.permute.xlu1 %5465  ;;  %v2866_v23 = vsel %vm2831_vm5, %v5463_v11, %v5457_v33  ;;  %v2864_v8 = vsel %vm2831_vm5, %v5462_v41, %v5452_v34  ;;  %v4258_v13 = vpack.c.bf16 %v2867_v22, %v2865_v57 }
 0x2d3   : > { %v5468_v18 = vunpack.i.h.bf16 %v5466_v52  ;;  %v5467_v28 = vunpack.i.l.bf16 %v5466_v52  ;;  %v4260_v0 = vpack.c.bf16 %v2866_v23, %v2864_v8  ;;  %v5471_v7 = vpop.permute.xlu0 %5470 }
 0x2d4   : > { %4259 = vmatprep.subr.bf16.mxu1 %v4258_v13  ;;  %v5473_v3 = vunpack.i.h.bf16 %v5471_v7  ;;  %v5472_v14 = vunpack.i.l.bf16 %v5471_v7  ;;  %3592 = vperm.xlu1 %5630, %v3586_v45  }
 0x2d5   : > { %4261 = vmatpush1.bf16.msra.mxu1 %v4260_v0  ;;  %v3285_v63 = vsel %vm3251_vm6, %v5467_v28, %v5468_v18  ;;  %3597 = vperm.xlu0 %5629, %v3587_v60  }
 0x2d6   : > { %v5476_v42 = vpop.permute.xlu1 %5475  ;;  %v3287_v55 = vsel %vm3251_vm6, %v5472_v14, %v5473_v3 }
 0x2d7   : > { %v5478_v50 = vunpack.i.h.bf16 %v5476_v42  ;;  %v5477_v44 = vunpack.i.l.bf16 %v5476_v42  ;;  %v5481_v1 = vpop.permute.xlu0 %5480  ;;  %v4314_v48 = vpack.c.bf16 %v3287_v55, %v3285_v63 }
 0x2d8   : > { %v5483_v59 = vunpack.i.h.bf16 %v5481_v1  ;;  %v5482_v16 = vunpack.i.l.bf16 %v5481_v1  ;;  %3602 = vperm.xlu1 %5630, %v3588_v43  }
 0x2d9   : > { %v3284_v9 = vsel %vm3251_vm6, %v5477_v44, %v5467_v28  ;;  %v3286_v19 = vsel %vm3251_vm6, %v5478_v50, %v5472_v14  ;;  %4315 = vmatprep.subr.bf16.mxu0 %v4314_v48  ;;  %3607 = vperm.xlu0 %5629, %v3589_v29  }
 0x2da   : > { %v4316_v36 = vpack.c.bf16 %v3286_v19, %v3284_v9  ;;  %v5486_v15 = vpop.permute.xlu1 %5485  ;;  %v2869_v53 = vsel %vm2831_vm5, %v5482_v16, %v5483_v59 }
 0x2db   : > { %v5488_v39 = vunpack.i.h.bf16 %v5486_v15  ;;  %v5487_v20 = vunpack.i.l.bf16 %v5486_v15  ;;  %v5491_v35 = vpop.permute.xlu0 %5490 }
 0x2dc   : > { %4317 = vmatpush1.bf16.msra.mxu0 %v4316_v36  ;;  %v5493_v2 = vunpack.i.h.bf16 %v5491_v35  ;;  %v5492_v54 = vunpack.i.l.bf16 %v5491_v35 }
 0x2dd   : > { %v2871_v61 = vsel %vm2831_vm5, %v5487_v20, %v5488_v39 }
 0x2de   : > { %v5496_v34 = vpop.permute.xlu1 %5495  ;;  %v2870_v6 = vsel %vm2831_vm5, %v5493_v2, %v5487_v20  ;;  %v2868_v27 = vsel %vm2831_vm5, %v5492_v54, %v5482_v16  ;;  %v4262_v62 = vpack.c.bf16 %v2871_v61, %v2869_v53 }
 0x2df   : > { %v5498_v49 = vunpack.i.h.bf16 %v5496_v34  ;;  %v5497_v21 = vunpack.i.l.bf16 %v5496_v34  ;;  %v4264_v38 = vpack.c.bf16 %v2870_v6, %v2868_v27  ;;  %v5501_v30 = vpop.permute.xlu0 %5500 }
 0x2e0   : > { %4263 = vmatprep.subr.bf16.mxu1 %v4262_v62  ;;  %v5503_v31 = vunpack.i.h.bf16 %v5501_v30  ;;  %v5502_v26 = vunpack.i.l.bf16 %v5501_v30 }
 0x2e1   : > { %4265 = vmatpush1.bf16.msra.mxu1 %v4264_v38  ;;  %v3289_v56 = vsel %vm3251_vm6, %v5497_v21, %v5498_v49 }
 0x2e2   : > { %v5506_v33 = vpop.permute.xlu1 %5505  ;;  %v3291_v12 = vsel %vm3251_vm6, %v5502_v26, %v5503_v31 }
 0x2e3   : > { %v5508_v5 = vunpack.i.h.bf16 %v5506_v33  ;;  %v5507_v11 = vunpack.i.l.bf16 %v5506_v33  ;;  %v5511_v41 = vpop.permute.xlu0 %5510  ;;  %v4318_v57 = vpack.c.bf16 %v3291_v12, %v3289_v56 }
 0x2e4   : > { %v5513_v52 = vunpack.i.h.bf16 %v5511_v41  ;;  %v5512_v23 = vunpack.i.l.bf16 %v5511_v41 }
 0x2e5   : > { %v3288_v22 = vsel %vm3251_vm6, %v5507_v11, %v5497_v21  ;;  %v3290_v37 = vsel %vm3251_vm6, %v5508_v5, %v5502_v26  ;;  %4319 = vmatprep.subr.bf16.mxu0 %v4318_v57 }
 0x2e6   : > { %v4320_v8 = vpack.c.bf16 %v3290_v37, %v3288_v22  ;;  %v5516_v13 = vpop.permute.xlu1 %5515  ;;  %v2873_v3 = vsel %vm2831_vm5, %v5512_v23, %v5513_v52 }
 0x2e7   : > { %v5518_v10 = vunpack.i.h.bf16 %v5516_v13  ;;  %v5517_v18 = vunpack.i.l.bf16 %v5516_v13  ;;  %v5521_v28 = vpop.permute.xlu0 %5520 }
 0x2e8   : > { %4321 = vmatpush1.bf16.msra.mxu0 %v4320_v8  ;;  %v5523_v0 = vunpack.i.h.bf16 %v5521_v28  ;;  %v5522_v7 = vunpack.i.l.bf16 %v5521_v28 }
 0x2e9   : > { %v2875_v14 = vsel %vm2831_vm5, %v5517_v18, %v5518_v10 }
 0x2ea   : > { %v5526_v63 = vpop.permute.xlu1 %5525  ;;  %v2874_v45 = vsel %vm2831_vm5, %v5523_v0, %v5517_v18  ;;  %v2872_v42 = vsel %vm2831_vm5, %v5522_v7, %v5512_v23  ;;  %v4266_v55 = vpack.c.bf16 %v2875_v14, %v2873_v3 }
 0x2eb   : > { %v5528_v60 = vunpack.i.h.bf16 %v5526_v63  ;;  %v5527_v50 = vunpack.i.l.bf16 %v5526_v63  ;;  %v4268_v44 = vpack.c.bf16 %v2874_v45, %v2872_v42  ;;  %v5531_v1 = vpop.permute.xlu0 %5530 }
 0x2ec   : > { %4267 = vmatprep.subr.bf16.mxu1 %v4266_v55  ;;  %v5533_v48 = vunpack.i.h.bf16 %v5531_v1  ;;  %v5532_v9 = vunpack.i.l.bf16 %v5531_v1 }
 0x2ed   : > { %4269 = vmatpush1.bf16.msra.mxu1 %v4268_v44  ;;  %v3293_v19 = vsel %vm3251_vm6, %v5527_v50, %v5528_v60 }
 0x2ee   : > { %v5536_v59 = vpop.permute.xlu1 %5535  ;;  %v3295_v16 = vsel %vm3251_vm6, %v5532_v9, %v5533_v48 }
 0x2ef   : > { %v5538_v43 = vunpack.i.h.bf16 %v5536_v59  ;;  %v5537_v36 = vunpack.i.l.bf16 %v5536_v59  ;;  %v5541_v15 = vpop.permute.xlu0 %5540  ;;  %v4322_v29 = vpack.c.bf16 %v3295_v16, %v3293_v19 }
 0x2f0   : > { %v5543_v35 = vunpack.i.h.bf16 %v5541_v15  ;;  %v5542_v2 = vunpack.i.l.bf16 %v5541_v15 }
 0x2f1   : > { %v3292_v39 = vsel %vm3251_vm6, %v5537_v36, %v5527_v50  ;;  %v3294_v20 = vsel %vm3251_vm6, %v5538_v43, %v5532_v9  ;;  %4323 = vmatprep.subr.bf16.mxu0 %v4322_v29 }
 0x2f2   : > { %v4324_v54 = vpack.c.bf16 %v3294_v20, %v3292_v39  ;;  %v5546_v53 = vpop.permute.xlu1 %5545  ;;  %v2877_v49 = vsel %vm2831_vm5, %v5542_v2, %v5543_v35 }
 0x2f3   : > { %v5548_v61 = vunpack.i.h.bf16 %v5546_v53  ;;  %v5547_v34 = vunpack.i.l.bf16 %v5546_v53  ;;  %v5551_v6 = vpop.permute.xlu0 %5550 }
 0x2f4   : > { %4325 = vmatpush1.bf16.msra.mxu0 %v4324_v54  ;;  %v5553_v27 = vunpack.i.h.bf16 %v5551_v6  ;;  %v5552_v62 = vunpack.i.l.bf16 %v5551_v6 }
 0x2f5   : > { %v2879_v21 = vsel %vm2831_vm5, %v5547_v34, %v5548_v61 }
 0x2f6   : > { %v5556_v38 = vpop.permute.xlu1 %5555  ;;  %v2878_v30 = vsel %vm2831_vm5, %v5553_v27, %v5547_v34  ;;  %v2876_v31 = vsel %vm2831_vm5, %v5552_v62, %v5542_v2  ;;  %v4270_v26 = vpack.c.bf16 %v2879_v21, %v2877_v49 }
 0x2f7   : > { %v5558_v56 = vunpack.i.h.bf16 %v5556_v38  ;;  %v5557_v33 = vunpack.i.l.bf16 %v5556_v38  ;;  %v4272_v12 = vpack.c.bf16 %v2878_v30, %v2876_v31  ;;  %v5561_v5 = vpop.permute.xlu0 %5560 }
 0x2f8   : > { %4271 = vmatprep.subr.bf16.mxu1 %v4270_v26  ;;  %v5563_v11 = vunpack.i.h.bf16 %v5561_v5  ;;  %v5562_v41 = vunpack.i.l.bf16 %v5561_v5 }
 0x2f9   : > { %4273 = vmatpush1.bf16.msra.mxu1 %v4272_v12  ;;  %v3297_v57 = vsel %vm3251_vm6, %v5557_v33, %v5558_v56 }
 0x2fa   : > { %v5566_v22 = vpop.permute.xlu1 %5565  ;;  %v3299_v37 = vsel %vm3251_vm6, %v5562_v41, %v5563_v11 }
 0x2fb   : > { %v5568_v52 = vunpack.i.h.bf16 %v5566_v22  ;;  %v5567_v23 = vunpack.i.l.bf16 %v5566_v22  ;;  %v5571_v8 = vpop.permute.xlu0 %5570  ;;  %v4326_v13 = vpack.c.bf16 %v3299_v37, %v3297_v57 }
 0x2fc   : > { %v5573_v28 = vunpack.i.h.bf16 %v5571_v8  ;;  %v5572_v0 = vunpack.i.l.bf16 %v5571_v8 }
 0x2fd   : > { %v3296_v10 = vsel %vm3251_vm6, %v5567_v23, %v5557_v33  ;;  %v3298_v18 = vsel %vm3251_vm6, %v5568_v52, %v5562_v41  ;;  %4327 = vmatprep.subr.bf16.mxu0 %v4326_v13  ;;  %v3896_v13 = vld [vmem:[%s7347_s2 + $0x140] sm:$0xff] }
 0x2fe   : > { %v4328_v7 = vpack.c.bf16 %v3298_v18, %v3296_v10  ;;  %v5576_v3 = vpop.permute.xlu1 %5575  ;;  %v2881_v60 = vsel %vm2831_vm5, %v5572_v0, %v5573_v28 }
 0x2ff   : > { %v5578_v14 = vunpack.i.h.bf16 %v5576_v3  ;;  %v5577_v63 = vunpack.i.l.bf16 %v5576_v3  ;;  %v5581_v45 = vpop.permute.xlu0 %5580 }
 0x300   : > { %4329 = vmatpush1.bf16.msra.mxu0 %v4328_v7  ;;  %v5583_v42 = vunpack.i.h.bf16 %v5581_v45  ;;  %v5582_v55 = vunpack.i.l.bf16 %v5581_v45 }
 0x301   : > { %v2883_v50 = vsel %vm2831_vm5, %v5577_v63, %v5578_v14 }
 0x302   : > { %v5586_v44 = vpop.permute.xlu1 %5585  ;;  %v2882_v1 = vsel %vm2831_vm5, %v5583_v42, %v5577_v63  ;;  %v2880_v48 = vsel %vm2831_vm5, %v5582_v55, %v5572_v0  ;;  %v4274_v9 = vpack.c.bf16 %v2883_v50, %v2881_v60  ;;  %v3899_v0 = vld [vmem:[%s7347_s2 + $0x158] sm:$0xff]  ;;  %v3898_v42 = vld [vmem:[%s7347_s2 + $0x150] sm:$0xff]  ;;  %v3901_v60 = vld [vmem:[%s7347_s2 + $0x168] sm:$0xff] }
 0x303   : > { %v5588_v19 = vunpack.i.h.bf16 %v5586_v44  ;;  %v5587_v59 = vunpack.i.l.bf16 %v5586_v44  ;;  %v4276_v16 = vpack.c.bf16 %v2882_v1, %v2880_v48  ;;  %v5591_v43 = vpop.permute.xlu0 %5590  ;;  %v3909_v50 = vld [vmem:[%s7347_s2 + $0x180] sm:$0xff]  ;;  %v3912_v1 = vld [vmem:[%s7347_s2 + $0x198] sm:$0xff] }
 0x304   : > { %4275 = vmatprep.subr.bf16.mxu1 %v4274_v9  ;;  %v5593_v36 = vunpack.i.h.bf16 %v5591_v43  ;;  %v5592_v15 = vunpack.i.l.bf16 %v5591_v43  ;;  %v3900_v44 = vld [vmem:[%s7347_s2 + $0x160] sm:$0xff]  ;;  %v3903_v48 = vld [vmem:[%s7347_s2 + $0x178] sm:$0xff]  ;;  %v3911_v9 = vld [vmem:[%s7347_s2 + $0x190] sm:$0xff] }
 0x305   : > { %4277 = vmatpush1.bf16.msra.mxu1 %v4276_v16  ;;  %v3301_v29 = vsel %vm3251_vm6, %v5587_v59, %v5588_v19  ;;  %v3902_v19 = vld [vmem:[%s7347_s2 + $0x170] sm:$0xff]  ;;  %v3913_v16 = vld [vmem:[%s7347_s2 + $0x1a0] sm:$0xff]  ;;  %v3916_v43 = vld [vmem:[%s7347_s2 + $0x1b8] sm:$0xff] }
 0x306   : > { %v5596_v39 = vpop.permute.xlu1 %5595  ;;  %v3303_v20 = vsel %vm3251_vm6, %v5592_v15, %v5593_v36  ;;  %v7419_v36 = vmov 0.0  }
 0x307   : > { %v5598_v35 = vunpack.i.h.bf16 %v5596_v39  ;;  %v5597_v2 = vunpack.i.l.bf16 %v5596_v39  ;;  %v5601_v54 = vpop.permute.xlu0 %5600  ;;  %v4330_v53 = vpack.c.bf16 %v3303_v20, %v3301_v29  ;;  %v3882_v29 = vld [vmem:[%s7346_s1 + $0x3] ss:$8 sm:$0x3] }
 0x308   : > { %v5603_v6 = vunpack.i.h.bf16 %v5601_v54  ;;  %v5602_v27 = vunpack.i.l.bf16 %v5601_v54  ;;  %v2211_v39 = vrot.slane %v3882_v29, %v7059_v24  ;;  %v2215_v20 = vrot.slane %v3882_v29, %v7061_v51 }
 0x309   : > { %v3300_v61 = vsel %vm3251_vm6, %v5597_v2, %v5587_v59  ;;  %v3302_v34 = vsel %vm3251_vm6, %v5598_v35, %v5592_v15  ;;  %4331 = vmatprep.subr.bf16.mxu0 %v4330_v53  ;;  %v3914_v59 = vld [vmem:[%s7347_s2 + $0x1a8] sm:$0xff]  ;;  %v3915_v15 = vld [vmem:[%s7347_s2 + $0x1b0] sm:$0xff] }
 0x30a   : > { %v4332_v62 = vpack.c.bf16 %v3302_v34, %v3300_v61  ;;  %v5606_v49 = vpop.permute.xlu1 %5605  ;;  %v2885_v56 = vsel %vm2831_vm5, %v5602_v27, %v5603_v6  ;;  %v3895_v53 = vld [vmem:[%s7346_s1 + $0x4] ss:$8 sm:$0x3] }
 0x30b   : > { %v5608_v21 = vunpack.i.h.bf16 %v5606_v49  ;;  %v5607_v38 = vunpack.i.l.bf16 %v5606_v49  ;;  %v5611_v30 = vpop.permute.xlu0 %5610 }
 0x30c   : > { %4333 = vmatpush1.bf16.msra.mxu0 %v4332_v62  ;;  %v5613_v31 = vunpack.i.h.bf16 %v5611_v30  ;;  %v5612_v26 = vunpack.i.l.bf16 %v5611_v30  ;;  %v2635_v62 = vrot.slane %v3895_v53, %v7061_v51 }
 0x30d   : > { %v2887_v33 = vsel %vm2831_vm5, %v5607_v38, %v5608_v21 }
 0x30e   : > { %v5616_v12 = vpop.permute.xlu1 %5615  ;;  %v2886_v5 = vsel %vm2831_vm5, %v5613_v31, %v5607_v38  ;;  %v2884_v11 = vsel %vm2831_vm5, %v5612_v26, %v5602_v27  ;;  %v4278_v41 = vpack.c.bf16 %v2887_v33, %v2885_v56  ;;  %v2631_v27 = vrot.slane %v3895_v53, %v7059_v24 }
 0x30f   : > { %v5618_v57 = vunpack.i.h.bf16 %v5616_v12  ;;  %v5617_v22 = vunpack.i.l.bf16 %v5616_v12  ;;  %v4280_v37 = vpack.c.bf16 %v2886_v5, %v2884_v11  ;;  %v5621_v52 = vpop.permute.xlu0 %5620 }
 0x310   : > { %4279 = vmatprep.subr.bf16.mxu1 %v4278_v41  ;;  %v5623_v23 = vunpack.i.h.bf16 %v5621_v52  ;;  %v5622_v8 = vunpack.i.l.bf16 %v5621_v52 }
 0x311   : > { %4281 = vmatpush1.bf16.msra.mxu1 %v4280_v37  ;;  %v3305_v10 = vsel %vm3251_vm6, %v5617_v22, %v5618_v57 }
 0x312   : > { %v5626_v18 = vpop.permute.xlu1 %5625  ;;  %v3307_v28 = vsel %vm3251_vm6, %v5622_v8, %v5623_v23 }
 0x313   : > { %v5628_v7 = vunpack.i.h.bf16 %v5626_v18  ;;  %v5627_v3 = vunpack.i.l.bf16 %v5626_v18  ;;  %v4334_v14 = vpack.c.bf16 %v3307_v28, %v3305_v10 }
 0x314   : > { %3021 = vmatmul.mubr.f32.vlgmr.msra.gmra.mrb[16].mxu1 %v3896_v13 }
 0x315   : > { %v3304_v63 = vsel %vm3251_vm6, %v5627_v3, %v5617_v22  ;;  %v3306_v45 = vsel %vm3251_vm6, %v5628_v7, %v5622_v8  ;;  %4335 = vmatprep.subr.bf16.mxu0 %v4334_v14  ;;  %3905 = vmatprep.mubr.msk.f32.mxu1 %vm676_vm0, %v3899_v0 }
 0x316   : > { %v4336_v55 = vpack.c.bf16 %v3306_v45, %v3304_v63 }
 0x318   : > { %4337 = vmatpush1.bf16.msra.mxu0 %v4336_v55  ;;  %3027 = vmatmul.mubr.f32.gmra.mrb[18].mxu1 %v3898_v42 }
 0x319   : > { %3906 = vmatprep.mubr.msk.f32.mxu1 %vm676_vm0, %v3901_v60 }
 0x31b   : > { %3441 = vmatmul.mubr.f32.vlgmr.msra.gmra.mrb[24].mxu0 %v3909_v50 }
 0x31c   : > { %3033 = vmatmul.mubr.f32.gmra.mrb[20].mxu1 %v3900_v44  ;;  %3918 = vmatprep.mubr.msk.f32.mxu0 %vm676_vm0, %v3912_v1 }
 0x31d   : > { %3907 = vmatprep.mubr.msk.f32.mxu1 %vm676_vm0, %v3903_v48 }
 0x31f   : > { %3447 = vmatmul.mubr.f32.gmra.mrb[26].mxu0 %v3911_v9 }
 0x320   : > { %3039 = vmatmul.mubr.f32.gmra.mrb[22].mxu1 %v3902_v19  ;;  %3919 = vmatprep.mubr.msk.f32.mxu0 %vm676_vm0, %v3914_v59  ;;  %v3908_v19 = vld [vmem:[%s7346_s1 + $0x5] ss:$8 sm:$0x3] }
 0x321   : > { %3687 = vmatprep.mubr.f32.mxu1 %v7419_v36  ;;  %v3051_v59 = vrot.slane %v3908_v19, %v7059_v24 }
 0x323   : > { %3453 = vmatmul.mubr.f32.gmra.mrb[28].mxu0 %v3913_v16  ;;  %v3055_v16 = vrot.slane %v3908_v19, %v7061_v51 }
 0x324   : > { %3920 = vmatprep.mubr.msk.f32.mxu0 %vm676_vm0, %v3916_v43 }
 0x327   : > { %3459 = vmatmul.mubr.f32.gmra.mrb[30].mxu0 %v3915_v15 }
 0x33f   : > { %v2182_v35 = vpop.f32.mrb[8].mxu1 }
 0x340   : > { %v2218_v2 = vmul.f32 %v2211_v39, %v2182_v35  ;;  %v2184_v54 = vpop.f32.mrb[9].mxu1 }
 0x341   : > { %v2219_v61 = vmul.f32 %v2215_v20, %v2184_v54 }
 0x342   : > { %v2226_v34 = vadd.f32 %v2218_v2, %v7109_v4 }
 0x343   : > { %v2227_v6 = vadd.f32 %v2219_v61, %v7113_v17 }
 0x344   : > { %v2188_v49 = vpop.f32.mrb[10].mxu1 }
 0x345   : > { %v2220_v21 = vmul.f32 %v2211_v39, %v2188_v49  ;;  %v2190_v38 = vpop.f32.mrb[11].mxu1 }
 0x346   : > { %v2602_v30 = vpop.f32.mrb[16].mxu0  ;;  %v2221_v31 = vmul.f32 %v2215_v20, %v2190_v38 }
 0x347   : > { %v2638_v26 = vmul.f32 %v2631_v27, %v2602_v30  ;;  %v2604_v56 = vpop.f32.mrb[17].mxu0  ;;  %v2228_v33 = vadd.f32 %v2220_v21, %v7143_v58 }
 0x348   : > { %v2639_v12 = vmul.f32 %v2635_v62, %v2604_v56  ;;  %v2229_v5 = vadd.f32 %v2221_v31, %v7145_v46 }
 0x349   : > { %v2646_v11 = vadd.f32 %v2638_v26, %v2226_v34  ;;  %v2194_v4 = vpop.f32.mrb[12].mxu1 }
 0x34a   : > { %v2647_v41 = vadd.f32 %v2639_v12, %v2227_v6  ;;  %v2608_v17 = vpop.f32.mrb[18].mxu0  ;;  %v2222_v57 = vmul.f32 %v2211_v39, %v2194_v4  ;;  %v2196_v22 = vpop.f32.mrb[13].mxu1 }
 0x34b   : > { %v2640_v37 = vmul.f32 %v2631_v27, %v2608_v17  ;;  %v2610_v52 = vpop.f32.mrb[19].mxu0  ;;  %v2223_v23 = vmul.f32 %v2215_v20, %v2196_v22  ;;  %v3501_v12 = vpop.permute.xlu0 %3500 }
 0x34c   : > { %v2641_v8 = vmul.f32 %v2635_v62, %v2610_v52  ;;  %v2230_v13 = vadd.f32 %v2222_v57, %v7153_v25  ;;  %v3506_v22 = vpop.permute.xlu1 %3505 }
 0x34d   : > { %v2648_v10 = vadd.f32 %v2640_v37, %v2228_v33  ;;  %v2231_v18 = vadd.f32 %v2223_v23, %v7155_v40  ;;  %v2200_v28 = vpop.f32.mrb[14].mxu1 }
 0x34e   : > { %v2649_v58 = vadd.f32 %v2641_v8, %v2229_v5  ;;  %v2614_v0 = vpop.f32.mrb[20].mxu0  ;;  %v2224_v7 = vmul.f32 %v2211_v39, %v2200_v28  ;;  %v2202_v46 = vpop.f32.mrb[15].mxu1 }
 0x34f   : > { %v2642_v3 = vmul.f32 %v2631_v27, %v2614_v0  ;;  %v2616_v14 = vpop.f32.mrb[21].mxu0  ;;  %v2225_v63 = vmul.f32 %v2215_v20, %v2202_v46 }
 0x350   : > { %v2643_v45 = vmul.f32 %v2635_v62, %v2616_v14  ;;  %v2232_v42 = vadd.f32 %v2224_v7, %v7167_v47 }
 0x351   : > { %v2650_v55 = vadd.f32 %v2642_v3, %v2230_v13  ;;  %v2233_v60 = vadd.f32 %v2225_v63, %v7169_v32  ;;  %v3921_v32 = vld [vmem:[%s7346_s1 + $0x6] ss:$8 sm:$0x3] }
 0x352   : > { %v2651_v50 = vadd.f32 %v2643_v45, %v2231_v18  ;;  %v2620_v44 = vpop.f32.mrb[22].mxu0  ;;  %v3471_v2 = vrot.slane %v3921_v32, %v7059_v24  ;;  %v3475_v61 = vrot.slane %v3921_v32, %v7061_v51 }
 0x353   : > { %v2644_v25 = vmul.f32 %v2631_v27, %v2620_v44  ;;  %v2622_v1 = vpop.f32.mrb[23].mxu0 }
 0x354   : > { %v2645_v48 = vmul.f32 %v2635_v62, %v2622_v1 }
 0x355   : > { %v2652_v40 = vadd.f32 %v2644_v25, %v2232_v42 }
 0x356   : > { %v2653_v9 = vadd.f32 %v2645_v48, %v2233_v60 }
 0x3e7   : > { %v3022_v43 = vpop.f32.mrb[16].mxu1 }
 0x3e8   : > { %v3058_v47 = vmul.f32 %v3051_v59, %v3022_v43  ;;  %v3024_v15 = vpop.f32.mrb[17].mxu1 }
 0x3e9   : > { %v3059_v29 = vmul.f32 %v3055_v16, %v3024_v15 }
 0x3ea   : > { %v3066_v39 = vadd.f32 %v3058_v47, %v2646_v11  ;;  %v3516_v47 = vpop.permute.xlu0 %3515 }
 0x3eb   : > { %v3067_v20 = vadd.f32 %v3059_v29, %v2647_v41  ;;  %v3028_v35 = vpop.f32.mrb[18].mxu1 }
 0x3ec   : > { %v3060_v54 = vmul.f32 %v3051_v59, %v3028_v35  ;;  %v3030_v53 = vpop.f32.mrb[19].mxu1 }
 0x3ed   : > { %v3061_v34 = vmul.f32 %v3055_v16, %v3030_v53 }
 0x3ee   : > { %v3068_v6 = vadd.f32 %v3060_v54, %v2648_v10  ;;  %v3442_v27 = vpop.f32.mrb[24].mxu0 }
 0x3ef   : > { %v3069_v62 = vadd.f32 %v3061_v34, %v2649_v58  ;;  %v3478_v49 = vmul.f32 %v3471_v2, %v3442_v27  ;;  %v3444_v21 = vpop.f32.mrb[25].mxu0  ;;  %v3034_v38 = vpop.f32.mrb[20].mxu1 }
 0x3f0   : > { %v3479_v30 = vmul.f32 %v3475_v61, %v3444_v21  ;;  %v3062_v31 = vmul.f32 %v3051_v59, %v3034_v38  ;;  %v3036_v26 = vpop.f32.mrb[21].mxu1 }
 0x3f1   : > { %v3486_v56 = vadd.f32 %v3478_v49, %v3066_v39  ;;  %v3063_v33 = vmul.f32 %v3055_v16, %v3036_v26 }
 0x3f2   : > { %v3487_v5 = vadd.f32 %v3479_v30, %v3067_v20  ;;  %v3070_v11 = vadd.f32 %v3062_v31, %v2650_v55  ;;  %v3448_v24 = vpop.f32.mrb[26].mxu0 }
 0x3f3   : > { %v7314_v4 = vadd.f32 %v3501_v12, %v3486_v56  ;;  %v3071_v41 = vadd.f32 %v3063_v33, %v2651_v50  ;;  %v3480_v51 = vmul.f32 %v3471_v2, %v3448_v24  ;;  %v3450_v17 = vpop.f32.mrb[27].mxu0  ;;  %v3040_v57 = vpop.f32.mrb[22].mxu1 }
 0x3f4   : > { %v7316_v37 = vadd.f32 %v3501_v12, %v3487_v5  ;;  %v3481_v52 = vmul.f32 %v3475_v61, %v3450_v17  ;;  %v3064_v23 = vmul.f32 %v3051_v59, %v3040_v57  ;;  %v3042_v8 = vpop.f32.mrb[23].mxu1  ;;  %v3511_v50 = vpop.permute.xlu1 %3510 }
 0x3f5   : > { %v3922_v13 = vmul.f32 -1.442695, %v7314_v4  ;;  %v3488_v10 = vadd.f32 %v3480_v51, %v3068_v6  ;;  %v3065_v18 = vmul.f32 %v3055_v16, %v3042_v8 }
 0x3f6   : > { %v3923_v28 = vmul.f32 -1.442695, %v7316_v37  ;;  %v3489_v58 = vadd.f32 %v3481_v52, %v3069_v62  ;;  %v3072_v0 = vadd.f32 %v3064_v23, %v2652_v40  ;;  %v3454_v7 = vpop.f32.mrb[28].mxu0 }
 0x3f7   : > { %5631 = vpow2.f32 %v3922_v13  ;;  %v3520_v46 = vadd.f32 %v3506_v22, %v3488_v10  ;;  %v3073_v3 = vadd.f32 %v3065_v18, %v2653_v9  ;;  %v3482_v14 = vmul.f32 %v3471_v2, %v3454_v7  ;;  %v3456_v63 = vpop.f32.mrb[29].mxu0 }
 0x3f8   : > { %5633 = vpow2.f32 %v3923_v28  ;;  %v3521_v45 = vadd.f32 %v3506_v22, %v3489_v58  ;;  %v3483_v42 = vmul.f32 %v3475_v61, %v3456_v63  ;;  %v3593_v63 = vpop.permute.xlu1 %3592 }
 0x3f9   : > { %v3924_v55 = vmul.f32 -1.442695, %v3520_v46  ;;  %v3490_v60 = vadd.f32 %v3482_v14, %v3070_v11  ;;  %v3585_v14 = vld [vmem:[%s7349_s4 + $0x18] sm:$0xff] }
 0x3fa   : > { %v3925_v44 = vmul.f32 -1.442695, %v3521_v45  ;;  %v3491_v25 = vadd.f32 %v3483_v42, %v3071_v41  ;;  %v3460_v1 = vpop.f32.mrb[30].mxu0 }
 0x3fb   : > { %5635 = vpow2.f32 %v3924_v55  ;;  %v3522_v48 = vadd.f32 %v3511_v50, %v3490_v60  ;;  %v3484_v19 = vmul.f32 %v3471_v2, %v3460_v1  ;;  %v3462_v59 = vpop.f32.mrb[31].mxu0 }
 0x3fc   : > { %5637 = vpow2.f32 %v3925_v44  ;;  %v3523_v40 = vadd.f32 %v3511_v50, %v3491_v25  ;;  %v3485_v16 = vmul.f32 %v3475_v61, %v3462_v59  ;;  %v3598_v44 = vpop.permute.xlu0 %3597 }
 0x3fd   : > { %v3926_v43 = vmul.f32 -1.442695, %v3522_v48  ;;  %v3492_v9 = vadd.f32 %v3484_v19, %v3072_v0 }
 0x3fe   : > { %v3927_v15 = vmul.f32 -1.442695, %v3523_v40  ;;  %v3493_v32 = vadd.f32 %v3485_v16, %v3073_v3 }
 0x3ff   : > { %5639 = vpow2.f32 %v3926_v43  ;;  %v3524_v29 = vadd.f32 %v3516_v47, %v3492_v9 }
 0x400   : > { %5641 = vpow2.f32 %v3927_v15  ;;  %v3525_v39 = vadd.f32 %v3516_v47, %v3493_v32 }
 0x401   : > { %v5632_v20 = vpop.eup %5631  ;;  %v3928_v35 = vmul.f32 -1.442695, %v3524_v29 }
 0x402   : > { %v5634_v54 = vpop.eup %5633  ;;  %v3550_v53 = vadd.f32 1.0, %v5632_v20  ;;  %v3929_v34 = vmul.f32 -1.442695, %v3525_v39 }
 0x403   : > { %v3551_v6 = vadd.f32 1.0, %v5634_v54  ;;  %5643 = vpow2.f32 %v3928_v35 }
 0x404   : > { %5645 = vrcp.f32 %v3550_v53 }
 0x405   : > { %v5636_v2 = vpop.eup %5635  ;;  %5647 = vpow2.f32 %v3929_v34 }
 0x406   : > { %v5638_v27 = vpop.eup %5637  ;;  %v3552_v61 = vadd.f32 1.0, %v5636_v2  ;;  %5649 = vrcp.f32 %v3551_v6 }
 0x407   : > { %v3553_v62 = vadd.f32 1.0, %v5638_v27 }
 0x408   : > { %5651 = vrcp.f32 %v3552_v61 }
 0x409   : > { %v5640_v49 = vpop.eup %5639  ;;  %5653 = vrcp.f32 %v3553_v62 }
 0x40a   : > { %v5642_v21 = vpop.eup %5641  ;;  %v3554_v38 = vadd.f32 1.0, %v5640_v49 }
 0x40b   : > { %v3555_v31 = vadd.f32 1.0, %v5642_v21 }
 0x40c   : > { %5655 = vrcp.f32 %v3554_v38 }
 0x40d   : > { %v5644_v30 = vpop.eup %5643 }
 0x40e   : > { %v3556_v26 = vadd.f32 1.0, %v5644_v30  ;;  %v5646_v56 = vpop.eup %5645 }
 0x40f   : > { %v5648_v33 = vpop.eup %5647  ;;  %v3574_v41 = vmul.f32 %v5646_v56, %v7314_v4  ;;  %v3582_v4 = vld [vmem:[%s7349_s4] sm:$0xff] }
 0x410   : > { %5657 = vrcp.f32 %v3556_v26  ;;  %v5650_v12 = vpop.eup %5649  ;;  %v3557_v5 = vadd.f32 1.0, %v5648_v33 }
 0x411   : > { %5659 = vrcp.f32 %v3555_v31  ;;  %v3575_v17 = vmul.f32 %v5650_v12, %v7316_v37  ;;  %v3583_v37 = vld [vmem:[%s7349_s4 + $0x8] sm:$0xff] }
 0x412   : > { %v5652_v11 = vpop.eup %5651  ;;  %5661 = vrcp.f32 %v3557_v5 }
 0x413   : > { %v5654_v24 = vpop.eup %5653  ;;  %v3576_v51 = vmul.f32 %v5652_v11, %v3520_v46  ;;  %v3584_v46 = vld [vmem:[%s7349_s4 + $0x10] sm:$0xff] }
 0x414   : > { %v3577_v57 = vmul.f32 %v5654_v24, %v3521_v45 }
 0x415   : > { %v4340_v22 = vpack.c.bf16 %v3576_v51, %v3574_v41 }
 0x416   : > { %v4338_v52 = vpack.c.bf16 %v3577_v57, %v3575_v17  ;;  %v5656_v23 = vpop.eup %5655 }
 0x417   : > { %v3578_v10 = vmul.f32 %v5656_v23, %v3522_v48 }
 0x418   : > { %4339 = vmatprep.subr.bf16.mxu1 %v4338_v52 }
 0x419   : > { %4341 = vmatpush1.bf16.msra.mxu1 %v4340_v22 }
 0x41a   : > { %v5658_v8 = vpop.eup %5657 }
 0x41b   : > { %v5660_v13 = vpop.eup %5659  ;;  %v3580_v18 = vmul.f32 %v5658_v8, %v3524_v29  ;;  %v3608_v29 = vpop.permute.xlu0 %3607 }
 0x41c   : > { %v5662_v28 = vpop.eup %5661  ;;  %v3579_v0 = vmul.f32 %v5660_v13, %v3523_v40  ;;  %v3603_v40 = vpop.permute.xlu1 %3602 }
 0x41d   : > { %v4344_v58 = vpack.c.bf16 %v3580_v18, %v3578_v10  ;;  %v3581_v7 = vmul.f32 %v5662_v28, %v3525_v39 }
 0x41f   : > { %v4342_v3 = vpack.c.bf16 %v3581_v7, %v3579_v0 }
 0x421   : > { %4343 = vmatprep.subr.bf16.mxu1 %v4342_v3 }
 0x422   : > { %4345 = vmatpush1.bf16.msra.mxu1 %v4344_v58 }
 0x425   : > { %3930 = vmatmul.mubr.msk.f32.vlgmr.msra.gmra.mrb[24].mxu1 %vm3610_vm7, %v3582_v4 }
 0x426   : > { %3693 = vmatprep.mubr.f32.mxu1 %v7419_v36 }
 0x429   : > { %3931 = vmatmul.mubr.msk.f32.gmra.mrb[26].mxu1 %vm3610_vm7, %v3583_v37 }
 0x42a   : > { %3699 = vmatprep.mubr.f32.mxu1 %v7419_v36 }
 0x42d   : > { %3932 = vmatmul.mubr.msk.f32.gmra.mrb[28].mxu1 %vm3610_vm7, %v3584_v46 }
 0x42e   : > { %3705 = vmatprep.mubr.f32.mxu1 %v7419_v36 }
 0x431   : > { %3933 = vmatmul.mubr.msk.f32.gmra.mrb[30].mxu1 %vm3610_vm7, %v3585_v14 }
 0x4f8   : > { %v3689_v45 = vpop.f32.mrb[24].mxu1 }
 0x4f9   : > { %v3690_v42 = vadd.f32 %v3689_v45, %v3593_v63  ;;  %v3691_v55 = vpop.f32.mrb[25].mxu1 }
 0x4fa   : > { %v3692_v60 = vadd.f32 %v3691_v55, %v3593_v63 }
 0x4fb   : > { %v3934_v50 = vmul.f32 -1.442695, %v3690_v42 }
 0x4fc   : > { %v3935_v25 = vmul.f32 -1.442695, %v3692_v60  ;;  %v3695_v1 = vpop.f32.mrb[26].mxu1 }
 0x4fd   : > { %5663 = vpow2.f32 %v3934_v50  ;;  %v3696_v48 = vadd.f32 %v3695_v1, %v3598_v44  ;;  %v3697_v19 = vpop.f32.mrb[27].mxu1 }
 0x4fe   : > { %5665 = vpow2.f32 %v3935_v25  ;;  %v3698_v59 = vadd.f32 %v3697_v19, %v3598_v44 }
 0x4ff   : > { %v3936_v36 = vmul.f32 -1.442695, %v3696_v48 }
 0x500   : > { %v3937_v16 = vmul.f32 -1.442695, %v3698_v59  ;;  %v3701_v43 = vpop.f32.mrb[28].mxu1 }
 0x501   : > { %5667 = vpow2.f32 %v3936_v36  ;;  %v3702_v9 = vadd.f32 %v3701_v43, %v3603_v40  ;;  %v3703_v47 = vpop.f32.mrb[29].mxu1 }
 0x502   : > { %5669 = vpow2.f32 %v3937_v16  ;;  %v3704_v15 = vadd.f32 %v3703_v47, %v3603_v40 }
 0x503   : > { %v3938_v32 = vmul.f32 -1.442695, %v3702_v9 }
 0x504   : > { %v3939_v39 = vmul.f32 -1.442695, %v3704_v15  ;;  %v3707_v20 = vpop.f32.mrb[30].mxu1 }
 0x505   : > { %5671 = vpow2.f32 %v3938_v32  ;;  %v3708_v35 = vadd.f32 %v3707_v20, %v3608_v29  ;;  %v3709_v54 = vpop.f32.mrb[31].mxu1 }
 0x506   : > { %5673 = vpow2.f32 %v3939_v39  ;;  %v3710_v53 = vadd.f32 %v3709_v54, %v3608_v29 }
 0x507   : > { %v5664_v34 = vpop.eup %5663  ;;  %v3940_v6 = vmul.f32 -1.442695, %v3708_v35 }
 0x508   : > { %v5666_v2 = vpop.eup %5665  ;;  %v3736_v27 = vadd.f32 1.0, %v5664_v34  ;;  %v3941_v61 = vmul.f32 -1.442695, %v3710_v53 }
 0x509   : > { %v3737_v62 = vadd.f32 1.0, %v5666_v2  ;;  %5675 = vpow2.f32 %v3940_v6 }
 0x50a   : > { %5677 = vrcp.f32 %v3736_v27 }
 0x50b   : > { %v5668_v49 = vpop.eup %5667  ;;  %5679 = vrcp.f32 %v3737_v62 }
 0x50c   : > { %v5670_v21 = vpop.eup %5669  ;;  %v3738_v38 = vadd.f32 1.0, %v5668_v49  ;;  %5681 = vpow2.f32 %v3941_v61 }
 0x50d   : > { %v3739_v30 = vadd.f32 1.0, %v5670_v21 }
 0x50e   : > { %5683 = vrcp.f32 %v3738_v38 }
 0x50f   : > { %v5672_v31 = vpop.eup %5671  ;;  %5685 = vrcp.f32 %v3739_v30 }
 0x510   : > { %v5674_v26 = vpop.eup %5673  ;;  %v3740_v56 = vadd.f32 1.0, %v5672_v31 }
 0x511   : > { %v3741_v33 = vadd.f32 1.0, %v5674_v26 }
 0x512   : > { %5687 = vrcp.f32 %v3740_v56 }
 0x513   : > { %v5676_v12 = vpop.eup %5675  ;;  %5689 = vrcp.f32 %v3741_v33 }
 0x514   : > { %v5678_v5 = vpop.eup %5677  ;;  %v3742_v11 = vadd.f32 1.0, %v5676_v12 }
 0x515   : > { %v5680_v24 = vpop.eup %5679  ;;  %v3760_v41 = vmul.f32 %v5678_v5, %v3690_v42 }
 0x516   : > { %v5682_v51 = vpop.eup %5681  ;;  %v3761_v17 = vmul.f32 %v5680_v24, %v3692_v60  ;;  %5691 = vrcp.f32 %v3742_v11 }
 0x517   : > { %3768 = vst [vmem:[%s251_s26] sm:$0xff] %v3760_v41  ;;  %v3743_v57 = vadd.f32 1.0, %v5682_v51 }
 0x518   : > { %v5684_v22 = vpop.eup %5683  ;;  %3769 = vst [vmem:[%s251_s26 + $0x8] sm:$0xff] %v3761_v17 }
 0x519   : > { %v5686_v52 = vpop.eup %5685  ;;  %v3762_v23 = vmul.f32 %v5684_v22, %v3696_v48  ;;  %5693 = vrcp.f32 %v3743_v57 }
 0x51a   : > { %v3763_v8 = vmul.f32 %v5686_v52, %v3698_v59 }
 0x51b   : > { %3770 = vst [vmem:[%s251_s26 + $0x10] sm:$0xff] %v3762_v23 }
 0x51c   : > { %v5688_v13 = vpop.eup %5687  ;;  %3771 = vst [vmem:[%s251_s26 + $0x18] sm:$0xff] %v3763_v8 }
 0x51d   : > { %v5690_v10 = vpop.eup %5689  ;;  %v3764_v18 = vmul.f32 %v5688_v13, %v3702_v9 }
 0x51e   : > { %v3765_v28 = vmul.f32 %v5690_v10, %v3704_v15 }
 0x51f   : > { %3772 = vst [vmem:[%s251_s26 + $0x20] sm:$0xff] %v3764_v18 }
 0x520   : > { %v5692_v58 = vpop.eup %5691  ;;  %3773 = vst [vmem:[%s251_s26 + $0x28] sm:$0xff] %v3765_v28 }
 0x521   : > { %v3766_v0 = vmul.f32 %v5692_v58, %v3708_v35 }
 0x523   : > { %v5694_v7 = vpop.eup %5693  ;;  %3774 = vst [vmem:[%s251_s26 + $0x30] sm:$0xff] %v3766_v0 }
 0x524   : > { %v3767_v3 = vmul.f32 %v5694_v7, %v3710_v53 }
 0x526   : > { %3775 = vst [vmem:[%s251_s26 + $0x38] sm:$0xff] %v3767_v3 }
 0x527 PF: > { %s16_s21 = sadd.s32 1, %s5701_s21  }
 0x528   : > { %p13_p4 = scmp.ge.s32.totalorder %s16_s21, 4  }
 0x52a   :  { %15 = sbr.rel (!%p13_p4) target bundleno = 1 (0x1), region = 86 }

</bundles_post_ra>
